<compile_context>
chip_gen: v7x
topology: tpu7x:2x2x1
jax: 0.10.0
libtpu: 0.0.40
codegen_flags: <defaults>
</compile_context>

<pallas_src>
import numpy as np
import jax
import jax.numpy as jnp
from jax import lax
from jax.experimental import pallas as pl
from jax.experimental.pallas import tpu as pltpu

LAMBDA_T = 0.1


def stan_kernel(x_ref, wt_ref, bt_ref, w1_ref, b1_ref, w2_ref, b2_ref,
                wf1_ref, bf1_ref, wf2_ref, bf2_ref, out_ref):
    B, T, S, Fd = x_ref.shape
    H = wt_ref.shape[1]
    C1 = b1_ref.shape[1]
    C2 = b2_ref.shape[1]
    Sp, Fp = S // 2, Fd // 2                 # MaxPool3d((1,2,2)), floor mode

    x = x_ref[...].astype(jnp.float32)

    # ---------------- Temporal attention (single small MXU matmul) ----------
    x_temp = jnp.mean(x, axis=2)                                   # (B, T, F)
    sh = jnp.dot(x_temp.reshape(B * T, Fd), wt_ref[...],
                 preferred_element_type=jnp.float32) + bt_ref[...]
    sh = jnp.maximum(sh, 0.0)                                      # (B*T, H)
    scores = jnp.mean(sh.reshape(B, T, H), axis=2) * (1.0 - LAMBDA_T)  # (B, T)
    m = jnp.max(scores, axis=1, keepdims=True)
    e = jnp.exp(scores - m)
    attn = e / jnp.sum(e, axis=1, keepdims=True)                   # softmax over T
    x_attn = jnp.sum(x * attn[:, :, None, None], axis=1)           # (B, S, F)

    # -------- Conv3d #1: 1 -> C1, k=(1,3,3), pad=(0,1,1), ReLU (im2col) -----
    zs = jnp.zeros((B, 1, Fd), jnp.float32)
    zf = jnp.zeros((B, S + 2, 1), jnp.float32)
    xp = jnp.concatenate([zs, x_attn, zs], axis=1)                 # (B, S+2, F)
    xp = jnp.concatenate([zf, xp, zf], axis=2)                     # (B, S+2, F+2)
    taps1 = [xp[:, di:di + S, dj:dj + Fd, None]
             for di in range(3) for dj in range(3)]
    p1 = jnp.concatenate(taps1, axis=-1).reshape(B * S * Fd, 9)    # (B*S*F, 9)
    y1 = jnp.dot(p1, w1_ref[...], preferred_element_type=jnp.float32) + b1_ref[...]
    y1 = jnp.maximum(y1, 0.0).reshape(B, S, Fd, C1)                # (B, S, F, C1)

    # ---------------- MaxPool3d (1,2,2), floor, vectorized ------------------
    pf = jnp.max(y1[:, :, :2 * Fp, :].reshape(B, S, Fp, 2, C1), axis=3)
    pooled = jnp.max(pf[:, :2 * Sp].reshape(B, Sp, 2, Fp, C1), axis=2)
    # pooled: (B, Sp, Fp, C1)

    # ----- Conv3d #2: C1 -> C2, k=(1,3,3), pad=(0,1,1), ReLU (im2col) -------
    zs2 = jnp.zeros((B, 1, Fp, C1), jnp.float32)
    zf2 = jnp.zeros((B, Sp + 2, 1, C1), jnp.float32)
    pp = jnp.concatenate([zs2, pooled, zs2], axis=1)               # (B, Sp+2, Fp, C1)
    pp = jnp.concatenate([zf2, pp, zf2], axis=2)                   # (B, Sp+2, Fp+2, C1)
    taps2 = [pp[:, di:di + Sp, dj:dj + Fp, :]
             for di in range(3) for dj in range(3)]
    p2 = jnp.concatenate(taps2, axis=-1).reshape(B * Sp * Fp, 9 * C1)
    y2 = jnp.dot(p2, w2_ref[...], preferred_element_type=jnp.float32) + b2_ref[...]
    y2 = jnp.maximum(y2, 0.0)                                      # (B*Sp*Fp, C2)

    # -------- AdaptiveMaxPool3d((1,1,1)) -> global spatial max --------------
    g = jnp.max(y2.reshape(B, Sp * Fp, C2), axis=1)                # (B, C2)

    # ---------------- FC head: Linear-ReLU-Linear-Sigmoid -------------------
    h = jnp.dot(g, wf1_ref[...], preferred_element_type=jnp.float32) + bf1_ref[...]
    h = jnp.maximum(h, 0.0)
    o = jnp.dot(h, wf2_ref[...], preferred_element_type=jnp.float32) + bf2_ref[...]
    out_ref[...] = 1.0 / (1.0 + jnp.exp(-o))                       # (B, 1)


def make_torch_style_params(key, feature_dim=3, temp_hidden_dim=16, conv_channels=8):
    """Deterministic parameters, shaped like the PyTorch module's tensors."""
    ks = jax.random.split(key, 10)
    H, C1, C2 = temp_hidden_dim, conv_channels, conv_channels * 2

    def rnd(k, shape, scale=0.1):
        return (scale * jax.random.normal(k, shape)).astype(jnp.float32)

    return dict(
        wt=rnd(ks[0], (H, feature_dim)),      # temp_attn.fc.weight
        bt=rnd(ks[1], (H,)),                  # temp_attn.fc.bias
        c1w=rnd(ks[2], (C1, 1, 3, 3)),        # conv3d[0].weight (depth-1 squeezed)
        c1b=rnd(ks[3], (C1,)),
        c2w=rnd(ks[4], (C2, C1, 3, 3)),       # conv3d[3].weight (depth-1 squeezed)
        c2b=rnd(ks[5], (C2,)),
        f1w=rnd(ks[6], (32, C2)),             # fc[0].weight
        f1b=rnd(ks[7], (32,)),
        f2w=rnd(ks[8], (1, 32)),              # fc[2].weight
        f2b=rnd(ks[9], (1,)),
    )


def to_kernel_params(tp):
    C1 = tp['c1w'].shape[0]
    C2 = tp['c2w'].shape[0]
    return dict(
        wt=tp['wt'].T,                                                  # (F, H)
        bt=tp['bt'].reshape(1, -1),
        w1=jnp.transpose(tp['c1w'][:, 0], (1, 2, 0)).reshape(9, C1),    # (9, C1)
        b1=tp['c1b'].reshape(1, -1),
        w2=jnp.transpose(tp['c2w'], (2, 3, 1, 0)).reshape(9 * C1, C2),  # (9*C1, C2)
        b2=tp['c2b'].reshape(1, -1),
        wf1=tp['f1w'].T,                                                # (C2, 32)
        bf1=tp['f1b'].reshape(1, -1),
        wf2=tp['f2w'].T,                                                # (32, 1)
        bf2=tp['f2b'].reshape(1, -1),
    )


def stan_forward(x, kp, block_b=8):
    B, T, S, Fd = x.shape
    bb = min(block_b, B)

    weights = (kp['wt'], kp['bt'], kp['w1'], kp['b1'], kp['w2'], kp['b2'],
               kp['wf1'], kp['bf1'], kp['wf2'], kp['bf2'])

    def batch_spec(shape):
        nd = len(shape)
        return pl.BlockSpec((bb,) + tuple(shape[1:]),
                            lambda b, _nd=nd: (b,) + (0,) * (_nd - 1))

    def full_spec(shape):
        nd = len(shape)
        return pl.BlockSpec(tuple(shape), lambda b, _nd=nd: (0,) * _nd)

    in_specs = [batch_spec(x.shape)] + [full_spec(w.shape) for w in weights]

    return pl.pallas_call(
        stan_kernel,
        out_shape=jax.ShapeDtypeStruct((B, 1), jnp.float32),
        grid=(pl.cdiv(B, bb),),
        in_specs=in_specs,
        out_specs=pl.BlockSpec((bb, 1), lambda b: (b, 0)),
        compiler_params=pltpu.CompilerParams(
            dimension_semantics=("parallel",)),
    )(x, *weights)


def stan_reference(x, tp):
    """Pure-JAX reference mirroring the PyTorch forward exactly."""
    x = x.astype(jnp.float32)
    x_temp = x.mean(axis=2)
    s = jax.nn.relu(x_temp @ tp['wt'].T + tp['bt'])
    s = s.mean(axis=2) * (1.0 - LAMBDA_T)
    attn = jax.nn.softmax(s, axis=1)
    x_attn = (x * attn[:, :, None, None]).sum(axis=1)             # (B, S, F)
    z = x_attn[:, None, :, :]                                     # NCHW, C=1 (D=1 squeezed)
    dn = ('NCHW', 'OIHW', 'NCHW')
    z = lax.conv_general_dilated(z, tp['c1w'][:, :, 0] if tp['c1w'].ndim == 5
                                 else tp['c1w'], (1, 1), ((1, 1), (1, 1)),
                                 dimension_numbers=dn)
    z = jax.nn.relu(z + tp['c1b'][None, :, None, None])
    z = lax.reduce_window(z, -jnp.inf, lax.max, (1, 1, 2, 2), (1, 1, 2, 2), 'VALID')
    z = lax.conv_general_dilated(z, tp['c2w'], (1, 1), ((1, 1), (1, 1)),
                                 dimension_numbers=dn)
    z = jax.nn.relu(z + tp['c2b'][None, :, None, None])
    g = z.max(axis=(2, 3))                                        # (B, C2)
    h = jax.nn.relu(g @ tp['f1w'].T + tp['f1b'])
    return jax.nn.sigmoid(h @ tp['f2w'].T + tp['f2b'])            # (B, 1)


if __name__ == "__main__":
    key = jax.random.PRNGKey(0)
    kx, kparam = jax.random.split(key)
    # batch=2, temporal_slices=8, spatial_slices=16, feature_dim=3
    B, T, S, Fd = 2, 8, 16, 3
    x = jax.random.normal(kx, (B, T, S, Fd), dtype=jnp.float32)

    torch_params = make_torch_style_params(kparam, feature_dim=Fd,
                                           temp_hidden_dim=16, conv_channels=8)
    kernel_params = to_kernel_params(torch_params)

    out = stan_forward(x, kernel_params)
    out = jax.block_until_ready(out)

    ref = stan_reference(x, torch_params)
    np.testing.assert_allclose(np.asarray(out), np.asarray(ref),
                               rtol=2e-4, atol=2e-5)
    print("KERNEL_OK")
</pallas_src>

<mosaic_0001>
module attributes {stable_mosaic.version = 11 : i64} {
  func.func @stan_kernel(%arg0: i32, %arg1: memref<2x8x16x3xf32, #tpu.memory_space<vmem>>, %arg2: memref<3x16xf32, #tpu.memory_space<vmem>>, %arg3: memref<1x16xf32, #tpu.memory_space<vmem>>, %arg4: memref<9x8xf32, #tpu.memory_space<vmem>>, %arg5: memref<1x8xf32, #tpu.memory_space<vmem>>, %arg6: memref<72x16xf32, #tpu.memory_space<vmem>>, %arg7: memref<1x16xf32, #tpu.memory_space<vmem>>, %arg8: memref<16x32xf32, #tpu.memory_space<vmem>>, %arg9: memref<1x32xf32, #tpu.memory_space<vmem>>, %arg10: memref<32x1xf32, #tpu.memory_space<vmem>>, %arg11: memref<1x1xf32, #tpu.memory_space<vmem>>, %arg12: memref<2x1xf32, #tpu.memory_space<vmem>>) attributes {dimension_semantics = [#tpu.dimension_semantics<parallel>], iteration_bounds = array<i64: 1>, scalar_prefetch = 0 : i64, scratch_operands = 0 : i64, tpu.core_type = #tpu.core_type<tc>, window_params = [{transform_indices = @transform_0, window_bounds = array<i64: 2, 8, 16, 3>}, {pipeline_mode = #tpu.pipeline_mode<synchronous>, transform_indices = @transform_1, window_bounds = array<i64: 3, 16>}, {pipeline_mode = #tpu.pipeline_mode<synchronous>, transform_indices = @transform_2, window_bounds = array<i64: 1, 16>}, {pipeline_mode = #tpu.pipeline_mode<synchronous>, transform_indices = @transform_3, window_bounds = array<i64: 9, 8>}, {pipeline_mode = #tpu.pipeline_mode<synchronous>, transform_indices = @transform_4, window_bounds = array<i64: 1, 8>}, {pipeline_mode = #tpu.pipeline_mode<synchronous>, transform_indices = @transform_5, window_bounds = array<i64: 72, 16>}, {pipeline_mode = #tpu.pipeline_mode<synchronous>, transform_indices = @transform_6, window_bounds = array<i64: 1, 16>}, {pipeline_mode = #tpu.pipeline_mode<synchronous>, transform_indices = @transform_7, window_bounds = array<i64: 16, 32>}, {pipeline_mode = #tpu.pipeline_mode<synchronous>, transform_indices = @transform_8, window_bounds = array<i64: 1, 32>}, {pipeline_mode = #tpu.pipeline_mode<synchronous>, transform_indices = @transform_9, window_bounds = array<i64: 32, 1>}, {pipeline_mode = #tpu.pipeline_mode<synchronous>, transform_indices = @transform_10, window_bounds = array<i64: 1, 1>}, {transform_indices = @transform_11, window_bounds = array<i64: 2, 1>}]} {
    %c0 = arith.constant 0 : index
    %c0_0 = arith.constant 0 : index
    %c0_1 = arith.constant 0 : index
    %c0_2 = arith.constant 0 : index
    %0 = vector.load %arg1[%c0, %c0_0, %c0_1, %c0_2] : memref<2x8x16x3xf32, #tpu.memory_space<vmem>>, vector<2x8x16x3xf32>
    %cst = arith.constant dense<0.000000e+00> : vector<2x8x3xf32>
    %1 = vector.multi_reduction <add>, %0, %cst [2] : vector<2x8x16x3xf32> to vector<2x8x3xf32>
    %cst_3 = arith.constant 1.600000e+01 : f32
    %2 = vector.broadcast %cst_3 : f32 to vector<2x8x3xf32>
    %3 = arith.divf %1, %2 : vector<2x8x3xf32>
    %4 = vector.shape_cast %3 : vector<2x8x3xf32> to vector<16x3xf32>
    %c0_4 = arith.constant 0 : index
    %c0_5 = arith.constant 0 : index
    %5 = vector.load %arg2[%c0_4, %c0_5] : memref<3x16xf32, #tpu.memory_space<vmem>>, vector<3x16xf32>
    %cst_6 = arith.constant dense<0.000000e+00> : vector<16x16xf32>
    %6 = tpu.matmul %4, %5, %cst_6 {dimension_numbers = #tpu.dot_dimension_numbers<[1], [0], [0], [1], [0, 0, 1, 1], [], []>} : vector<16x3xf32>, vector<3x16xf32>, vector<16x16xf32> -> vector<16x16xf32>
    %c0_7 = arith.constant 0 : index
    %c0_8 = arith.constant 0 : index
    %7 = vector.load %arg3[%c0_7, %c0_8] : memref<1x16xf32, #tpu.memory_space<vmem>>, vector<1x16xf32>
    %8 = vector.broadcast %7 : vector<1x16xf32> to vector<16x16xf32>
    %9 = arith.addf %6, %8 : vector<16x16xf32>
    %cst_9 = arith.constant 0.000000e+00 : f32
    %10 = vector.broadcast %cst_9 : f32 to vector<16x16xf32>
    %11 = arith.maximumf %9, %10 : vector<16x16xf32>
    %12 = vector.shape_cast %11 : vector<16x16xf32> to vector<2x8x16xf32>
    %cst_10 = arith.constant dense<0.000000e+00> : vector<2x8xf32>
    %13 = vector.multi_reduction <add>, %12, %cst_10 [2] : vector<2x8x16xf32> to vector<2x8xf32>
    %cst_11 = arith.constant 1.600000e+01 : f32
    %14 = vector.broadcast %cst_11 : f32 to vector<2x8xf32>
    %15 = arith.divf %13, %14 : vector<2x8xf32>
    %cst_12 = arith.constant 0.899999976 : f32
    %16 = vector.broadcast %cst_12 : f32 to vector<2x8xf32>
    %17 = arith.mulf %15, %16 : vector<2x8xf32>
    %cst_13 = arith.constant dense<0xFF800000> : vector<2xf32>
    %18 = vector.multi_reduction <maximumf>, %17, %cst_13 [1] : vector<2x8xf32> to vector<2xf32>
    %19 = vector.shape_cast %18 : vector<2xf32> to vector<2x1xf32>
    %20 = vector.broadcast %19 : vector<2x1xf32> to vector<2x8xf32>
    %21 = arith.subf %17, %20 : vector<2x8xf32>
    %22 = math.exp %21 : vector<2x8xf32>
    %cst_14 = arith.constant dense<0.000000e+00> : vector<2xf32>
    %23 = vector.multi_reduction <add>, %22, %cst_14 [1] : vector<2x8xf32> to vector<2xf32>
    %24 = vector.shape_cast %23 : vector<2xf32> to vector<2x1xf32>
    %25 = vector.broadcast %24 : vector<2x1xf32> to vector<2x8xf32>
    %26 = arith.divf %22, %25 : vector<2x8xf32>
    %27 = vector.shape_cast %26 : vector<2x8xf32> to vector<2x8x1x1xf32>
    %28 = vector.broadcast %27 : vector<2x8x1x1xf32> to vector<2x8x16x3xf32>
    %29 = arith.mulf %0, %28 : vector<2x8x16x3xf32>
    %cst_15 = arith.constant dense<0.000000e+00> : vector<2x16x3xf32>
    %30 = vector.multi_reduction <add>, %29, %cst_15 [1] : vector<2x8x16x3xf32> to vector<2x16x3xf32>
    %cst_16 = arith.constant 0.000000e+00 : f32
    %31 = vector.broadcast %cst_16 : f32 to vector<2x1x3xf32>
    %cst_17 = arith.constant 0.000000e+00 : f32
    %32 = vector.broadcast %cst_17 : f32 to vector<2x18x1xf32>
    %33 = tpu.concatenate %31, %30, %31 in 1 : vector<2x1x3xf32>, vector<2x16x3xf32>, vector<2x1x3xf32> -> vector<2x18x3xf32>
    %34 = tpu.concatenate %32, %33, %32 in 2 : vector<2x18x1xf32>, vector<2x18x3xf32>, vector<2x18x1xf32> -> vector<2x18x5xf32>
    %35 = vector.extract_strided_slice %34 {offsets = [0, 0, 0], sizes = [2, 16, 3], strides = [1, 1, 1]} : vector<2x18x5xf32> to vector<2x16x3xf32>
    %36 = vector.shape_cast %35 : vector<2x16x3xf32> to vector<2x16x3x1xf32>
    %37 = vector.extract_strided_slice %34 {offsets = [0, 0, 1], sizes = [2, 16, 3], strides = [1, 1, 1]} : vector<2x18x5xf32> to vector<2x16x3xf32>
    %38 = vector.shape_cast %37 : vector<2x16x3xf32> to vector<2x16x3x1xf32>
    %39 = vector.extract_strided_slice %34 {offsets = [0, 0, 2], sizes = [2, 16, 3], strides = [1, 1, 1]} : vector<2x18x5xf32> to vector<2x16x3xf32>
    %40 = vector.shape_cast %39 : vector<2x16x3xf32> to vector<2x16x3x1xf32>
    %41 = vector.extract_strided_slice %34 {offsets = [0, 1, 0], sizes = [2, 16, 3], strides = [1, 1, 1]} : vector<2x18x5xf32> to vector<2x16x3xf32>
    %42 = vector.shape_cast %41 : vector<2x16x3xf32> to vector<2x16x3x1xf32>
    %43 = vector.extract_strided_slice %34 {offsets = [0, 1, 1], sizes = [2, 16, 3], strides = [1, 1, 1]} : vector<2x18x5xf32> to vector<2x16x3xf32>
    %44 = vector.shape_cast %43 : vector<2x16x3xf32> to vector<2x16x3x1xf32>
    %45 = vector.extract_strided_slice %34 {offsets = [0, 1, 2], sizes = [2, 16, 3], strides = [1, 1, 1]} : vector<2x18x5xf32> to vector<2x16x3xf32>
    %46 = vector.shape_cast %45 : vector<2x16x3xf32> to vector<2x16x3x1xf32>
    %47 = vector.extract_strided_slice %34 {offsets = [0, 2, 0], sizes = [2, 16, 3], strides = [1, 1, 1]} : vector<2x18x5xf32> to vector<2x16x3xf32>
    %48 = vector.shape_cast %47 : vector<2x16x3xf32> to vector<2x16x3x1xf32>
    %49 = vector.extract_strided_slice %34 {offsets = [0, 2, 1], sizes = [2, 16, 3], strides = [1, 1, 1]} : vector<2x18x5xf32> to vector<2x16x3xf32>
    %50 = vector.shape_cast %49 : vector<2x16x3xf32> to vector<2x16x3x1xf32>
    %51 = vector.extract_strided_slice %34 {offsets = [0, 2, 2], sizes = [2, 16, 3], strides = [1, 1, 1]} : vector<2x18x5xf32> to vector<2x16x3xf32>
    %52 = vector.shape_cast %51 : vector<2x16x3xf32> to vector<2x16x3x1xf32>
    %53 = tpu.concatenate %36, %38, %40, %42, %44, %46, %48, %50, %52 in 3 : vector<2x16x3x1xf32>, vector<2x16x3x1xf32>, vector<2x16x3x1xf32>, vector<2x16x3x1xf32>, vector<2x16x3x1xf32>, vector<2x16x3x1xf32>, vector<2x16x3x1xf32>, vector<2x16x3x1xf32>, vector<2x16x3x1xf32> -> vector<2x16x3x9xf32>
    %54 = vector.shape_cast %53 : vector<2x16x3x9xf32> to vector<96x9xf32>
    %c0_18 = arith.constant 0 : index
    %c0_19 = arith.constant 0 : index
    %55 = vector.load %arg4[%c0_18, %c0_19] : memref<9x8xf32, #tpu.memory_space<vmem>>, vector<9x8xf32>
    %cst_20 = arith.constant dense<0.000000e+00> : vector<96x8xf32>
    %56 = tpu.matmul %54, %55, %cst_20 {dimension_numbers = #tpu.dot_dimension_numbers<[1], [0], [0], [1], [0, 0, 1, 1], [], []>} : vector<96x9xf32>, vector<9x8xf32>, vector<96x8xf32> -> vector<96x8xf32>
    %c0_21 = arith.constant 0 : index
    %c0_22 = arith.constant 0 : index
    %57 = vector.load %arg5[%c0_21, %c0_22] : memref<1x8xf32, #tpu.memory_space<vmem>>, vector<1x8xf32>
    %58 = vector.broadcast %57 : vector<1x8xf32> to vector<96x8xf32>
    %59 = arith.addf %56, %58 : vector<96x8xf32>
    %cst_23 = arith.constant 0.000000e+00 : f32
    %60 = vector.broadcast %cst_23 : f32 to vector<96x8xf32>
    %61 = arith.maximumf %59, %60 : vector<96x8xf32>
    %62 = vector.shape_cast %61 : vector<96x8xf32> to vector<2x16x3x8xf32>
    %63 = vector.extract_strided_slice %62 {offsets = [0, 0, 0, 0], sizes = [2, 16, 2, 8], strides = [1, 1, 1, 1]} : vector<2x16x3x8xf32> to vector<2x16x2x8xf32>
    %64 = vector.shape_cast %63 : vector<2x16x2x8xf32> to vector<2x16x1x2x8xf32>
    %cst_24 = arith.constant dense<0xFF800000> : vector<2x16x1x8xf32>
    %65 = vector.multi_reduction <maximumf>, %64, %cst_24 [3] : vector<2x16x1x2x8xf32> to vector<2x16x1x8xf32>
    %66 = vector.shape_cast %65 : vector<2x16x1x8xf32> to vector<2x8x2x1x8xf32>
    %cst_25 = arith.constant dense<0xFF800000> : vector<2x8x1x8xf32>
    %67 = vector.multi_reduction <maximumf>, %66, %cst_25 [2] : vector<2x8x2x1x8xf32> to vector<2x8x1x8xf32>
    %cst_26 = arith.constant 0.000000e+00 : f32
    %68 = vector.broadcast %cst_26 : f32 to vector<2x1x1x8xf32>
    %cst_27 = arith.constant 0.000000e+00 : f32
    %69 = vector.broadcast %cst_27 : f32 to vector<2x10x1x8xf32>
    %70 = tpu.concatenate %68, %67, %68 in 1 : vector<2x1x1x8xf32>, vector<2x8x1x8xf32>, vector<2x1x1x8xf32> -> vector<2x10x1x8xf32>
    %71 = tpu.concatenate %69, %70, %69 in 2 : vector<2x10x1x8xf32>, vector<2x10x1x8xf32>, vector<2x10x1x8xf32> -> vector<2x10x3x8xf32>
    %72 = vector.extract_strided_slice %71 {offsets = [0, 0, 0, 0], sizes = [2, 8, 1, 8], strides = [1, 1, 1, 1]} : vector<2x10x3x8xf32> to vector<2x8x1x8xf32>
    %73 = vector.extract_strided_slice %71 {offsets = [0, 0, 1, 0], sizes = [2, 8, 1, 8], strides = [1, 1, 1, 1]} : vector<2x10x3x8xf32> to vector<2x8x1x8xf32>
    %74 = vector.extract_strided_slice %71 {offsets = [0, 0, 2, 0], sizes = [2, 8, 1, 8], strides = [1, 1, 1, 1]} : vector<2x10x3x8xf32> to vector<2x8x1x8xf32>
    %75 = vector.extract_strided_slice %71 {offsets = [0, 1, 0, 0], sizes = [2, 8, 1, 8], strides = [1, 1, 1, 1]} : vector<2x10x3x8xf32> to vector<2x8x1x8xf32>
    %76 = vector.extract_strided_slice %71 {offsets = [0, 1, 1, 0], sizes = [2, 8, 1, 8], strides = [1, 1, 1, 1]} : vector<2x10x3x8xf32> to vector<2x8x1x8xf32>
    %77 = vector.extract_strided_slice %71 {offsets = [0, 1, 2, 0], sizes = [2, 8, 1, 8], strides = [1, 1, 1, 1]} : vector<2x10x3x8xf32> to vector<2x8x1x8xf32>
    %78 = vector.extract_strided_slice %71 {offsets = [0, 2, 0, 0], sizes = [2, 8, 1, 8], strides = [1, 1, 1, 1]} : vector<2x10x3x8xf32> to vector<2x8x1x8xf32>
    %79 = vector.extract_strided_slice %71 {offsets = [0, 2, 1, 0], sizes = [2, 8, 1, 8], strides = [1, 1, 1, 1]} : vector<2x10x3x8xf32> to vector<2x8x1x8xf32>
    %80 = vector.extract_strided_slice %71 {offsets = [0, 2, 2, 0], sizes = [2, 8, 1, 8], strides = [1, 1, 1, 1]} : vector<2x10x3x8xf32> to vector<2x8x1x8xf32>
    %81 = tpu.concatenate %72, %73, %74, %75, %76, %77, %78, %79, %80 in 3 : vector<2x8x1x8xf32>, vector<2x8x1x8xf32>, vector<2x8x1x8xf32>, vector<2x8x1x8xf32>, vector<2x8x1x8xf32>, vector<2x8x1x8xf32>, vector<2x8x1x8xf32>, vector<2x8x1x8xf32>, vector<2x8x1x8xf32> -> vector<2x8x1x72xf32>
    %82 = vector.shape_cast %81 : vector<2x8x1x72xf32> to vector<16x72xf32>
    %c0_28 = arith.constant 0 : index
    %c0_29 = arith.constant 0 : index
    %83 = vector.load %arg6[%c0_28, %c0_29] : memref<72x16xf32, #tpu.memory_space<vmem>>, vector<72x16xf32>
    %cst_30 = arith.constant dense<0.000000e+00> : vector<16x16xf32>
    %84 = tpu.matmul %82, %83, %cst_30 {dimension_numbers = #tpu.dot_dimension_numbers<[1], [0], [0], [1], [0, 0, 1, 1], [], []>} : vector<16x72xf32>, vector<72x16xf32>, vector<16x16xf32> -> vector<16x16xf32>
    %c0_31 = arith.constant 0 : index
    %c0_32 = arith.constant 0 : index
    %85 = vector.load %arg7[%c0_31, %c0_32] : memref<1x16xf32, #tpu.memory_space<vmem>>, vector<1x16xf32>
    %86 = vector.broadcast %85 : vector<1x16xf32> to vector<16x16xf32>
    %87 = arith.addf %84, %86 : vector<16x16xf32>
    %cst_33 = arith.constant 0.000000e+00 : f32
    %88 = vector.broadcast %cst_33 : f32 to vector<16x16xf32>
    %89 = arith.maximumf %87, %88 : vector<16x16xf32>
    %90 = vector.shape_cast %89 : vector<16x16xf32> to vector<2x8x16xf32>
    %cst_34 = arith.constant dense<0xFF800000> : vector<2x16xf32>
    %91 = vector.multi_reduction <maximumf>, %90, %cst_34 [1] : vector<2x8x16xf32> to vector<2x16xf32>
    %c0_35 = arith.constant 0 : index
    %c0_36 = arith.constant 0 : index
    %92 = vector.load %arg8[%c0_35, %c0_36] : memref<16x32xf32, #tpu.memory_space<vmem>>, vector<16x32xf32>
    %cst_37 = arith.constant dense<0.000000e+00> : vector<2x32xf32>
    %93 = tpu.matmul %91, %92, %cst_37 {dimension_numbers = #tpu.dot_dimension_numbers<[1], [0], [0], [1], [0, 0, 1, 1], [], []>} : vector<2x16xf32>, vector<16x32xf32>, vector<2x32xf32> -> vector<2x32xf32>
    %c0_38 = arith.constant 0 : index
    %c0_39 = arith.constant 0 : index
    %94 = vector.load %arg9[%c0_38, %c0_39] : memref<1x32xf32, #tpu.memory_space<vmem>>, vector<1x32xf32>
    %95 = vector.broadcast %94 : vector<1x32xf32> to vector<2x32xf32>
    %96 = arith.addf %93, %95 : vector<2x32xf32>
    %cst_40 = arith.constant 0.000000e+00 : f32
    %97 = vector.broadcast %cst_40 : f32 to vector<2x32xf32>
    %98 = arith.maximumf %96, %97 : vector<2x32xf32>
    %c0_41 = arith.constant 0 : index
    %c0_42 = arith.constant 0 : index
    %99 = vector.load %arg10[%c0_41, %c0_42] : memref<32x1xf32, #tpu.memory_space<vmem>>, vector<32x1xf32>
    %cst_43 = arith.constant dense<0.000000e+00> : vector<2x1xf32>
    %100 = tpu.matmul %98, %99, %cst_43 {dimension_numbers = #tpu.dot_dimension_numbers<[1], [0], [0], [1], [0, 0, 1, 1], [], []>} : vector<2x32xf32>, vector<32x1xf32>, vector<2x1xf32> -> vector<2x1xf32>
    %c0_44 = arith.constant 0 : index
    %c0_45 = arith.constant 0 : index
    %101 = vector.load %arg11[%c0_44, %c0_45] : memref<1x1xf32, #tpu.memory_space<vmem>>, vector<1x1xf32>
    %102 = vector.broadcast %101 : vector<1x1xf32> to vector<2x1xf32>
    %103 = arith.addf %100, %102 : vector<2x1xf32>
    %cst_46 = arith.constant 0.000000e+00 : f32
    %104 = vector.broadcast %cst_46 : f32 to vector<2x1xf32>
    %105 = arith.subf %104, %103 : vector<2x1xf32>
    %106 = math.exp %105 : vector<2x1xf32>
    %cst_47 = arith.constant 1.000000e+00 : f32
    %107 = vector.broadcast %cst_47 : f32 to vector<2x1xf32>
    %108 = arith.addf %107, %106 : vector<2x1xf32>
    %cst_48 = arith.constant 1.000000e+00 : f32
    %109 = vector.broadcast %cst_48 : f32 to vector<2x1xf32>
    %110 = arith.divf %109, %108 : vector<2x1xf32>
    %c0_49 = arith.constant 0 : index
    %c0_50 = arith.constant 0 : index
    %111 = vector.load %arg12[%c0_49, %c0_50] : memref<2x1xf32, #tpu.memory_space<vmem>>, vector<2x1xf32>
    tpu.vector_store %arg12[%c0_49, %c0_50], %110 {strides = array<i32>} : memref<2x1xf32, #tpu.memory_space<vmem>>, vector<2x1xf32>,
    return
  }
  func.func @transform_0(%arg0: i32) -> (i32, i32, i32, i32) {
    %c0_i32 = arith.constant 0 : i32
    %c0_i32_0 = arith.constant 0 : i32
    %c0_i32_1 = arith.constant 0 : i32
    %c0_i32_2 = arith.constant 0 : i32
    return %arg0, %c0_i32, %c0_i32_0, %c0_i32_1 : i32, i32, i32, i32
  }
  func.func @transform_1(%arg0: i32) -> (i32, i32) {
    %c0_i32 = arith.constant 0 : i32
    %c0_i32_0 = arith.constant 0 : i32
    %c0_i32_1 = arith.constant 0 : i32
    return %c0_i32, %c0_i32_0 : i32, i32
  }
  func.func @transform_2(%arg0: i32) -> (i32, i32) {
    %c0_i32 = arith.constant 0 : i32
    %c0_i32_0 = arith.constant 0 : i32
    %c0_i32_1 = arith.constant 0 : i32
    return %c0_i32, %c0_i32_0 : i32, i32
  }
  func.func @transform_3(%arg0: i32) -> (i32, i32) {
    %c0_i32 = arith.constant 0 : i32
    %c0_i32_0 = arith.constant 0 : i32
    %c0_i32_1 = arith.constant 0 : i32
    return %c0_i32, %c0_i32_0 : i32, i32
  }
  func.func @transform_4(%arg0: i32) -> (i32, i32) {
    %c0_i32 = arith.constant 0 : i32
    %c0_i32_0 = arith.constant 0 : i32
    %c0_i32_1 = arith.constant 0 : i32
    return %c0_i32, %c0_i32_0 : i32, i32
  }
  func.func @transform_5(%arg0: i32) -> (i32, i32) {
    %c0_i32 = arith.constant 0 : i32
    %c0_i32_0 = arith.constant 0 : i32
    %c0_i32_1 = arith.constant 0 : i32
    return %c0_i32, %c0_i32_0 : i32, i32
  }
  func.func @transform_6(%arg0: i32) -> (i32, i32) {
    %c0_i32 = arith.constant 0 : i32
    %c0_i32_0 = arith.constant 0 : i32
    %c0_i32_1 = arith.constant 0 : i32
    return %c0_i32, %c0_i32_0 : i32, i32
  }
  func.func @transform_7(%arg0: i32) -> (i32, i32) {
    %c0_i32 = arith.constant 0 : i32
    %c0_i32_0 = arith.constant 0 : i32
    %c0_i32_1 = arith.constant 0 : i32
    return %c0_i32, %c0_i32_0 : i32, i32
  }
  func.func @transform_8(%arg0: i32) -> (i32, i32) {
    %c0_i32 = arith.constant 0 : i32
    %c0_i32_0 = arith.constant 0 : i32
    %c0_i32_1 = arith.constant 0 : i32
    return %c0_i32, %c0_i32_0 : i32, i32
  }
  func.func @transform_9(%arg0: i32) -> (i32, i32) {
    %c0_i32 = arith.constant 0 : i32
    %c0_i32_0 = arith.constant 0 : i32
    %c0_i32_1 = arith.constant 0 : i32
    return %c0_i32, %c0_i32_0 : i32, i32
  }
  func.func @transform_10(%arg0: i32) -> (i32, i32) {
    %c0_i32 = arith.constant 0 : i32
    %c0_i32_0 = arith.constant 0 : i32
    %c0_i32_1 = arith.constant 0 : i32
    return %c0_i32, %c0_i32_0 : i32, i32
  }
  func.func @transform_11(%arg0: i32) -> (i32, i32) {
    %c0_i32 = arith.constant 0 : i32
    %c0_i32_0 = arith.constant 0 : i32
    return %arg0, %c0_i32 : i32, i32
  }
}

</mosaic_0001>

<bundles_post_ra>
// kernel: tpu_custom_call.1
= control target key start
LH: loop header
LB: loop body
LE: loop exit
PB: predicated region body
PF: predicated region fallthrough
CT: control target
= control target key end

     0   :  { %vm283_vm0 = vcmask 1042432   ;;  %vm72_vm1 = vcmask 23552   ;;  %vm258_vm2 = vcmask 1041409   ;;  %vm260_vm3 = vcmask 1042434   ;;  %s5696_s27 = smov 8   ;;  %s5697_s28 = smov 56   ;;  %s7929_s1 = inlined_call_operand.vmem [shape: f32[3,16], index: 1, kind: input, shape index: {}]   ;;  %s7930_s0 = inlined_call_operand.vmem [shape: f32[2,8,16,3], index: 0, kind: input, shape index: {}]   ;;  %s7931_s2 = inlined_call_operand.vmem [shape: f32[1,16], index: 2, kind: input, shape index: {}]   ;;  %s7932_s3 = inlined_call_operand.vmem [shape: f32[9,8], index: 3, kind: input, shape index: {}]   ;;  %s7933_s4 = inlined_call_operand.vmem [shape: f32[1,8], index: 4, kind: input, shape index: {}]   ;;  %s7934_s5 = inlined_call_operand.vmem [shape: f32[72,16], index: 5, kind: input, shape index: {}]   ;;  %s7935_s7 = inlined_call_operand.vmem [shape: f32[16,32], index: 7, kind: input, shape index: {}]   ;;  %s7936_s9 = inlined_call_operand.vmem [shape: f32[32,1], index: 9, kind: input, shape index: {}]   ;;  %s7937_s6 = inlined_call_operand.vmem [shape: f32[1,16], index: 6, kind: input, shape index: {}]   ;;  %s7938_s10 = inlined_call_operand.<no memory space> [shape: f32[1,1], index: 10, kind: input, shape index: {}]   ;;  %s7939_s8 = inlined_call_operand.vmem [shape: f32[1,32], index: 8, kind: input, shape index: {}]   ;;  %s7940_s11 = inlined_call_operand.vmem [shape: f32[2,1], index: 11, kind: output, shape index: {}]  }
   0x1   :  { %v234_v0 = vld [vmem:[%s7929_s1] sm:$0x7]  ;;  %v5776_v2 = vld [vmem:[%s7930_s0 + $0x8] sm:$0xff]  ;;  %v5781_v3 = vld [vmem:[%s7930_s0 + $0x10] sm:$0xff]  ;;  %vm262_vm4 = vcmask 1043459   ;;  %vm264_vm5 = vcmask 1044484  }
   0x2   :  { %v5771_v1 = vld [vmem:[%s7930_s0] sm:$0xff]  ;;  %5564 = vmatprep.subr.msk.mxu0 %vm283_vm0, %v234_v0  ;;  %v5786_v4 = vld [vmem:[%s7930_s0 + $0x18] sm:$0xff]  ;;  %v74_v7 = vsel %vm72_vm1, %v5776_v2, 0.0  ;;  %v5800_v8 = vld [vmem:[%s7930_s0 + $0x28] sm:$0xff]  ;;  %v82_v12 = vsel %vm72_vm1, %v5781_v3, 0.0  ;;  %vm7943_vm6 = vcmask 1045509  }
   0x3   :  { %v5791_v5 = vld [vmem:[%s7930_s0 + $0x20] sm:$0xff]  ;;  %v73_v6 = vsel %vm72_vm1, %v5771_v1, 0.0  ;;  %5565 = vmatpush3.msk.msra.mxu0 %vm283_vm0, %v234_v0  ;;  %v5805_v9 = vld [vmem:[%s7930_s0 + $0x30] sm:$0xff]  ;;  %v5810_v10 = vld [vmem:[%s7930_s0 + $0x38] sm:$0xff]  ;;  %v83_v13 = vsel %vm72_vm1, %v5786_v4, 0.0  ;;  %v92_v19 = vsel %vm72_vm1, %v5800_v8, 0.0 }
   0x4   :  { %v75_v11 = vadd.f32 %v74_v7, %v73_v6  ;;  %v91_v14 = vsel %vm72_vm1, %v5791_v5, 0.0  ;;  %v5821_v15 = vld [vmem:[%s7930_s0 + $0x40] sm:$0xff]  ;;  %v5826_v16 = vld [vmem:[%s7930_s0 + $0x48] sm:$0xff]  ;;  %v5831_v17 = vld [vmem:[%s7930_s0 + $0x50] sm:$0xff]  ;;  %v84_v18 = vadd.f32 %v83_v13, %v82_v12  ;;  %v100_v20 = vsel %vm72_vm1, %v5805_v9, 0.0  ;;  %s5698_s29 = smov 16  }
   0x5   :  { %v101_v21 = vsel %vm72_vm1, %v5810_v10, 0.0  ;;  %v5842_v22 = vld [vmem:[%s7930_s0 + $0x58] sm:$0xff]  ;;  %v5847_v23 = vld [vmem:[%s7930_s0 + $0x60] sm:$0xff]  ;;  %v5852_v24 = vld [vmem:[%s7930_s0 + $0x68] sm:$0xff]  ;;  %v93_v26 = vadd.f32 %v92_v19, %v91_v14  ;;  %v109_v28 = vsel %vm72_vm1, %v5821_v15, 0.0  ;;  %v110_v30 = vsel %vm72_vm1, %v5826_v16, 0.0 }
   0x6   :  { %v76_v25 = vrot.slane %v75_v11, 4  ;;  %v102_v27 = vadd.f32 %v101_v21, %v100_v20  ;;  %v85_v29 = vrot.slane %v84_v18, 4  ;;  %v118_v31 = vsel %vm72_vm1, %v5831_v17, 0.0  ;;  %v5865_v33 = vld [vmem:[%s7930_s0 + $0x70] sm:$0xff]  ;;  %v5874_v42 = vld [vmem:[%s7930_s0 + $0x78] sm:$0xff]  ;;  %s5700_s13 = smov 40  }
   0x7   :  { %v119_v32 = vsel %vm72_vm1, %v5842_v22, 0.0  ;;  %v94_v35 = vrot.slane %v93_v26, 4  ;;  %v111_v37 = vadd.f32 %v110_v30, %v109_v28  ;;  %v127_v40 = vsel %vm72_vm1, %v5847_v23, 0.0  ;;  %s5701_s14 = smov 32   ;;  %s5702_s15 = smov 64  }
   0x8   :  { %v77_v34 = vadd.f32 %v76_v25, %v75_v11  ;;  %v103_v36 = vrot.slane %v102_v27, 4  ;;  %v86_v38 = vadd.f32 %v85_v29, %v84_v18  ;;  %v120_v39 = vadd.f32 %v119_v32, %v118_v31 }
   0x9   :  { %v128_v41 = vsel %vm72_vm1, %v5852_v24, 0.0  ;;  %v95_v44 = vadd.f32 %v94_v35, %v93_v26  ;;  %v112_v46 = vrot.slane %v111_v37, 4  ;;  %v136_v50 = vsel %vm72_vm1, %v5865_v33, 0.0 }
   0xa   :  { %v78_v43 = vrot.slane %v77_v34, 2  ;;  %v104_v45 = vadd.f32 %v103_v36, %v102_v27  ;;  %v87_v47 = vrot.slane %v86_v38, 2  ;;  %v121_v48 = vrot.slane %v120_v39, 4 }
   0xb   :  { %v129_v49 = vadd.f32 %v128_v41, %v127_v40  ;;  %v96_v52 = vrot.slane %v95_v44, 2  ;;  %v113_v54 = vadd.f32 %v112_v46, %v111_v37  ;;  %v137_v58 = vsel %vm72_vm1, %v5874_v42, 0.0 }
   0xc   :  { %v79_v51 = vadd.f32 %v78_v43, %v77_v34  ;;  %v105_v53 = vrot.slane %v104_v45, 2  ;;  %v88_v55 = vadd.f32 %v87_v47, %v86_v38  ;;  %v122_v56 = vadd.f32 %v121_v48, %v120_v39  ;;  %v5883_v34 = vld [vmem:[%s7930_s0 + $0x80] sm:$0xff]  ;;  %v5889_v43 = vld [vmem:[%s7930_s0 + $0x88] sm:$0xff] }
   0xd   :  { %v130_v57 = vrot.slane %v129_v49, 4  ;;  %v97_v60 = vadd.f32 %v96_v52, %v95_v44  ;;  %v114_v62 = vrot.slane %v113_v54, 2  ;;  %v138_v7 = vadd.f32 %v137_v58, %v136_v50  ;;  %v5894_v44 = vld [vmem:[%s7930_s0 + $0x90] sm:$0xff] }
   0xe   :  { %v80_v59 = vrot.slane %v79_v51, 1  ;;  %v106_v61 = vadd.f32 %v105_v53, %v104_v45  ;;  %v89_v63 = vrot.slane %v88_v55, 1  ;;  %v123_v0 = vrot.slane %v122_v56, 2  ;;  %v5899_v45 = vld [vmem:[%s7930_s0 + $0x98] sm:$0xff]  ;;  %v5908_v53 = vld [vmem:[%s7930_s0 + $0xa0] sm:$0xff] }
   0xf   :  { %v131_v6 = vadd.f32 %v130_v57, %v129_v49  ;;  %v98_v12 = vrot.slane %v97_v60, 1  ;;  %v115_v14 = vadd.f32 %v114_v62, %v113_v54  ;;  %v139_v21 = vrot.slane %v138_v7, 4  ;;  %v5913_v54 = vld [vmem:[%s7930_s0 + $0xa8] sm:$0xff] }
  0x10   :  { %v81_v11 = vadd.f32 %v80_v59, %v79_v51  ;;  %v107_v13 = vrot.slane %v106_v61, 1  ;;  %v90_v18 = vadd.f32 %v89_v63, %v88_v55  ;;  %v124_v19 = vadd.f32 %v123_v0, %v122_v56  ;;  %v5918_v55 = vld [vmem:[%s7930_s0 + $0xb0] sm:$0xff]  ;;  %v5931_v63 = vld [vmem:[%s7930_s0 + $0xb8] sm:$0xff]  ;;  %v5936_v0 = vld [vmem:[%s7930_s0 + $0xc0] sm:$0xff] }
  0x11   :  { %v132_v20 = vrot.slane %v131_v6, 2  ;;  %v99_v25 = vadd.f32 %v98_v12, %v97_v60  ;;  %v116_v27 = vrot.slane %v115_v14, 1  ;;  %v140_v31 = vadd.f32 %v139_v21, %v138_v7  ;;  %v5958_v21 = vld [vmem:[%s7930_s0 + $0xd8] sm:$0xff] }
  0x12   :  { %v108_v26 = vadd.f32 %v107_v13, %v106_v61  ;;  %v218_v28 = vmul.f32 0.0625, %v81_v11  ;;  %v125_v29 = vrot.slane %v124_v19, 1  ;;  %v219_v32 = vmul.f32 0.0625, %v90_v18 }
  0x13   :  { %v133_v30 = vadd.f32 %v132_v20, %v131_v6  ;;  %v117_v35 = vadd.f32 %v116_v27, %v115_v14  ;;  %v220_v36 = vmul.f32 0.0625, %v99_v25  ;;  %vm7942_vm7 = vcmask 1046534   ;;  %v5941_v6 = vld [vmem:[%s7930_s0 + $0xc8] sm:$0xff]  ;;  %v5953_v20 = vld [vmem:[%s7930_s0 + $0xd0] sm:$0xff] }
  0x14   :  { %v221_v37 = vmul.f32 0.0625, %v108_v26  ;;  %v126_v38 = vadd.f32 %v125_v29, %v124_v19  ;;  %v141_v40 = vrot.slane %v140_v31, 2  ;;  %v259_v41 = vsel %vm258_vm2, %v219_v32, %v218_v28  ;;  %v5969_v32 = vld [vmem:[%s7930_s0 + $0xe0] sm:$0xff] }
  0x15   :  { %v134_v39 = vrot.slane %v133_v30, 1  ;;  %v222_v46 = vmul.f32 0.0625, %v117_v35  ;;  %v261_v47 = vsel %vm260_vm3, %v220_v36, %v259_v41  ;;  %vm7941_vm8 = vcmask 1047559  }
  0x16   :  { %v145_v48 = vsel %vm72_vm1, %v5883_v34, 0.0  ;;  %v142_v50 = vadd.f32 %v141_v40, %v140_v31  ;;  %v223_v51 = vmul.f32 0.0625, %v126_v38  ;;  %v263_v52 = vsel %vm262_vm4, %v221_v37, %v261_v47  ;;  %v5974_v38 = vld [vmem:[%s7930_s0 + $0xe8] sm:$0xff] }
  0x17   :  { %v135_v49 = vadd.f32 %v134_v39, %v133_v30  ;;  %v265_v56 = vsel %vm264_vm5, %v222_v46, %v263_v52  ;;  %v146_v57 = vsel %vm72_vm1, %v5889_v43, 0.0  ;;  %v154_v58 = vsel %vm72_vm1, %v5894_v44, 0.0 }
  0x18   :  { %v155_v59 = vsel %vm72_vm1, %v5899_v45, 0.0  ;;  %v143_v60 = vrot.slane %v142_v50, 1  ;;  %v267_v62 = vsel %vm7943_vm6, %v223_v51, %v265_v56  ;;  %v147_v7 = vadd.f32 %v146_v57, %v145_v48  ;;  %v5985_v51 = vld [vmem:[%s7930_s0 + $0xf0] sm:$0xff] }
  0x19   :  { %v224_v61 = vmul.f32 0.0625, %v135_v49  ;;  %v156_v11 = vadd.f32 %v155_v59, %v154_v58  ;;  %v163_v12 = vsel %vm72_vm1, %v5908_v53, 0.0  ;;  %v164_v13 = vsel %vm72_vm1, %v5913_v54, 0.0 }
  0x1a   :  { %v172_v14 = vsel %vm72_vm1, %v5918_v55, 0.0  ;;  %v144_v18 = vadd.f32 %v143_v60, %v142_v50  ;;  %v148_v25 = vrot.slane %v147_v7, 4  ;;  %v165_v26 = vadd.f32 %v164_v13, %v163_v12 }
  0x1b   :  { %v269_v19 = vsel %vm7942_vm7, %v224_v61, %v267_v62  ;;  %v157_v27 = vrot.slane %v156_v11, 4  ;;  %v173_v28 = vsel %vm72_vm1, %v5931_v63, 0.0  ;;  %v181_v29 = vsel %vm72_vm1, %v5936_v0, 0.0 }
  0x1c   :  { %v182_v30 = vsel %vm72_vm1, %v5941_v6, 0.0  ;;  %v225_v31 = vmul.f32 0.0625, %v144_v18  ;;  %v149_v35 = vadd.f32 %v148_v25, %v147_v7  ;;  %v166_v36 = vrot.slane %v165_v26, 4  ;;  %v5994_v7 = vld [vmem:[%s7930_s0 + $0xf8] sm:$0xff] }
  0x1d   :  { %v174_v37 = vadd.f32 %v173_v28, %v172_v14  ;;  %v158_v39 = vadd.f32 %v157_v27, %v156_v11  ;;  %v183_v40 = vadd.f32 %v182_v30, %v181_v29  ;;  %v190_v41 = vsel %vm72_vm1, %v5953_v20, 0.0 }
  0x1e   :  { %v191_v46 = vsel %vm72_vm1, %v5958_v21, 0.0  ;;  %v271_v47 = vsel %vm7941_vm8, %v225_v31, %v269_v19  ;;  %v150_v48 = vrot.slane %v149_v35, 2  ;;  %v167_v49 = vadd.f32 %v166_v36, %v165_v26 }
  0x1f   :  { %v175_v50 = vrot.slane %v174_v37, 4  ;;  %5566 = vmatprep.mubr.msk.f32.mxu0 %vm72_vm1, %v271_v47  ;;  %v159_v52 = vrot.slane %v158_v39, 2  ;;  %v184_v56 = vrot.slane %v183_v40, 4  ;;  %v192_v57 = vadd.f32 %v191_v46, %v190_v41 }
  0x20   :  { %v199_v58 = vsel %vm72_vm1, %v5969_v32, 0.0  ;;  %v151_v59 = vadd.f32 %v150_v48, %v149_v35  ;;  %v168_v60 = vrot.slane %v167_v49, 2  ;;  %v200_v62 = vsel %vm72_vm1, %v5974_v38, 0.0 }
  0x21   :  { %v176_v61 = vadd.f32 %v175_v50, %v174_v37  ;;  %v160_v11 = vadd.f32 %v159_v52, %v158_v39  ;;  %v185_v12 = vadd.f32 %v184_v56, %v183_v40  ;;  %v193_v13 = vrot.slane %v192_v57, 4 }
  0x22   :  { %v201_v14 = vadd.f32 %v200_v62, %v199_v58  ;;  %v152_v18 = vrot.slane %v151_v59, 1  ;;  %v169_v19 = vadd.f32 %v168_v60, %v167_v49  ;;  %v208_v26 = vsel %vm72_vm1, %v5985_v51, 0.0 }
  0x23   :  { %v177_v25 = vrot.slane %v176_v61, 2  ;;  %v161_v27 = vrot.slane %v160_v11, 1  ;;  %v186_v28 = vrot.slane %v185_v12, 2  ;;  %v194_v29 = vadd.f32 %v193_v13, %v192_v57 }
  0x24   :  { %v202_v30 = vrot.slane %v201_v14, 4  ;;  %v153_v31 = vadd.f32 %v152_v18, %v151_v59  ;;  %v170_v35 = vrot.slane %v169_v19, 1  ;;  %v209_v37 = vsel %vm72_vm1, %v5994_v7, 0.0 }
  0x25   :  { %v178_v36 = vadd.f32 %v177_v25, %v176_v61  ;;  %v162_v39 = vadd.f32 %v161_v27, %v160_v11  ;;  %v187_v40 = vadd.f32 %v186_v28, %v185_v12  ;;  %v195_v41 = vrot.slane %v194_v29, 2 }
  0x26   :  { %v203_v46 = vadd.f32 %v202_v30, %v201_v14  ;;  %v171_v47 = vadd.f32 %v170_v35, %v169_v19  ;;  %v210_v49 = vadd.f32 %v209_v37, %v208_v26  ;;  %v226_v50 = vmul.f32 0.0625, %v153_v31 }
  0x27   :  { %v179_v48 = vrot.slane %v178_v36, 1  ;;  %v188_v52 = vrot.slane %v187_v40, 1  ;;  %v196_v56 = vadd.f32 %v195_v41, %v194_v29  ;;  %v227_v60 = vmul.f32 0.0625, %v162_v39 }
  0x28   :  { %v204_v58 = vrot.slane %v203_v46, 2  ;;  %v211_v62 = vrot.slane %v210_v49, 4  ;;  %v228_v59 = vmul.f32 0.0625, %v171_v47  ;;  %vm364_vm9 = vcmask 130048  }
  0x29   :  { %v180_v57 = vadd.f32 %v179_v48, %v178_v36  ;;  %v189_v13 = vadd.f32 %v188_v52, %v187_v40  ;;  %v197_v61 = vrot.slane %v196_v56, 1  ;;  %v272_v25 = vsel %vm258_vm2, %v227_v60, %v226_v50 }
  0x2a   :  { %v205_v18 = vadd.f32 %v204_v58, %v203_v46  ;;  %v212_v11 = vadd.f32 %v211_v62, %v210_v49  ;;  %v273_v14 = vsel %vm260_vm3, %v228_v59, %v272_v25  ;;  %v5495_v49 = vld [vmem:[%s7931_s2] ss:$0 sm:$0xff]  ;;  %vm389_vm10 = vcmask 58368   ;;  %s5692_s2 = smov 1  }
  0x2b   :  { %v229_v12 = vmul.f32 0.0625, %v180_v57  ;;  %v198_v19 = vadd.f32 %v197_v61, %v196_v56  ;;  %v230_v26 = vmul.f32 0.0625, %v189_v13  ;;  %v377_v13 = vlaneseq }
  0x2c   :  { %v206_v27 = vrot.slane %v205_v18, 1  ;;  %v213_v28 = vrot.slane %v212_v11, 2  ;;  %vm770_vm11 = vcmask 1040384   ;;  %vm807_vm12 = vcmask 7168  }
  0x2d   :  { %v274_v29 = vsel %vm262_vm4, %v229_v12, %v273_v14  ;;  %v231_v31 = vmul.f32 0.0625, %v198_v19  ;;  %v6013_v25 = vshrl.u32 %v377_v13, 7  ;;  %vm814_vm13 = vcmask 31744  }
  0x2e   :  { %v207_v30 = vadd.f32 %v206_v27, %v205_v18  ;;  %v275_v35 = vsel %vm264_vm5, %v230_v26, %v274_v29  ;;  %v214_v36 = vadd.f32 %v213_v28, %v212_v11  ;;  %v378_v18 = vand.u32 127, %v377_v13 }
  0x2f   :  { %v276_v40 = vsel %vm7943_vm6, %v231_v31, %v275_v35  ;;  %v5690_v35 = vmov 0   ;;  %vm5693_vm14 = vmmov 1   ;;  %vm1393_vm0 = vcmask 15360  }
  0x30   :  { %v232_v37 = vmul.f32 0.0625, %v207_v30  ;;  %v215_v39 = vrot.slane %v214_v36, 1  ;;  %v381_v14 = vsub.s32 %v378_v18, %v6013_v25  ;;  %5677 = vset.pattern.permute.xlu0 %v5690_v35  ;;  %5676 = vset.pattern.permute.xlu1 %v5690_v35  ;;  %vm5631_vm15 = vmpackc.low %vm770_vm11, %vm5693_vm14  ;;  %vm1490_vm14 = vcmask 39936  }
  0x31   :  { %vm2987_vm6 = vcmask 72704  }
  0x32   :  { %v216_v41 = vadd.f32 %v215_v39, %v214_v36  ;;  %v277_v46 = vsel %vm7942_vm7, %v232_v37, %v276_v40  ;;  %v6019_v36 = vsub.s32 0, %v6013_v25  ;;  %v6022_v37 = vsub.s32 1, %v6013_v25 }
  0x33   :  { %vm1589_vm7 = vcmask 64512  }
  0x34   :  { %v233_v47 = vmul.f32 0.0625, %v216_v41 }
  0x36   :  { %v278_v48 = vsel %vm7941_vm8, %v233_v47, %v277_v46  ;;  %vm1556_vm8 = vcmask 56320  }
  0x37   :  { %5567 = vmatmul.mubr.msk.f32.vlgmr.msra.gmra.mrb[0].mxu0 %vm72_vm1, %v278_v48 }
 0x10a   :  { %v5568_v50 = vpop.f32.mrb[0].mxu0 }
 0x10b   :  { %v353_v52 = vpop.f32.mrb[1].mxu0  ;;  %v359_v56 = vadd.f32 %v5568_v50, %v5495_v49 }
 0x10c   :  { %v354_v58 = vadd.f32 %v5495_v49, %v353_v52 }
 0x10d   :  { %v363_v57 = vmax.f32 %v359_v56, 0.0 }
 0x10e   :  { %v362_v60 = vmax.f32 %v354_v58, 0.0 }
 0x10f   :  { %v368_v59 = vsel %vm364_vm9, %v363_v57, 0.0 }
 0x110   :  { %v365_v62 = vsel %vm364_vm9, %v362_v60, 0.0 }
 0x111   :  { %366 = vadd.xlane.f32.xlu0 %v365_v62 }
 0x115   :  { %369 = vadd.xlane.f32.xlu0 %v368_v59 }
 0x19e   :  { %v367_v61 = vpop.xlane.xlu0 %366 }
 0x19f   :  { %v371_v11 = vmul.f32 0.0625, %v367_v61 }
 0x1a1   :  { %v373_v19 = vmul.f32 0.9, %v371_v11  ;;  %v5691_v11 = vmov 1966171168  }
 0x1a2   :  { %v370_v12 = vpop.xlane.xlu0 %369 }
 0x1a3   :  { %v372_v27 = vmul.f32 0.0625, %v370_v12  ;;  %v382_v28 = vrot.slane %v373_v19, %v381_v14  ;;  %v450_v12 = vunpack.c.l.s4 %v5691_v11 }
 0x1a5   :  { %v374_v26 = vmul.f32 0.9, %v372_v27 }
 0x1a7   :  { %v386_v29 = vrot.slane %v374_v26, %v381_v14 }
 0x1a9   :  { %v387_v30 = vsel %vm258_vm2, %v386_v29, %v382_v28 }
 0x1aa   :  { %v390_v31 = vsel %vm389_vm10, %v387_v30, -inf }
 0x1ab   :  { %391 = vmax.xlane.f32.xlu1 %v390_v31 }
 0x238   :  { %v392_v39 = vpop.xlane.xlu1 %391 }
 0x239   :  { %v397_v40 = vrot.slane %v392_v39, %v6019_v36  ;;  %v401_v41 = vrot.slane %v392_v39, %v6022_v37 }
 0x23b   :  { %v404_v46 = vsub.f32 %v373_v19, %v397_v40  ;;  %v405_v47 = vsub.f32 %v374_v26, %v401_v41  ;;  %v451_v19 = vunpack.c.0.s8 %v450_v12 }
 0x23d   :  { %v406_v48 = vmul.f32 1.442695, %v404_v46  ;;  %v408_v49 = vmul.f32 1.442695, %v405_v47  ;;  %v6031_v27 = vsub.s32 %v451_v19, %v6013_v25 }
 0x23f   :  { %5678 = vpow2.f32 %v406_v48 }
 0x240   :  { %5680 = vpow2.f32 %v408_v49 }
 0x249   :  { %v5679_v50 = vpop.eup %5678 }
 0x24a   :  { %v5681_v52 = vpop.eup %5680  ;;  %413 = vperm.xlu1 %5676, %v5679_v50  }
 0x24b   :  { %416 = vperm.xlu0 %5677, %v5681_v52  }
 0x2c9   :  { %v414_v56 = vpop.permute.xlu1 %413 }
 0x2ca   :  { %v417_v58 = vpop.permute.xlu0 %416  ;;  %v421_v60 = vrot.slane %v414_v56, %v381_v14 }
 0x2cb   :  { %v425_v57 = vrot.slane %v417_v58, %v381_v14 }
 0x2cd   :  { %v426_v62 = vsel %vm258_vm2, %v425_v57, %v421_v60 }
 0x2ce   :  { %v428_v59 = vsel %vm389_vm10, %v426_v62, 0.0 }
 0x2cf   :  { %429 = vadd.xlane.f32.xlu1 %v428_v59 }
 0x35c   :  { %v430_v13 = vpop.xlane.xlu1 %429 }
 0x35d   :  { %v435_v61 = vrot.slane %v430_v13, %v6019_v36  ;;  %v439_v18 = vrot.slane %v430_v13, %v6022_v37 }
 0x35f   :  { %5682 = vrcp.f32 %v435_v61 }
 0x360   :  { %5684 = vrcp.f32 %v439_v18 }
 0x369   :  { %v5683_v26 = vpop.eup %5682 }
 0x36a   :  { %v5685_v14 = vpop.eup %5684  ;;  %v443_v28 = vmul.f32 %v5683_v26, %v5679_v50 }
 0x36b   :  { %v445_v29 = vmul.f32 %v5685_v14, %v5681_v52 }
 0x36c   :  { %v455_v30 = vrot.slane %v443_v28, %v6031_v27  ;;  %v448_v39 = vcombine.high %v443_v28, %v443_v28 }
 0x36d   :  { %v504_v31 = vrot.slane %v445_v29, %v6031_v27  ;;  %v497_v40 = vcombine.high %v445_v29, %v445_v29 }
 0x36e   :  { %v471_v35 = vrot.slane %v455_v30, %v6031_v27  ;;  %v463_v49 = vcombine.high %v455_v30, %v455_v30  ;;  %v462_v52 = vrot.slane %v448_v39, %v6031_v27 }
 0x36f   :  { %v512_v41 = vcombine.high %v504_v31, %v504_v31  ;;  %v520_v48 = vrot.slane %v504_v31, %v6031_v27  ;;  %v511_v58 = vrot.slane %v497_v40, %v6031_v27 }
 0x370   :  { %v549_v46 = vrot.slane %v471_v35, %v6019_v36  ;;  %v493_v47 = vcombine.high %v471_v35, %v471_v35  ;;  %v485_v57 = vrot.slane %v463_v49, %v6031_v27  ;;  %v464_v61 = vcombine.high %v462_v52, %v462_v52 }
 0x371   :  { %v534_v50 = vrot.slane %v512_v41, %v6031_v27  ;;  %v581_v60 = vrot.slane %v520_v48, %v6019_v36  ;;  %v513_v13 = vcombine.high %v511_v58, %v511_v58  ;;  %v478_v11 = vrot.slane %v462_v52, %v6031_v27 }
 0x372   :  { %611 = vperm.xlu0 %5677, %v549_v46   ;;  %v557_v56 = vrot.slane %v493_v47, %v6019_v36  ;;  %v553_v18 = vrot.slane %v485_v57, %v6019_v36  ;;  %v492_v26 = vrot.slane %v464_v61, %v6031_v27  ;;  %v542_v28 = vcombine.high %v520_v48, %v520_v48 }
 0x373   :  { %v585_v62 = vrot.slane %v534_v50, %v6019_v36  ;;  %v544_v59 = vcombine.high %v534_v50, %v534_v50  ;;  %v541_v19 = vrot.slane %v513_v13, %v6031_v27  ;;  %v565_v14 = vrot.slane %v478_v11, %v6019_v36 }
 0x374   :  { %619 = vperm.xlu1 %5676, %v557_v56   ;;  %v496_v30 = vcombine.high %v492_v26, %v492_v26  ;;  %v589_v31 = vrot.slane %v542_v28, %v6019_v36  ;;  %v527_v35 = vrot.slane %v511_v58, %v6031_v27  ;;  %v495_v46 = vcombine.high %v485_v57, %v485_v57 }
 0x375   :  { %v593_v12 = vrot.slane %v544_v59, %v6019_v36  ;;  %v601_v29 = vrot.slane %v541_v19, %v6019_v36  ;;  %v545_v40 = vcombine.high %v541_v19, %v541_v19  ;;  %v569_v49 = vrot.slane %v492_v26, %v6019_v36 }
 0x376   :  { %643 = vperm.xlu0 %5677, %v581_v60   ;;  %v577_v39 = vrot.slane %v496_v30, %v6019_v36  ;;  %v597_v41 = vrot.slane %v527_v35, %v6019_v36  ;;  %v561_v48 = vrot.slane %v495_v46, %v6019_v36  ;;  %v494_v56 = vcombine.high %v478_v11, %v478_v11 }
 0x377   :  { %v609_v47 = vrot.slane %v545_v40, %v6019_v36  ;;  %v543_v52 = vcombine.high %v527_v35, %v527_v35 }
 0x378   :  { %647 = vperm.xlu1 %5676, %v585_v62   ;;  %v573_v50 = vrot.slane %v494_v56, %v6019_v36 }
 0x379   :  { %v605_v58 = vrot.slane %v543_v52, %v6019_v36 }
 0x37a   :  { %615 = vperm.xlu0 %5677, %v553_v18  }
 0x37c   :  { %655 = vperm.xlu1 %5676, %v593_v12  }
 0x37e   :  { %627 = vperm.xlu0 %5677, %v565_v14  }
 0x380   :  { %663 = vperm.xlu1 %5676, %v601_v29  }
 0x382   :  { %651 = vperm.xlu0 %5677, %v589_v31  }
 0x384   :  { %639 = vperm.xlu1 %5676, %v577_v39  }
 0x386   :  { %659 = vperm.xlu0 %5677, %v597_v41  }
 0x388   :  { %671 = vperm.xlu1 %5676, %v609_v47  }
 0x38a   :  { %623 = vperm.xlu0 %5677, %v561_v48  }
 0x38e   :  { %631 = vperm.xlu0 %5677, %v569_v49  }
 0x392   :  { %635 = vperm.xlu0 %5677, %v573_v50  }
 0x396   :  { %667 = vperm.xlu0 %5677, %v605_v58  }
 0x3f1   :  { %v612_v60 = vpop.permute.xlu0 %611 }
 0x3f2   :  { %v674_v11 = vmul.f32 %v612_v60, %v5771_v1  ;;  %v675_v19 = vmul.f32 %v612_v60, %v5776_v2 }
 0x3f3   :  { %v620_v57 = vpop.permute.xlu1 %619 }
 0x3f4   :  { %v678_v30 = vmul.f32 %v620_v57, %v5791_v5  ;;  %v679_v31 = vmul.f32 %v620_v57, %v5800_v8 }
 0x3f5   :  { %v644_v62 = vpop.permute.xlu0 %643 }
 0x3f6   :  { %v690_v35 = vmul.f32 %v644_v62, %v5883_v34  ;;  %v709_v41 = vsel %vm72_vm1, %v678_v30, 0.0  ;;  %v724_v46 = vsel %vm72_vm1, %v679_v31, 0.0 }
 0x3f7   :  { %v648_v13 = vpop.permute.xlu1 %647 }
 0x3f8   :  { %v692_v28 = vmul.f32 %v648_v13, %v5894_v44  ;;  %v693_v29 = vmul.f32 %v648_v13, %v5899_v45  ;;  %v706_v44 = vsel %vm72_vm1, %v674_v11, 0.0  ;;  %v721_v45 = vsel %vm72_vm1, %v675_v19, 0.0 }
 0x3f9   :  { %v616_v59 = vpop.permute.xlu0 %615  ;;  %v736_v48 = vsel %vm72_vm1, %v690_v35, 0.0 }
 0x3fa   :  { %v676_v18 = vmul.f32 %v616_v59, %v5781_v3  ;;  %v677_v12 = vmul.f32 %v616_v59, %v5786_v4  ;;  %v691_v3 = vmul.f32 %v644_v62, %v5889_v43  ;;  %v737_v5 = vsel %vm72_vm1, %v692_v28, 0.0 }
 0x3fb   :  { %v656_v26 = vpop.permute.xlu1 %655  ;;  %v752_v8 = vsel %vm72_vm1, %v693_v29, 0.0  ;;  %v738_v52 = vadd.f32 %v737_v5, %v736_v48 }
 0x3fc   :  { %v707_v4 = vsel %vm72_vm1, %v676_v18, 0.0  ;;  %v722_v1 = vsel %vm72_vm1, %v677_v12, 0.0  ;;  %v696_v34 = vmul.f32 %v656_v26, %v5918_v55  ;;  %v697_v43 = vmul.f32 %v656_v26, %v5931_v63 }
 0x3fd   :  { %v628_v61 = vpop.permute.xlu0 %627  ;;  %v723_v47 = vadd.f32 %v722_v1, %v721_v45  ;;  %v751_v49 = vsel %vm72_vm1, %v691_v3, 0.0 }
 0x3fe   :  { %v753_v58 = vadd.f32 %v752_v8, %v751_v49  ;;  %v682_v55 = vmul.f32 %v628_v61, %v5821_v15  ;;  %v683_v63 = vmul.f32 %v628_v61, %v5826_v16  ;;  %v741_v57 = vsel %vm72_vm1, %v696_v34, 0.0 }
 0x3ff   :  { %v756_v62 = vsel %vm72_vm1, %v697_v43, 0.0  ;;  %v725_v19 = vadd.f32 %v724_v46, %v723_v47 }
 0x400   :  { %v713_v61 = vsel %vm72_vm1, %v682_v55, 0.0  ;;  %v728_v28 = vsel %vm72_vm1, %v683_v63, 0.0 }
 0x401   :  { %v652_v14 = vpop.permute.xlu0 %651 }
 0x402   :  { %v694_v2 = vmul.f32 %v652_v14, %v5908_v53  ;;  %v695_v39 = vmul.f32 %v652_v14, %v5913_v54  ;;  %v708_v53 = vadd.f32 %v707_v4, %v706_v44  ;;  %v664_v54 = vpop.permute.xlu1 %663 }
 0x403   :  { %v700_v31 = vmul.f32 %v664_v54, %v5953_v20  ;;  %v701_v35 = vmul.f32 %v664_v54, %v5958_v21 }
 0x404   :  { %v739_v56 = vsel %vm72_vm1, %v694_v2, 0.0  ;;  %v754_v50 = vsel %vm72_vm1, %v695_v39, 0.0  ;;  %v710_v11 = vadd.f32 %v709_v41, %v708_v53 }
 0x405   :  { %v660_v40 = vpop.permute.xlu0 %659  ;;  %v740_v18 = vadd.f32 %v739_v56, %v738_v52  ;;  %v755_v12 = vadd.f32 %v754_v50, %v753_v58  ;;  %v745_v53 = vsel %vm72_vm1, %v700_v31, 0.0  ;;  %v760_v47 = vsel %vm72_vm1, %v701_v35, 0.0 }
 0x406   :  { %v698_v26 = vmul.f32 %v660_v40, %v5936_v0  ;;  %v699_v14 = vmul.f32 %v660_v40, %v5941_v6  ;;  %v640_v29 = vpop.permute.xlu1 %639 }
 0x407   :  { %v742_v3 = vadd.f32 %v741_v57, %v740_v18  ;;  %v757_v4 = vadd.f32 %v756_v62, %v755_v12  ;;  %v688_v20 = vmul.f32 %v640_v29, %v5865_v33  ;;  %v689_v21 = vmul.f32 %v640_v29, %v5874_v42 }
 0x408   :  { %v743_v39 = vsel %vm72_vm1, %v698_v26, 0.0  ;;  %v758_v44 = vsel %vm72_vm1, %v699_v14, 0.0 }
 0x409   :  { %v624_v60 = vpop.permute.xlu0 %623  ;;  %v744_v8 = vadd.f32 %v743_v39, %v742_v3  ;;  %v759_v34 = vadd.f32 %v758_v44, %v757_v4  ;;  %v734_v42 = vsel %vm72_vm1, %v689_v21, 0.0  ;;  %v6140_v3 = vsub.s32 4, %v6013_v25 }
 0x40a   :  { %v680_v59 = vmul.f32 %v624_v60, %v5805_v9  ;;  %v681_v13 = vmul.f32 %v624_v60, %v5810_v10  ;;  %v672_v43 = vpop.permute.xlu1 %671  ;;  %v6143_v4 = vsub.s32 3, %v6013_v25  ;;  %v6148_v39 = vsub.s32 5, %v6013_v25 }
 0x40b   :  { %v704_v56 = vmul.f32 %v672_v43, %v5985_v51  ;;  %v705_v50 = vmul.f32 %v672_v43, %v5994_v7  ;;  %v746_v60 = vadd.f32 %v745_v53, %v744_v8  ;;  %v761_v57 = vadd.f32 %v760_v47, %v759_v34  ;;  %v2390_v43 = vld [vmem:[%s7932_s3] sm:$0xff] }
 0x40c   :  { %v711_v15 = vsel %vm72_vm1, %v680_v59, 0.0  ;;  %v726_v16 = vsel %vm72_vm1, %v681_v13, 0.0 }
 0x40d   :  { %v712_v9 = vadd.f32 %v711_v15, %v710_v11  ;;  %v727_v30 = vadd.f32 %v726_v16, %v725_v19  ;;  %v632_v10 = vpop.permute.xlu0 %631  ;;  %v749_v51 = vsel %vm72_vm1, %v704_v56, 0.0  ;;  %v764_v19 = vsel %vm72_vm1, %v705_v50, 0.0 }
 0x40e   :  { %v684_v0 = vmul.f32 %v632_v10, %v5831_v17  ;;  %v685_v6 = vmul.f32 %v632_v10, %v5842_v22 }
 0x40f   :  { %v714_v1 = vadd.f32 %v713_v61, %v712_v9  ;;  %v729_v2 = vadd.f32 %v728_v28, %v727_v30 }
 0x410   :  { %v715_v45 = vsel %vm72_vm1, %v684_v0, 0.0  ;;  %v730_v40 = vsel %vm72_vm1, %v685_v6, 0.0  ;;  %v6136_v0 = vsub.s32 2, %v6013_v25 }
 0x411   :  { %v636_v5 = vpop.permute.xlu0 %635  ;;  %v716_v41 = vadd.f32 %v715_v45, %v714_v1  ;;  %v731_v46 = vadd.f32 %v730_v40, %v729_v2  ;;  %v6152_v45 = vsub.s32 6, %v6013_v25 }
 0x412   :  { %v686_v17 = vmul.f32 %v636_v5, %v5847_v23  ;;  %v687_v22 = vmul.f32 %v636_v5, %v5852_v24  ;;  %v719_v24 = vsel %vm72_vm1, %v688_v20, 0.0  ;;  %v6156_v20 = vsub.s32 7, %v6013_v25 }
 0x414   :  { %v717_v54 = vsel %vm72_vm1, %v686_v17, 0.0  ;;  %v732_v33 = vsel %vm72_vm1, %v687_v22, 0.0 }
 0x415   :  { %v733_v48 = vadd.f32 %v732_v33, %v731_v46  ;;  %v668_v49 = vpop.permute.xlu0 %667  ;;  %v718_v23 = vadd.f32 %v717_v54, %v716_v41  ;;  %v2391_v41 = vld [vmem:[%s7932_s3 + $0x8] sm:$0x1]  ;;  %s5695_s3 = smov 48  }
 0x416   :  { %v702_v52 = vmul.f32 %v668_v49, %v5969_v32  ;;  %v703_v58 = vmul.f32 %v668_v49, %v5974_v38  ;;  %v5630_v46 = vpack.c.bf16 %v2391_v41, %v2390_v43 }
 0x417   :  { %v720_v55 = vadd.f32 %v719_v24, %v718_v23  ;;  %v735_v63 = vadd.f32 %v734_v42, %v733_v48 }
 0x418   :  { %v747_v62 = vsel %vm72_vm1, %v702_v52, 0.0  ;;  %v762_v59 = vsel %vm72_vm1, %v703_v58, 0.0  ;;  %5632 = vmatprep.subr.msk.bf16.mxu1 %vm5631_vm15, %v5630_v46 }
 0x419   :  { %v771_v13 = vrot.slane %v720_v55, 7  ;;  %v772_v18 = vrot.slane %v735_v63, 7  ;;  %v748_v12 = vadd.f32 %v747_v62, %v746_v60  ;;  %v763_v11 = vadd.f32 %v762_v59, %v761_v57  ;;  %5635 = vmatpush3.bf16.msk.msra.mxu1 %vm5631_vm15, %v5630_v46 }
 0x41a   :  { %vm1523_vm15 = vcmask 48128  }
 0x41b   :  { %v781_v7 = vsel %vm770_vm11, 0.0, %v771_v13  ;;  %v773_v32 = vsel %vm770_vm11, %v771_v13, %v772_v18  ;;  %v750_v38 = vadd.f32 %v749_v51, %v748_v12  ;;  %v765_v26 = vadd.f32 %v764_v19, %v763_v11 }
 0x41c   :  { %789 = vrot.lane.b32.xlu0 %v781_v7, %s5692_s2  ;;  %791 = vrot.lane.b32.xlu1 %v773_v32, %s5692_s2  ;;  %v783_v15 = vsel %vm770_vm11, %v772_v18, 0.0 }
 0x41d   :  { %v774_v14 = vrot.slane %v750_v38, 7  ;;  %v775_v61 = vrot.slane %v765_v26, 7 }
 0x41f   :  { %v782_v16 = vsel %vm770_vm11, 0.0, %v774_v14  ;;  %v784_v28 = vsel %vm770_vm11, %v775_v61, 0.0  ;;  %v776_v29 = vsel %vm770_vm11, %v774_v14, %v775_v61 }
 0x420   :  { %793 = vrot.lane.b32.xlu0 %v783_v15, %s5692_s2  ;;  %795 = vrot.lane.b32.xlu1 %v782_v16, %s5692_s2 }
 0x424   :  { %799 = vrot.lane.b32.xlu1 %v784_v28, %s5692_s2  ;;  %797 = vrot.lane.b32.xlu0 %v776_v29, %s5692_s2 }
 0x48e   :  { %v790_v9 = vpop.permute.xlu0 %789  ;;  %v792_v21 = vpop.permute.xlu1 %791 }
 0x48f   :  { %v808_v30 = vsel %vm807_vm12, 0.0, %v790_v9  ;;  %v809_v17 = vsel %vm807_vm12, 0.0, %v792_v21 }
 0x490   :  { %v815_v10 = vsel %vm814_vm13, %v808_v30, 0.0  ;;  %v816_v22 = vsel %vm814_vm13, %v809_v17, 0.0 }
 0x491   :  { %v831_v31 = vrot.slane %v815_v10, %v6022_v37  ;;  %v824_v35 = vrot.slane %v815_v10, %v6019_v36  ;;  %v838_v6 = vrot.slane %v815_v10, %v6136_v0  ;;  %v852_v1 = vrot.slane %v815_v10, %v6140_v3 }
 0x492   :  { %v845_v2 = vrot.slane %v815_v10, %v6143_v4  ;;  %v859_v44 = vrot.slane %v815_v10, %v6148_v39  ;;  %v866_v40 = vrot.slane %v815_v10, %v6152_v45  ;;  %v873_v5 = vrot.slane %v815_v10, %v6156_v20  ;;  %v794_v48 = vpop.permute.xlu0 %793  ;;  %v796_v49 = vpop.permute.xlu1 %795 }
 0x493   :  { %833 = vbcast.lane.b32.xlu1 %v831_v31, 256  ;;  %826 = vbcast.lane.b32.xlu0 %v824_v35, 256  ;;  %v887_v8 = vrot.slane %v816_v22, %v6022_v37  ;;  %v880_v34 = vrot.slane %v816_v22, %v6019_v36  ;;  %v894_v25 = vrot.slane %v816_v22, %v6136_v0  ;;  %v810_v23 = vsel %vm807_vm12, 0.0, %v794_v48 }
 0x494   :  { %v901_v53 = vrot.slane %v816_v22, %v6143_v4  ;;  %v908_v47 = vrot.slane %v816_v22, %v6140_v3  ;;  %v915_v54 = vrot.slane %v816_v22, %v6148_v39  ;;  %v929_v33 = vrot.slane %v816_v22, %v6156_v20 }
 0x495   :  { %v922_v42 = vrot.slane %v816_v22, %v6152_v45  ;;  %v811_v24 = vsel %vm807_vm12, 0.0, %v796_v49  ;;  %v817_v56 = vsel %vm814_vm13, %v810_v23, 0.0 }
 0x496   :  { %v6180_v50 = vsel %vm814_vm13, %v811_v24, 0.0  ;;  %v1304_v52 = vrot.slane %v817_v56, %v6019_v36  ;;  %v6189_v60 = vpop.permute.xlu0 %797  ;;  %v6191_v57 = vpop.permute.xlu1 %799  ;;  %v6200_v19 = vrot.slane %v817_v56, %v6022_v37 }
 0x497   :  { %1047 = vbcast.lane.b32.xlu1 %v824_v35, 257  ;;  %840 = vbcast.lane.b32.xlu0 %v838_v6, 256  ;;  %v936_v58 = vrot.slane %v6180_v50, %v6019_v36  ;;  %v943_v55 = vrot.slane %v6180_v50, %v6022_v37  ;;  %v950_v63 = vrot.slane %v6180_v50, %v6136_v0 }
 0x498   :  { %v957_v62 = vrot.slane %v6180_v50, %v6143_v4  ;;  %v964_v59 = vrot.slane %v6180_v50, %v6140_v3  ;;  %v6206_v15 = vrot.slane %v6180_v50, %v6148_v39 }
 0x49b   :  { %1055 = vbcast.lane.b32.xlu1 %v838_v6, 257  ;;  %1051 = vbcast.lane.b32.xlu0 %v831_v31, 257 }
 0x49f   :  { %854 = vbcast.lane.b32.xlu1 %v852_v1, 256  ;;  %847 = vbcast.lane.b32.xlu0 %v845_v2, 256 }
 0x4a3   :  { %1063 = vbcast.lane.b32.xlu1 %v852_v1, 257  ;;  %1059 = vbcast.lane.b32.xlu0 %v845_v2, 257 }
 0x4a7   :  { %1179 = vbcast.lane.b32.xlu1 %v831_v31, 258  ;;  %1175 = vbcast.lane.b32.xlu0 %v824_v35, 258 }
 0x4ab   :  { %1187 = vbcast.lane.b32.xlu1 %v845_v2, 258  ;;  %1183 = vbcast.lane.b32.xlu0 %v838_v6, 258 }
 0x4af   :  { %861 = vbcast.lane.b32.xlu1 %v859_v44, 256  ;;  %1191 = vbcast.lane.b32.xlu0 %v852_v1, 258  ;;  %v6222_v1 = vrot.slane %v6180_v50, %v6152_v45 }
 0x4b3   :  { %868 = vbcast.lane.b32.xlu1 %v866_v40, 256  ;;  %1067 = vbcast.lane.b32.xlu0 %v859_v44, 257 }
 0x4b7   :  { %1071 = vbcast.lane.b32.xlu1 %v866_v40, 257  ;;  %875 = vbcast.lane.b32.xlu0 %v873_v5, 256 }
 0x4bb   :  { %1195 = vbcast.lane.b32.xlu1 %v859_v44, 258  ;;  %1075 = vbcast.lane.b32.xlu0 %v873_v5, 257 }
 0x4bf   :  { %889 = vbcast.lane.b32.xlu1 %v887_v8, 256  ;;  %882 = vbcast.lane.b32.xlu0 %v880_v34, 256 }
 0x4c3   :  { %1079 = vbcast.lane.b32.xlu1 %v880_v34, 257  ;;  %896 = vbcast.lane.b32.xlu0 %v894_v25, 256 }
 0x4c7   :  { %1087 = vbcast.lane.b32.xlu1 %v894_v25, 257  ;;  %1083 = vbcast.lane.b32.xlu0 %v887_v8, 257 }
 0x4cb   :  { %1203 = vbcast.lane.b32.xlu1 %v873_v5, 258  ;;  %1199 = vbcast.lane.b32.xlu0 %v866_v40, 258  ;;  %v6228_v5 = vrot.slane %v6180_v50, %v6156_v20 }
 0x4cf   :  { %1211 = vbcast.lane.b32.xlu1 %v887_v8, 258  ;;  %1207 = vbcast.lane.b32.xlu0 %v880_v34, 258 }
 0x4d3   :  { %903 = vbcast.lane.b32.xlu1 %v901_v53, 256  ;;  %1215 = vbcast.lane.b32.xlu0 %v894_v25, 258 }
 0x4d7   :  { %1091 = vbcast.lane.b32.xlu1 %v901_v53, 257  ;;  %910 = vbcast.lane.b32.xlu0 %v908_v47, 256 }
 0x4db   :  { %917 = vbcast.lane.b32.xlu1 %v915_v54, 256  ;;  %1095 = vbcast.lane.b32.xlu0 %v908_v47, 257 }
 0x4df   :  { %931 = vbcast.lane.b32.xlu1 %v929_v33, 256  ;;  %924 = vbcast.lane.b32.xlu0 %v922_v42, 256 }
 0x4e3   :  { %1103 = vbcast.lane.b32.xlu1 %v922_v42, 257  ;;  %1099 = vbcast.lane.b32.xlu0 %v915_v54, 257 }
 0x4e7   :  { %1219 = vbcast.lane.b32.xlu1 %v901_v53, 258  ;;  %1107 = vbcast.lane.b32.xlu0 %v929_v33, 257 }
 0x4eb   :  { %1227 = vbcast.lane.b32.xlu1 %v915_v54, 258  ;;  %1223 = vbcast.lane.b32.xlu0 %v908_v47, 258 }
 0x4ef   :  { %1235 = vbcast.lane.b32.xlu1 %v929_v33, 258  ;;  %1231 = vbcast.lane.b32.xlu0 %v922_v42, 258  ;;  %v812_v33 = vsel %vm807_vm12, 0.0, %v6189_v60 }
 0x4f0   :  { %v6260_v60 = vsel %vm814_vm13, %v812_v33, 0.0 }
 0x4f3   :  { %1306 = vbcast.lane.b32.xlu0 %v1304_v52, 256  ;;  %938 = vbcast.lane.b32.xlu1 %v936_v58, 256 }
 0x4f7   :  { %945 = vbcast.lane.b32.xlu0 %v943_v55, 256  ;;  %952 = vbcast.lane.b32.xlu1 %v950_v63, 256 }
 0x4fb   :  { %1111 = vbcast.lane.b32.xlu0 %v936_v58, 257  ;;  %1115 = vbcast.lane.b32.xlu1 %v943_v55, 257 }
 0x4ff   :  { %1119 = vbcast.lane.b32.xlu0 %v950_v63, 257  ;;  %1317 = vbcast.lane.b32.xlu1 %v1304_v52, 257 }
 0x503   :  { %959 = vbcast.lane.b32.xlu0 %v957_v62, 256  ;;  %966 = vbcast.lane.b32.xlu1 %v964_v59, 256 }
 0x505   :  { %v827_v13 = vpop.permute.xlu0 %826  ;;  %v834_v18 = vpop.permute.xlu1 %833 }
 0x507   :  { %1123 = vbcast.lane.b32.xlu0 %v957_v62, 257  ;;  %1127 = vbcast.lane.b32.xlu1 %v964_v59, 257 }
 0x509   :  { %v841_v12 = vpop.permute.xlu0 %840  ;;  %v1048_v11 = vpop.permute.xlu1 %1047 }
 0x50a   :  { %v1361_v16 = vsel %vm807_vm12, %v827_v13, %v1048_v11 }
 0x50b   :  { %1239 = vbcast.lane.b32.xlu0 %v936_v58, 258  ;;  %1243 = vbcast.lane.b32.xlu1 %v943_v55, 258 }
 0x50d   :  { %v1052_v51 = vpop.permute.xlu0 %1051  ;;  %v1056_v7 = vpop.permute.xlu1 %1055 }
 0x50e   :  { %v1362_v61 = vsel %vm807_vm12, %v834_v18, %v1052_v51  ;;  %v1363_v2 = vsel %vm807_vm12, %v841_v12, %v1056_v7 }
 0x50f   :  { %1247 = vbcast.lane.b32.xlu0 %v950_v63, 258  ;;  %1325 = vbcast.lane.b32.xlu1 %v1304_v52, 258 }
 0x511   :  { %v848_v32 = vpop.permute.xlu0 %847  ;;  %v6197_v38 = vpop.permute.xlu1 %854 }
 0x513   :  { %1251 = vbcast.lane.b32.xlu0 %v957_v62, 258  ;;  %1255 = vbcast.lane.b32.xlu1 %v964_v59, 258 }
 0x515   :  { %v1060_v26 = vpop.permute.xlu0 %1059  ;;  %v6202_v14 = vpop.permute.xlu1 %1063 }
 0x516   :  { %v1364_v17 = vsel %vm807_vm12, %v848_v32, %v1060_v26 }
 0x517   :  { %1336 = vbcast.lane.b32.xlu0 %v6200_v19, 256  ;;  %973 = vbcast.lane.b32.xlu1 %v6206_v15, 256 }
 0x519   :  { %v1176_v28 = vpop.permute.xlu0 %1175  ;;  %v1180_v29 = vpop.permute.xlu1 %1179 }
 0x51a   :  { %v1394_v9 = vsel %vm1393_vm0, %v1361_v16, %v1176_v28  ;;  %v1395_v30 = vsel %vm1393_vm0, %v1362_v61, %v1180_v29 }
 0x51b   :  { %v1426_v10 = vsel %vm72_vm1, %v1394_v9, %v834_v18  ;;  %v1427_v31 = vsel %vm72_vm1, %v1395_v30, %v841_v12  ;;  %1131 = vbcast.lane.b32.xlu0 %v6206_v15, 257  ;;  %1347 = vbcast.lane.b32.xlu1 %v6200_v19, 257  ;;  %v992_v9 = vrot.slane %v6260_v60, %v6019_v36 }
 0x51c   :  { %v1458_v35 = vsel %vm814_vm13, %v1426_v10, %v1052_v51  ;;  %v1459_v6 = vsel %vm814_vm13, %v1427_v31, %v1056_v7 }
 0x51d   :  { %v1491_v44 = vsel %vm1490_vm14, %v1458_v35, %v1180_v29  ;;  %v1184_v40 = vpop.permute.xlu0 %1183  ;;  %v1188_v21 = vpop.permute.xlu1 %1187 }
 0x51e   :  { %v1524_v22 = vsel %vm1523_vm15, %v1491_v44, %v841_v12  ;;  %v1396_v8 = vsel %vm1393_vm0, %v1363_v2, %v1184_v40  ;;  %v1492_v34 = vsel %vm1490_vm14, %v1459_v6, %v1184_v40  ;;  %v1397_v46 = vsel %vm1393_vm0, %v1364_v17, %v1188_v21 }
 0x51f   :  { %v1428_v25 = vsel %vm72_vm1, %v1396_v8, %v848_v32  ;;  %v1525_v43 = vsel %vm1523_vm15, %v1492_v34, %v848_v32  ;;  %v1557_v41 = vsel %vm1556_vm8, %v1524_v22, %v1056_v7  ;;  %980 = vbcast.lane.b32.xlu0 %v6222_v1, 256  ;;  %987 = vbcast.lane.b32.xlu1 %v6228_v5, 256 }
 0x520   :  { %v1590_v53 = vsel %vm1589_vm7, %v1557_v41, %v1184_v40  ;;  %v1460_v47 = vsel %vm814_vm13, %v1428_v25, %v1060_v26  ;;  %v1558_v54 = vsel %vm1556_vm8, %v1525_v43, %v1060_v26  ;;  %v1429_v56 = vsel %vm72_vm1, %v1397_v46, %v6197_v38 }
 0x521   :  { %v1660_v42 = vrot.slane %v1590_v53, %v6031_v27  ;;  %v1493_v48 = vsel %vm1490_vm14, %v1460_v47, %v1188_v21  ;;  %v1591_v49 = vsel %vm1589_vm7, %v1558_v54, %v1188_v21  ;;  %v1192_v23 = vpop.permute.xlu0 %1191  ;;  %v6248_v24 = vpop.permute.xlu1 %861  ;;  %v1461_v11 = vsel %vm814_vm13, %v1429_v56, %v6202_v14 }
 0x522   :  { %v1526_v50 = vsel %vm1523_vm15, %v1493_v48, %v6197_v38  ;;  %v1683_v52 = vrot.slane %v1591_v49, %v6031_v27  ;;  %v1494_v29 = vsel %vm1490_vm14, %v1461_v11, %v1192_v23  ;;  %v999_v44 = vrot.slane %v6260_v60, %v6022_v37 }
 0x523   :  { %v1661_v58 = vcombine.high %v1660_v42, %v1660_v42  ;;  %v1668_v55 = vrot.slane %v1660_v42, %v6031_v27  ;;  %v1559_v63 = vsel %vm1556_vm8, %v1526_v50, %v6202_v14  ;;  %1135 = vbcast.lane.b32.xlu0 %v6222_v1, 257  ;;  %1139 = vbcast.lane.b32.xlu1 %v6228_v5, 257 }
 0x524   :  { %v1684_v62 = vcombine.high %v1683_v52, %v1683_v52  ;;  %v1691_v59 = vrot.slane %v1683_v52, %v6031_v27  ;;  %v1592_v13 = vsel %vm1589_vm7, %v1559_v63, %v1192_v23  ;;  %v1527_v21 = vsel %vm1523_vm15, %v1494_v29, %v6248_v24 }
 0x525   :  { %v1675_v18 = vrot.slane %v1661_v58, %v6031_v27  ;;  %v1676_v12 = vcombine.high %v1668_v55, %v1668_v55  ;;  %v1706_v51 = vrot.slane %v1592_v13, %v6031_v27  ;;  %v1068_v7 = vpop.permute.xlu0 %1067  ;;  %v6269_v32 = vpop.permute.xlu1 %868  ;;  %v1006_v17 = vrot.slane %v6260_v60, %v6136_v0 }
 0x526   :  { %v1698_v26 = vrot.slane %v1684_v62, %v6031_v27  ;;  %v1699_v16 = vcombine.high %v1691_v59, %v1691_v59  ;;  %v1560_v22 = vsel %vm1556_vm8, %v1527_v21, %v1068_v7  ;;  %v1365_v47 = vsel %vm807_vm12, %v6197_v38, %v6202_v14 }
 0x527   :  { %v1707_v61 = vcombine.high %v1706_v51, %v1706_v51  ;;  %1259 = vbcast.lane.b32.xlu0 %v6206_v15, 258  ;;  %v2399_v28 = vcombine.low %v1668_v55, %v1675_v18  ;;  %1355 = vbcast.lane.b32.xlu1 %v6200_v19, 258  ;;  %v2400_v30 = vcombine.low %v1676_v12, %v1691_v59 }
 0x528   :  { %v6278_v10 = vrot.slane %v1706_v51, %v6031_v27  ;;  %v2401_v2 = vcombine.low %v1698_v26, %v1699_v16  ;;  %v1398_v49 = vsel %vm1393_vm0, %v1365_v47, %v1192_v23  ;;  %v1366_v55 = vsel %vm807_vm12, %v6248_v24, %v1068_v7 }
 0x529   :  { %v1721_v31 = vrot.slane %v1707_v61, %v6031_v27  ;;  %v6281_v35 = vpop.permute.xlu0 %875  ;;  %v1072_v6 = vpop.permute.xlu1 %1071  ;;  %v2409_v15 = vrot.slane %v2399_v28, %v6031_v27  ;;  %v2416_v19 = vrot.slane %v2400_v30, %v6031_v27  ;;  %v1430_v50 = vsel %vm72_vm1, %v1398_v49, %v6248_v24 }
 0x52a   :  { %v2423_v25 = vrot.slane %v2401_v2, %v6031_v27  ;;  %v1462_v23 = vsel %vm814_vm13, %v1430_v50, %v1068_v7  ;;  %v1367_v51 = vsel %vm807_vm12, %v6269_v32, %v1072_v6 }
 0x52b   :  { %994 = vbcast.lane.b32.xlu0 %v992_v9, 256  ;;  %v2402_v40 = vcombine.low %v6278_v10, %v1721_v31  ;;  %1001 = vbcast.lane.b32.xlu1 %v999_v44, 256  ;;  %v2431_v41 = vcombine.low %v2409_v15, %v2416_v19 }
 0x52d   :  { %v1076_v8 = vpop.permute.xlu0 %1075  ;;  %v1196_v34 = vpop.permute.xlu1 %1195  ;;  %v2430_v43 = vrot.slane %v2402_v40, %v6031_v27  ;;  %v2439_v42 = vrot.slane %v2431_v41, %v6031_v27 }
 0x52e   :  { %v1593_v46 = vsel %vm1589_vm7, %v1560_v22, %v1196_v34  ;;  %v1399_v63 = vsel %vm1393_vm0, %v1366_v55, %v1196_v34  ;;  %v1495_v62 = vsel %vm1490_vm14, %v1462_v23, %v1196_v34  ;;  %v1368_v7 = vsel %vm807_vm12, %v6281_v35, %v1076_v8 }
 0x52f   :  { %1008 = vbcast.lane.b32.xlu0 %v1006_v17, 256  ;;  %v2432_v53 = vcombine.low %v2423_v25, %v2430_v43  ;;  %1143 = vbcast.lane.b32.xlu1 %v992_v9, 257  ;;  %v1729_v0 = vrot.slane %v1593_v46, %v6031_v27  ;;  %v1431_v24 = vsel %vm72_vm1, %v1399_v63, %v6269_v32 }
 0x530   :  { %v1528_v11 = vsel %vm1523_vm15, %v1495_v62, %v6269_v32  ;;  %v1463_v61 = vsel %vm814_vm13, %v1431_v24, %v1072_v6  ;;  %v6386_v62 = vrot.slane %v6260_v60, %v6148_v39 }
 0x531   :  { %v883_v54 = vpop.permute.xlu0 %882  ;;  %v6300_v33 = vpop.permute.xlu1 %889  ;;  %v2446_v48 = vrot.slane %v2432_v53, %v6031_v27  ;;  %v1730_v52 = vcombine.high %v1729_v0, %v1729_v0  ;;  %v1737_v38 = vrot.slane %v1729_v0, %v6031_v27  ;;  %v1561_v28 = vsel %vm1556_vm8, %v1528_v11, %v1072_v6 }
 0x532   :  { %v1722_v53 = vcombine.high %v6278_v10, %v6278_v10 }
 0x533   :  { %1147 = vbcast.lane.b32.xlu0 %v999_v44, 257  ;;  %v2447_v56 = vcombine.low %v2439_v42, %v2446_v48  ;;  %1151 = vbcast.lane.b32.xlu1 %v1006_v17, 257  ;;  %v1744_v59 = vrot.slane %v1730_v52, %v6031_v27  ;;  %v1745_v13 = vcombine.high %v1737_v38, %v1737_v38 }
 0x534   :  { %v2448_v50 = vcombine.low %v1722_v53, %v1737_v38 }
 0x535   :  { %v6308_v14 = vpop.permute.xlu0 %896  ;;  %5573 = vmatprep.mubr.msk.f32.mxu1 %vm2987_vm6, %v2447_v56  ;;  %v1080_v58 = vpop.permute.xlu1 %1079  ;;  %v6339_v26 = vcombine.low %v1744_v59, %v1745_v13 }
 0x536   :  { %v1369_v6 = vsel %vm807_vm12, %v883_v54, %v1080_v58  ;;  %v2458_v39 = vrot.slane %v2448_v50, %v6031_v27 }
 0x537   :  { %1263 = vbcast.lane.b32.xlu0 %v6222_v1, 258  ;;  %1267 = vbcast.lane.b32.xlu1 %v6228_v5, 258  ;;  %v6331_v1 = vrot.slane %v6260_v60, %v6143_v4  ;;  %v6335_v5 = vrot.slane %v6260_v60, %v6140_v3 }
 0x539   :  { %v6319_v18 = vpop.permute.xlu0 %1083  ;;  %v6321_v12 = vpop.permute.xlu1 %1087 }
 0x53b   :  { %1271 = vbcast.lane.b32.xlu0 %v992_v9, 258  ;;  %1275 = vbcast.lane.b32.xlu1 %v999_v44, 258 }
 0x53d   :  { %v1200_v16 = vpop.permute.xlu0 %1199  ;;  %v1204_v32 = vpop.permute.xlu1 %1203 }
 0x53e   :  { %v1400_v29 = vsel %vm1393_vm0, %v1367_v51, %v1200_v16  ;;  %v1496_v4 = vsel %vm1490_vm14, %v1463_v61, %v1200_v16  ;;  %v1594_v9 = vsel %vm1589_vm7, %v1561_v28, %v1200_v16  ;;  %v1401_v3 = vsel %vm1393_vm0, %v1368_v7, %v1204_v32 }
 0x53f   :  { %v1432_v30 = vsel %vm72_vm1, %v1400_v29, %v6281_v35  ;;  %v1529_v31 = vsel %vm1523_vm15, %v1496_v4, %v6281_v35  ;;  %v1752_v2 = vrot.slane %v1594_v9, %v6031_v27  ;;  %v1433_v15 = vsel %vm72_vm1, %v1401_v3, %v883_v54  ;;  %1279 = vbcast.lane.b32.xlu0 %v1006_v17, 258 }
 0x540   :  { %v1464_v44 = vsel %vm814_vm13, %v1432_v30, %v1076_v8  ;;  %v1562_v19 = vsel %vm1556_vm8, %v1529_v31, %v1076_v8  ;;  %1015 = vbcast.lane.b32.xlu1 %v6331_v1, 256  ;;  %v1465_v40 = vsel %vm814_vm13, %v1433_v15, %v1080_v58  ;;  %v6409_v29 = vrot.slane %v6260_v60, %v6156_v20 }
 0x541   :  { %v1753_v21 = vcombine.high %v1752_v2, %v1752_v2  ;;  %v1760_v22 = vrot.slane %v1752_v2, %v6031_v27  ;;  %v1497_v35 = vsel %vm1490_vm14, %v1464_v44, %v1204_v32  ;;  %v1595_v34 = vsel %vm1589_vm7, %v1562_v19, %v1204_v32  ;;  %v1208_v25 = vpop.permute.xlu0 %1207  ;;  %v1212_v43 = vpop.permute.xlu1 %1211 }
 0x542   :  { %v1530_v17 = vsel %vm1523_vm15, %v1497_v35, %v883_v54  ;;  %v1775_v41 = vrot.slane %v1595_v34, %v6031_v27  ;;  %v1402_v46 = vsel %vm1393_vm0, %v1369_v6, %v1208_v25  ;;  %v1498_v8 = vsel %vm1490_vm14, %v1465_v40, %v1208_v25 }
 0x543   :  { %v1767_v47 = vrot.slane %v1753_v21, %v6031_v27  ;;  %v1768_v0 = vcombine.high %v1760_v22, %v1760_v22  ;;  %v1531_v42 = vsel %vm1523_vm15, %v1498_v8, %v6300_v33  ;;  %1022 = vbcast.lane.b32.xlu0 %v6335_v5, 256  ;;  %v1434_v49 = vsel %vm72_vm1, %v1402_v46, %v6300_v33 }
 0x544   :  { %v1776_v48 = vcombine.high %v1775_v41, %v1775_v41  ;;  %v1783_v54 = vrot.slane %v1775_v41, %v6031_v27  ;;  %v1563_v56 = vsel %vm1556_vm8, %v1530_v17, %v1080_v58  ;;  %1155 = vbcast.lane.b32.xlu1 %v6331_v1, 257  ;;  %v1564_v52 = vsel %vm1556_vm8, %v1531_v42, %v6319_v18 }
 0x545   :  { %v1596_v10 = vsel %vm1589_vm7, %v1563_v56, %v1208_v25  ;;  %v6379_v55 = vpop.permute.xlu0 %1215  ;;  %v6381_v23 = vpop.permute.xlu1 %903  ;;  %v2465_v58 = vrot.slane %v6339_v26, %v6031_v27  ;;  %v2450_v59 = vcombine.low %v1760_v22, %v1767_v47  ;;  %v1466_v13 = vsel %vm814_vm13, %v1434_v49, %v6319_v18 }
 0x546   :  { %v1798_v63 = vrot.slane %v1596_v10, %v6031_v27  ;;  %v2451_v38 = vcombine.low %v1768_v0, %v1783_v54  ;;  %v1597_v24 = vsel %vm1589_vm7, %v1564_v52, %v1212_v43  ;;  %v1790_v11 = vrot.slane %v1776_v48, %v6031_v27 }
 0x547   :  { %1159 = vbcast.lane.b32.xlu0 %v6335_v5, 257  ;;  %v1791_v51 = vcombine.high %v1783_v54, %v1783_v54  ;;  %v1821_v26 = vrot.slane %v1597_v24, %v6031_v27  ;;  %v6405_v32 = vrot.slane %v6260_v60, %v6152_v45  ;;  %v1370_v4 = vsel %vm807_vm12, %v6300_v33, %v6319_v18 }
 0x548   :  { %v1799_v7 = vcombine.high %v1798_v63, %v1798_v63  ;;  %v1806_v16 = vrot.slane %v1798_v63, %v6031_v27  ;;  %1029 = vbcast.lane.b32.xlu1 %v6386_v62, 256  ;;  %v1499_v30 = vsel %vm1490_vm14, %v1466_v13, %v1212_v43  ;;  %v2472_v31 = vrot.slane %v2450_v59, %v6031_v27 }
 0x549   :  { %v6399_v61 = vpop.permute.xlu0 %910  ;;  %v6401_v28 = vpop.permute.xlu1 %1091  ;;  %v2479_v2 = vrot.slane %v2451_v38, %v6031_v27  ;;  %v1822_v15 = vcombine.high %v1821_v26, %v1821_v26  ;;  %v1829_v45 = vrot.slane %v1821_v26, %v6031_v27  ;;  %v2497_v20 = vcombine.low %v1790_v11, %v1791_v51 }
 0x54a   :  { %v1813_v9 = vrot.slane %v1799_v7, %v6031_v27  ;;  %v1814_v3 = vcombine.high %v1806_v16, %v1806_v16  ;;  %v1403_v6 = vsel %vm1393_vm0, %v1370_v4, %v1212_v43  ;;  %v2480_v33 = vcombine.low %v2458_v39, %v2465_v58 }
 0x54b   :  { %1036 = vbcast.lane.b32.xlu0 %v6405_v32, 256  ;;  %v1532_v18 = vsel %vm1523_vm15, %v1499_v30, %v6308_v14  ;;  %v1836_v44 = vrot.slane %v1822_v15, %v6031_v27  ;;  %v1837_v19 = vcombine.high %v1829_v45, %v1829_v45  ;;  %v1435_v34 = vsel %vm72_vm1, %v1403_v6, %v6308_v14 }
 0x54c   :  { %v2498_v60 = vcombine.low %v1806_v16, %v1813_v9  ;;  %1043 = vbcast.lane.b32.xlu1 %v6409_v29, 256  ;;  %v2499_v40 = vcombine.low %v1814_v3, %v1829_v45  ;;  %v2481_v17 = vcombine.low %v2472_v31, %v2479_v2  ;;  %v1565_v41 = vsel %vm1556_vm8, %v1532_v18, %v6321_v12 }
 0x54d   :  { %v1096_v21 = vpop.permute.xlu0 %1095  ;;  %v6425_v22 = vpop.permute.xlu1 %917  ;;  %v2500_v25 = vcombine.low %v1836_v44, %v1837_v19  ;;  %v2507_v46 = vrot.slane %v2497_v20, %v6031_v27  ;;  %v2488_v8 = vrot.slane %v2480_v33, %v6031_v27  ;;  %v1467_v48 = vsel %vm814_vm13, %v1435_v34, %v6321_v12 }
 0x54e   :  { %v2514_v35 = vrot.slane %v2498_v60, %v6031_v27  ;;  %v2521_v43 = vrot.slane %v2499_v40, %v6031_v27  ;;  %v2495_v53 = vrot.slane %v2481_v17, %v6031_v27  ;;  %v1598_v49 = vsel %vm1589_vm7, %v1565_v41, %v6379_v55 }
 0x54f   :  { %1163 = vbcast.lane.b32.xlu0 %v6386_v62, 257  ;;  %v2528_v42 = vrot.slane %v2500_v25, %v6031_v27  ;;  %v1371_v10 = vsel %vm807_vm12, %v6308_v14, %v6321_v12  ;;  %v1500_v58 = vsel %vm1490_vm14, %v1467_v48, %v6379_v55  ;;  %v813_v14 = vsel %vm807_vm12, 0.0, %v6191_v57 }
 0x550   :  { %1167 = vbcast.lane.b32.xlu1 %v6405_v32, 257  ;;  %v2529_v54 = vcombine.low %v2507_v46, %v2514_v35  ;;  %v2496_v56 = vcombine.low %v2488_v8, %v2495_v53  ;;  %v1404_v63 = vsel %vm1393_vm0, %v1371_v10, %v6379_v55  ;;  %v1844_v12 = vrot.slane %v1598_v49, %v6031_v27 }
 0x551   :  { %v6438_v47 = vpop.permute.xlu0 %924  ;;  %v6440_v0 = vpop.permute.xlu1 %931  ;;  %v2530_v50 = vcombine.low %v2521_v43, %v2528_v42  ;;  %v1436_v24 = vsel %vm72_vm1, %v1404_v63, %v6381_v23  ;;  %v1533_v55 = vsel %vm1523_vm15, %v1500_v58, %v6381_v23  ;;  %v820_v11 = vsel %vm814_vm13, %v813_v14, 0.0 }
 0x552   :  { %v2537_v52 = vrot.slane %v2529_v54, %v6031_v27  ;;  %5574 = vmatmul.mubr.msk.f32.vlgmr.msra.gmra.mrb[0].mxu1 %vm2987_vm6, %v2496_v56  ;;  %v1372_v51 = vsel %vm807_vm12, %v6381_v23, %v6401_v28  ;;  %v1468_v57 = vsel %vm814_vm13, %v1436_v24, %v6401_v28  ;;  %v1845_v39 = vcombine.high %v1844_v12, %v1844_v12 }
 0x553   :  { %1171 = vbcast.lane.b32.xlu0 %v6409_v29, 257  ;;  %v2544_v13 = vrot.slane %v2530_v50, %v6031_v27  ;;  %v6485_v23 = vrot.slane %v1844_v12, %v6031_v27  ;;  %v1311_v30 = vrot.slane %v820_v11, %v6019_v36  ;;  %v1373_v15 = vsel %vm807_vm12, %v6399_v61, %v1096_v21 }
 0x554   :  { %1283 = vbcast.lane.b32.xlu1 %v6331_v1, 258  ;;  %v1341_v44 = vrot.slane %v820_v11, %v6022_v37 }
 0x555   :  { %v1100_v59 = vpop.permute.xlu0 %1099  ;;  %v6458_v38 = vpop.permute.xlu1 %1103  ;;  %v2545_v1 = vcombine.low %v2537_v52, %v2544_v13  ;;  %v1860_v19 = vcombine.high %v6485_v23, %v6485_v23 }
 0x556   :  { %v1374_v45 = vsel %vm807_vm12, %v6425_v22, %v1100_v59 }
 0x557   :  { %1287 = vbcast.lane.b32.xlu0 %v6335_v5, 258  ;;  %v1566_v5 = vsel %vm1556_vm8, %v1533_v55, %v6401_v28  ;;  %5576 = vmatprep.mubr.msk.f32.mxu1 %vm2987_vm6, %v2545_v1 }
 0x558   :  { %1291 = vbcast.lane.b32.xlu1 %v6386_v62, 258 }
 0x559   :  { %v6479_v7 = vpop.permute.xlu0 %1107  ;;  %v1220_v16 = vpop.permute.xlu1 %1219 }
 0x55a   :  { %v1405_v62 = vsel %vm1393_vm0, %v1372_v51, %v1220_v16  ;;  %v1501_v26 = vsel %vm1490_vm14, %v1468_v57, %v1220_v16  ;;  %v1599_v4 = vsel %vm1589_vm7, %v1566_v5, %v1220_v16 }
 0x55b   :  { %v1437_v9 = vsel %vm72_vm1, %v1405_v62, %v6399_v61  ;;  %v1534_v28 = vsel %vm1523_vm15, %v1501_v26, %v6399_v61  ;;  %v1867_v3 = vrot.slane %v1599_v4, %v6031_v27  ;;  %1295 = vbcast.lane.b32.xlu0 %v6405_v32, 258  ;;  %v1859_v61 = vrot.slane %v1845_v39, %v6031_v27 }
 0x55c   :  { %1299 = vbcast.lane.b32.xlu1 %v6409_v29, 258  ;;  %v1469_v31 = vsel %vm814_vm13, %v1437_v9, %v1096_v21  ;;  %v1567_v2 = vsel %vm1556_vm8, %v1534_v28, %v1096_v21 }
 0x55d   :  { %v1868_v20 = vcombine.high %v1867_v3, %v1867_v3  ;;  %v1875_v60 = vrot.slane %v1867_v3, %v6031_v27  ;;  %v1224_v6 = vpop.permute.xlu0 %1223  ;;  %v1228_v33 = vpop.permute.xlu1 %1227  ;;  %v2546_v10 = vcombine.low %v6485_v23, %v1859_v61 }
 0x55e   :  { %v1406_v32 = vsel %vm1393_vm0, %v1373_v15, %v1224_v6  ;;  %v1502_v36 = vsel %vm1490_vm14, %v1469_v31, %v1224_v6  ;;  %v1600_v29 = vsel %vm1589_vm7, %v1567_v2, %v1224_v6  ;;  %v1407_v18 = vsel %vm1393_vm0, %v1374_v45, %v1228_v33 }
 0x55f   :  { %v1438_v40 = vsel %vm72_vm1, %v1406_v32, %v6425_v22  ;;  %1313 = vbcast.lane.b32.xlu0 %v1311_v30, 256  ;;  %v1535_v21 = vsel %vm1523_vm15, %v1502_v36, %v6425_v22  ;;  %v1890_v35 = vrot.slane %v1600_v29, %v6031_v27  ;;  %v1439_v25 = vsel %vm72_vm1, %v1407_v18, %v6438_v47 }
 0x560   :  { %v1470_v34 = vsel %vm814_vm13, %v1438_v40, %v1100_v59  ;;  %1321 = vbcast.lane.b32.xlu1 %v1311_v30, 257  ;;  %v1882_v37 = vrot.slane %v1868_v20, %v6031_v27  ;;  %v1883_v43 = vcombine.high %v1875_v60, %v1875_v60  ;;  %v1568_v17 = vsel %vm1556_vm8, %v1535_v21, %v1100_v59 }
 0x561   :  { %v1503_v41 = vsel %vm1490_vm14, %v1470_v34, %v1228_v33  ;;  %v6521_v46 = vpop.permute.xlu0 %1231  ;;  %v6523_v8 = vpop.permute.xlu1 %1235  ;;  %v1891_v22 = vcombine.high %v1890_v35, %v1890_v35  ;;  %v1898_v53 = vrot.slane %v1890_v35, %v6031_v27  ;;  %v1601_v48 = vsel %vm1589_vm7, %v1568_v17, %v1228_v33 }
 0x562   :  { %v1536_v42 = vsel %vm1523_vm15, %v1503_v41, %v6438_v47  ;;  %v2547_v54 = vcombine.low %v1860_v19, %v1875_v60  ;;  %v1913_v49 = vrot.slane %v1601_v48, %v6031_v27  ;;  %v1471_v56 = vsel %vm814_vm13, %v1439_v25, %v6458_v38 }
 0x563   :  { %v1569_v50 = vsel %vm1556_vm8, %v1536_v42, %v6458_v38  ;;  %1329 = vbcast.lane.b32.xlu0 %v1311_v30, 258  ;;  %v1905_v52 = vrot.slane %v1891_v22, %v6031_v27  ;;  %v1906_v63 = vcombine.high %v1898_v53, %v1898_v53  ;;  %v1504_v58 = vsel %vm1490_vm14, %v1471_v56, %v6521_v46 }
 0x564   :  { %1343 = vbcast.lane.b32.xlu1 %v1341_v44, 256  ;;  %v1914_v59 = vcombine.high %v1913_v49, %v1913_v49  ;;  %v1921_v13 = vrot.slane %v1913_v49, %v6031_v27  ;;  %v1537_v14 = vsel %vm1523_vm15, %v1504_v58, %v6440_v0  ;;  %v1602_v12 = vsel %vm1589_vm7, %v1569_v50, %v6521_v46 }
 0x565   :  { %v6543_v1 = vpop.permute.xlu0 %1306  ;;  %v939_v24 = vpop.permute.xlu1 %938  ;;  %v2548_v55 = vcombine.low %v1882_v37, %v1883_v43  ;;  %v2549_v11 = vcombine.low %v1898_v53, %v1905_v52  ;;  %v1936_v51 = vrot.slane %v1602_v12, %v6031_v27  ;;  %v1570_v57 = vsel %vm1556_vm8, %v1537_v14, %v6479_v7 }
 0x566   :  { %v2563_v5 = vrot.slane %v2547_v54, %v6031_v27  ;;  %v1928_v16 = vrot.slane %v1914_v59, %v6031_v27  ;;  %v1929_v39 = vcombine.high %v1921_v13, %v1921_v13  ;;  %v1603_v62 = vsel %vm1589_vm7, %v1570_v57, %v6523_v8 }
 0x567   :  { %1351 = vbcast.lane.b32.xlu0 %v1341_v44, 257  ;;  %v2595_v26 = vcombine.low %v1906_v63, %v1921_v13  ;;  %v1937_v4 = vcombine.high %v1936_v51, %v1936_v51  ;;  %v1944_v23 = vrot.slane %v1936_v51, %v6031_v27  ;;  %v6554_v9 = vrot.slane %v1603_v62, %v6031_v27 }
 0x568   :  { %1359 = vbcast.lane.b32.xlu1 %v1341_v44, 258  ;;  %v2556_v28 = vrot.slane %v2546_v10, %v6031_v27  ;;  %v2577_v3 = vrot.slane %v2549_v11, %v6031_v27  ;;  %v2596_v30 = vcombine.low %v1928_v16, %v1929_v39  ;;  %v2570_v60 = vrot.slane %v2548_v55, %v6031_v27 }
 0x569   :  { %v946_v31 = vpop.permute.xlu0 %945  ;;  %v953_v2 = vpop.permute.xlu1 %952  ;;  %v1951_v15 = vrot.slane %v1937_v4, %v6031_v27  ;;  %v1952_v45 = vcombine.high %v1944_v23, %v1944_v23  ;;  %v6561_v20 = vrot.slane %v6554_v9, %v6031_v27  ;;  %v2605_v32 = vrot.slane %v2595_v26, %v6031_v27 }
 0x56a   :  { %v2578_v6 = vcombine.low %v2556_v28, %v2563_v5  ;;  %v2612_v33 = vrot.slane %v2596_v30, %v6031_v27  ;;  %v2579_v61 = vcombine.low %v2570_v60, %v2577_v3  ;;  %v1375_v56 = vsel %vm807_vm12, %v6438_v47, %v6458_v38 }
 0x56b   :  { %v2597_v36 = vcombine.low %v1944_v23, %v1951_v15  ;;  %v2598_v29 = vcombine.low %v1952_v45, %v6561_v20  ;;  %v1408_v58 = vsel %vm1393_vm0, %v1375_v56, %v6521_v46 }
 0x56c   :  { %v2627_v21 = vcombine.low %v2605_v32, %v2612_v33  ;;  %v2586_v35 = vrot.slane %v2578_v6, %v6031_v27  ;;  %v2593_v34 = vrot.slane %v2579_v61, %v6031_v27  ;;  %v1440_v38 = vsel %vm72_vm1, %v1408_v58, %v6440_v0 }
 0x56d   :  { %v1112_v18 = vpop.permute.xlu0 %1111  ;;  %v1116_v44 = vpop.permute.xlu1 %1115  ;;  %v2619_v19 = vrot.slane %v2597_v36, %v6031_v27  ;;  %v2626_v40 = vrot.slane %v2598_v29, %v6031_v27  ;;  %v1472_v39 = vsel %vm814_vm13, %v1440_v38, %v6479_v7 }
 0x56e   :  { %v2594_v37 = vcombine.low %v2586_v35, %v2593_v34  ;;  %v2635_v41 = vrot.slane %v2627_v21, %v6031_v27  ;;  %v1377_v50 = vsel %vm807_vm12, %v939_v24, %v1112_v18  ;;  %v1378_v10 = vsel %vm807_vm12, %v946_v31, %v1116_v44 }
 0x56f   :  { %v2628_v25 = vcombine.low %v2619_v19, %v2626_v40  ;;  %v1505_v30 = vsel %vm1490_vm14, %v1472_v39, %v6523_v8 }
 0x570   :  { %5577 = vmatmul.mubr.msk.f32.gmra.mrb[2].mxu1 %vm2987_vm6, %v2594_v37  ;;  %v1538_v33 = vsel %vm1523_vm15, %v1505_v30, %v6543_v1 }
 0x571   :  { %v1120_v43 = vpop.permute.xlu0 %1119  ;;  %v6571_v17 = vpop.permute.xlu1 %1317  ;;  %v2642_v22 = vrot.slane %v2628_v25, %v6031_v27 }
 0x572   :  { %v1379_v24 = vsel %vm807_vm12, %v953_v2, %v1120_v43  ;;  %v1571_v29 = vsel %vm1556_vm8, %v1538_v33, %v6571_v17 }
 0x573   :  { %v2643_v53 = vcombine.low %v2635_v41, %v2642_v22 }
 0x575   :  { %v960_v42 = vpop.permute.xlu0 %959  ;;  %v6576_v48 = vpop.permute.xlu1 %966  ;;  %5579 = vmatprep.mubr.msk.f32.mxu1 %vm2987_vm6, %v2643_v53 }
 0x579   :  { %v1124_v54 = vpop.permute.xlu0 %1123  ;;  %v6579_v49 = vpop.permute.xlu1 %1127 }
 0x57a   :  { %v1380_v34 = vsel %vm807_vm12, %v960_v42, %v1124_v54 }
 0x57d   :  { %v1240_v52 = vpop.permute.xlu0 %1239  ;;  %v1244_v63 = vpop.permute.xlu1 %1243 }
 0x57e   :  { %v1410_v59 = vsel %vm1393_vm0, %v1377_v50, %v1240_v52  ;;  %v1411_v13 = vsel %vm1393_vm0, %v1378_v10, %v1244_v63  ;;  %v1376_v52 = vsel %vm807_vm12, %v6440_v0, %v6479_v7 }
 0x57f   :  { %v1442_v14 = vsel %vm72_vm1, %v1410_v59, %v946_v31  ;;  %v1443_v12 = vsel %vm72_vm1, %v1411_v13, %v953_v2  ;;  %v1409_v58 = vsel %vm1393_vm0, %v1376_v52, %v6523_v8 }
 0x580   :  { %v1474_v55 = vsel %vm814_vm13, %v1442_v14, %v1116_v44  ;;  %v1475_v47 = vsel %vm814_vm13, %v1443_v12, %v1120_v43  ;;  %v1441_v13 = vsel %vm72_vm1, %v1409_v58, %v6543_v1  ;;  %v1975_v1 = vcombine.high %v6561_v20, %v6561_v20 }
 0x581   :  { %v1507_v11 = vsel %vm1490_vm14, %v1474_v55, %v1244_v63  ;;  %v1248_v46 = vpop.permute.xlu0 %1247  ;;  %v1326_v51 = vpop.permute.xlu1 %1325 }
 0x582   :  { %v1412_v57 = vsel %vm1393_vm0, %v1379_v24, %v1248_v46  ;;  %v1508_v5 = vsel %vm1490_vm14, %v1475_v47, %v1248_v46  ;;  %v1540_v62 = vsel %vm1523_vm15, %v1507_v11, %v953_v2  ;;  %v1604_v44 = vsel %vm1589_vm7, %v1571_v29, %v1326_v51 }
 0x583   :  { %v1444_v16 = vsel %vm72_vm1, %v1412_v57, %v960_v42  ;;  %v1541_v4 = vsel %vm1523_vm15, %v1508_v5, %v960_v42  ;;  %v1573_v31 = vsel %vm1556_vm8, %v1540_v62, %v1120_v43  ;;  %v1982_v25 = vrot.slane %v1604_v44, %v6031_v27 }
 0x584   :  { %v1476_v26 = vsel %vm814_vm13, %v1444_v16, %v1124_v54  ;;  %v1574_v45 = vsel %vm1556_vm8, %v1541_v4, %v1124_v54  ;;  %v1606_v32 = vsel %vm1589_vm7, %v1573_v31, %v1248_v46  ;;  %v1960_v42 = vcombine.high %v6554_v9, %v6554_v9 }
 0x585   :  { %v1252_v23 = vpop.permute.xlu0 %1251  ;;  %v6606_v28 = vpop.permute.xlu1 %1255  ;;  %v2028_v19 = vrot.slane %v1606_v32, %v6031_v27  ;;  %v1983_v54 = vcombine.high %v1982_v25, %v1982_v25  ;;  %v1473_v24 = vsel %vm814_vm13, %v1441_v13, %v6571_v17  ;;  %v1990_v57 = vrot.slane %v1982_v25, %v6031_v27 }
 0x586   :  { %v1509_v3 = vsel %vm1490_vm14, %v1476_v26, %v1252_v23  ;;  %v1607_v18 = vsel %vm1589_vm7, %v1574_v45, %v1252_v23  ;;  %v1413_v37 = vsel %vm1393_vm0, %v1380_v34, %v1252_v23  ;;  %v1974_v38 = vrot.slane %v1960_v42, %v6031_v27 }
 0x587   :  { %v1542_v15 = vsel %vm1523_vm15, %v1509_v3, %v6576_v48  ;;  %v2051_v35 = vrot.slane %v1607_v18, %v6031_v27  ;;  %v2029_v41 = vcombine.high %v2028_v19, %v2028_v19  ;;  %v2036_v22 = vrot.slane %v2028_v19, %v6031_v27 }
 0x588   :  { %v1575_v2 = vsel %vm1556_vm8, %v1542_v15, %v6579_v49  ;;  %v1445_v63 = vsel %vm72_vm1, %v1413_v37, %v6576_v48  ;;  %v1997_v11 = vrot.slane %v1983_v54, %v6031_v27  ;;  %v1506_v46 = vsel %vm1490_vm14, %v1473_v24, %v1326_v51 }
 0x589   :  { %v1337_v60 = vpop.permute.xlu0 %1336  ;;  %v6617_v6 = vpop.permute.xlu1 %973  ;;  %v1608_v36 = vsel %vm1589_vm7, %v1575_v2, %v6606_v28  ;;  %v2052_v56 = vcombine.high %v2051_v35, %v2051_v35  ;;  %v2059_v50 = vrot.slane %v2051_v35, %v6031_v27  ;;  %v2043_v14 = vrot.slane %v2029_v41, %v6031_v27 }
 0x58a   :  { %v2074_v61 = vrot.slane %v1608_v36, %v6031_v27  ;;  %v2044_v12 = vcombine.high %v2036_v22, %v2036_v22  ;;  %v1477_v9 = vsel %vm814_vm13, %v1445_v63, %v6579_v49  ;;  %v1539_v26 = vsel %vm1523_vm15, %v1506_v46, %v1337_v60 }
 0x58b   :  { %v2066_v0 = vrot.slane %v2052_v56, %v6031_v27  ;;  %v2067_v7 = vcombine.high %v2059_v50, %v2059_v50  ;;  %v2693_v16 = vcombine.low %v2036_v22, %v2043_v14  ;;  %v1510_v62 = vsel %vm1490_vm14, %v1477_v9, %v6606_v28 }
 0x58c   :  { %v2075_v43 = vcombine.high %v2074_v61, %v2074_v61  ;;  %v6661_v47 = vrot.slane %v2074_v61, %v6031_v27  ;;  %v2694_v39 = vcombine.low %v2044_v12, %v2059_v50  ;;  %v2644_v3 = vcombine.low %v1974_v38, %v1975_v1 }
 0x58d   :  { %v6630_v40 = vpop.permute.xlu0 %1131  ;;  %v1348_v21 = vpop.permute.xlu1 %1347  ;;  %v2695_v20 = vcombine.low %v2066_v0, %v2067_v7  ;;  %v2645_v30 = vcombine.low %v1990_v57, %v1997_v11  ;;  %v1381_v31 = vsel %vm807_vm12, %v6576_v48, %v6579_v49  ;;  %v1543_v45 = vsel %vm1523_vm15, %v1510_v62, %v6617_v6 }
 0x58e   :  { %v2089_v59 = vrot.slane %v2075_v43, %v6031_v27  ;;  %v1572_v23 = vsel %vm1556_vm8, %v1539_v26, %v1348_v21  ;;  %v2703_v60 = vrot.slane %v2693_v16, %v6031_v27  ;;  %v1998_v33 = vcombine.high %v1990_v57, %v1990_v57 }
 0x58f   :  { %v2710_v32 = vrot.slane %v2694_v39, %v6031_v27  ;;  %v1576_v36 = vsel %vm1556_vm8, %v1543_v45, %v6630_v40  ;;  %v2717_v61 = vrot.slane %v2695_v20, %v6031_v27  ;;  %v2661_v19 = vrot.slane %v2645_v30, %v6031_v27 }
 0x590   :  { %v2696_v5 = vcombine.low %v6661_v47, %v2089_v59  ;;  %v1414_v21 = vsel %vm1393_vm0, %v1381_v31, %v6606_v28  ;;  %v1382_v41 = vsel %vm807_vm12, %v6617_v6, %v6630_v40  ;;  %v2654_v50 = vrot.slane %v2644_v3, %v6031_v27 }
 0x591   :  { %v6637_v53 = vpop.permute.xlu0 %980  ;;  %v6640_v10 = vpop.permute.xlu1 %987  ;;  %v1446_v43 = vsel %vm72_vm1, %v1414_v21, %v6617_v6  ;;  %v2725_v63 = vcombine.low %v2703_v60, %v2710_v32  ;;  %v2090_v11 = vcombine.high %v6661_v47, %v6661_v47 }
 0x592   :  { %v2724_v15 = vrot.slane %v2696_v5, %v6031_v27  ;;  %v1478_v28 = vsel %vm814_vm13, %v1446_v43, %v6630_v40  ;;  %v2676_v59 = vcombine.low %v2654_v50, %v2661_v19 }
 0x593   :  { %v2733_v24 = vrot.slane %v2725_v63, %v6031_v27 }
 0x594   :  { %v2726_v37 = vcombine.low %v2717_v61, %v2724_v15  ;;  %v2684_v57 = vrot.slane %v2676_v59, %v6031_v27 }
 0x595   :  { %v6655_v55 = vpop.permute.xlu0 %1135  ;;  %v6663_v8 = vpop.permute.xlu1 %1139 }
 0x596   :  { %v2740_v14 = vrot.slane %v2726_v37, %v6031_v27  ;;  %v1383_v46 = vsel %vm807_vm12, %v6637_v53, %v6655_v55  ;;  %v1384_v5 = vsel %vm807_vm12, %v6640_v10, %v6663_v8 }
 0x598   :  { %v2741_v62 = vcombine.low %v2733_v24, %v2740_v14 }
 0x599   :  { %v1260_v4 = vpop.permute.xlu0 %1259  ;;  %v1356_v17 = vpop.permute.xlu1 %1355 }
 0x59a   :  { %v1605_v51 = vsel %vm1589_vm7, %v1572_v23, %v1356_v17  ;;  %v1609_v18 = vsel %vm1589_vm7, %v1576_v36, %v1260_v4  ;;  %v1415_v52 = vsel %vm1393_vm0, %v1382_v41, %v1260_v4  ;;  %v1511_v58 = vsel %vm1490_vm14, %v1478_v28, %v1260_v4 }
 0x59b   :  { %v2005_v2 = vrot.slane %v1605_v51, %v6031_v27  ;;  %v2097_v22 = vrot.slane %v1609_v18, %v6031_v27  ;;  %v1447_v12 = vsel %vm72_vm1, %v1415_v52, %v6637_v53  ;;  %v1544_v9 = vsel %vm1523_vm15, %v1511_v58, %v6637_v53 }
 0x59c   :  { %v1479_v16 = vsel %vm814_vm13, %v1447_v12, %v6655_v55  ;;  %v1577_v53 = vsel %vm1556_vm8, %v1544_v9, %v6655_v55 }
 0x59d   :  { %v6690_v29 = vpop.permute.xlu0 %994  ;;  %v2006_v48 = vcombine.high %v2005_v2, %v2005_v2  ;;  %v2013_v49 = vrot.slane %v2005_v2, %v6031_v27  ;;  %v6694_v44 = vpop.permute.xlu1 %1001  ;;  %v2098_v0 = vcombine.high %v2097_v22, %v2097_v22  ;;  %v2105_v40 = vrot.slane %v2097_v22, %v6031_v27 }
 0x59f   :  { %v2020_v35 = vrot.slane %v2006_v48, %v6031_v27  ;;  %v2021_v34 = vcombine.high %v2013_v49, %v2013_v49  ;;  %v2646_v25 = vcombine.low %v1998_v33, %v2013_v49  ;;  %v2112_v26 = vrot.slane %v2098_v0, %v6031_v27 }
 0x5a0   :  { %v2113_v4 = vcombine.high %v2105_v40, %v2105_v40  ;;  %v6740_v47 = vcombine.low %v2090_v11, %v2105_v40 }
 0x5a1   :  { %v6707_v56 = vpop.permute.xlu0 %1008  ;;  %v2647_v42 = vcombine.low %v2020_v35, %v2021_v34  ;;  %v1144_v54 = vpop.permute.xlu1 %1143  ;;  %v2668_v13 = vrot.slane %v2646_v25, %v6031_v27 }
 0x5a2   :  { %v1385_v55 = vsel %vm807_vm12, %v6690_v29, %v1144_v54  ;;  %v2743_v28 = vcombine.low %v2112_v26, %v2113_v4  ;;  %v2752_v24 = vrot.slane %v6740_v47, %v6031_v27 }
 0x5a3   :  { %v2675_v6 = vrot.slane %v2647_v42, %v6031_v27 }
 0x5a5   :  { %v6720_v7 = vpop.permute.xlu0 %1147  ;;  %v2677_v38 = vcombine.low %v2668_v13, %v2675_v6  ;;  %v6724_v1 = vpop.permute.xlu1 %1151 }
 0x5a7   :  { %v2691_v39 = vrot.slane %v2677_v38, %v6031_v27 }
 0x5a9   :  { %v1264_v20 = vpop.permute.xlu0 %1263  ;;  %v1268_v30 = vpop.permute.xlu1 %1267  ;;  %v2692_v51 = vcombine.low %v2684_v57, %v2691_v39 }
 0x5aa   :  { %v1416_v23 = vsel %vm1393_vm0, %v1383_v46, %v1264_v20  ;;  %v1512_v17 = vsel %vm1490_vm14, %v1479_v16, %v1264_v20  ;;  %v1610_v3 = vsel %vm1589_vm7, %v1577_v53, %v1264_v20  ;;  %v1417_v2 = vsel %vm1393_vm0, %v1384_v5, %v1268_v30 }
 0x5ab   :  { %v1448_v31 = vsel %vm72_vm1, %v1416_v23, %v6640_v10  ;;  %v1545_v15 = vsel %vm1523_vm15, %v1512_v17, %v6640_v10  ;;  %v2120_v45 = vrot.slane %v1610_v3, %v6031_v27  ;;  %v1449_v32 = vsel %vm72_vm1, %v1417_v2, %v6690_v29  ;;  %5580 = vmatmul.mubr.msk.f32.gmra.mrb[4].mxu1 %vm2987_vm6, %v2692_v51 }
 0x5ac   :  { %v1480_v60 = vsel %vm814_vm13, %v1448_v31, %v6663_v8  ;;  %v1578_v33 = vsel %vm1556_vm8, %v1545_v15, %v6663_v8  ;;  %5582 = vmatprep.mubr.msk.f32.mxu1 %vm2987_vm6, %v2741_v62  ;;  %v1481_v21 = vsel %vm814_vm13, %v1449_v32, %v1144_v54  ;;  %v2759_v5 = vrot.slane %v2743_v28, %v6031_v27 }
 0x5ad   :  { %v2121_v36 = vcombine.high %v2120_v45, %v2120_v45  ;;  %v2128_v10 = vrot.slane %v2120_v45, %v6031_v27  ;;  %v1513_v18 = vsel %vm1490_vm14, %v1480_v60, %v1268_v30  ;;  %v1611_v48 = vsel %vm1589_vm7, %v1578_v33, %v1268_v30  ;;  %v1272_v49 = vpop.permute.xlu0 %1271  ;;  %v1276_v35 = vpop.permute.xlu1 %1275 }
 0x5ae   :  { %v1546_v61 = vsel %vm1523_vm15, %v1513_v18, %v6690_v29  ;;  %v2143_v8 = vrot.slane %v1611_v48, %v6031_v27  ;;  %v1418_v19 = vsel %vm1393_vm0, %v1385_v55, %v1272_v49  ;;  %v1514_v43 = vsel %vm1490_vm14, %v1481_v21, %v1272_v49 }
 0x5af   :  { %v2135_v34 = vrot.slane %v2121_v36, %v6031_v27  ;;  %v2136_v25 = vcombine.high %v2128_v10, %v2128_v10  ;;  %v1450_v37 = vsel %vm72_vm1, %v1418_v19, %v6694_v44  ;;  %v1547_v29 = vsel %vm1523_vm15, %v1514_v43, %v6694_v44 }
 0x5b0   :  { %v2144_v41 = vcombine.high %v2143_v8, %v2143_v8  ;;  %v2151_v22 = vrot.slane %v2143_v8, %v6031_v27  ;;  %v1579_v50 = vsel %vm1556_vm8, %v1546_v61, %v1144_v54  ;;  %v1482_v42 = vsel %vm814_vm13, %v1450_v37, %v6720_v7 }
 0x5b1   :  { %v1612_v52 = vsel %vm1589_vm7, %v1579_v50, %v1272_v49  ;;  %v1580_v63 = vsel %vm1556_vm8, %v1547_v29, %v6720_v7  ;;  %v1280_v58 = vpop.permute.xlu0 %1279  ;;  %v2744_v6 = vcombine.low %v2128_v10, %v2135_v34  ;;  %v1515_v12 = vsel %vm1490_vm14, %v1482_v42, %v1276_v35 }
 0x5b2   :  { %v2166_v59 = vrot.slane %v1612_v52, %v6031_v27  ;;  %v6785_v13 = vpop.permute.xlu1 %1015  ;;  %v2158_v14 = vrot.slane %v2144_v41, %v6031_v27  ;;  %v1613_v54 = vsel %vm1589_vm7, %v1580_v63, %v1276_v35  ;;  %v2159_v0 = vcombine.high %v2151_v22, %v2151_v22 }
 0x5b3   :  { %v2745_v40 = vcombine.low %v2136_v25, %v2151_v22  ;;  %v1548_v11 = vsel %vm1523_vm15, %v1515_v12, %v6707_v56  ;;  %v2189_v46 = vrot.slane %v1613_v54, %v6031_v27  ;;  %v1386_v16 = vsel %vm807_vm12, %v6694_v44, %v6720_v7 }
 0x5b4   :  { %v2167_v9 = vcombine.high %v2166_v59, %v2166_v59  ;;  %v2174_v38 = vrot.slane %v2166_v59, %v6031_v27  ;;  %v1581_v26 = vsel %vm1556_vm8, %v1548_v11, %v6724_v1  ;;  %v2766_v47 = vrot.slane %v2744_v6, %v6031_v27 }
 0x5b5   :  { %v6796_v57 = vpop.permute.xlu0 %1022  ;;  %v2190_v20 = vcombine.high %v2189_v46, %v2189_v46  ;;  %v2197_v53 = vrot.slane %v2189_v46, %v6031_v27  ;;  %v1614_v23 = vsel %vm1589_vm7, %v1581_v26, %v1280_v58  ;;  %v2773_v17 = vrot.slane %v2745_v40, %v6031_v27 }
 0x5b6   :  { %v2181_v39 = vrot.slane %v2167_v9, %v6031_v27  ;;  %v2182_v62 = vcombine.high %v2174_v38, %v2174_v38  ;;  %v1156_v4 = vpop.permute.xlu1 %1155  ;;  %v2791_v3 = vcombine.low %v2158_v14, %v2159_v0  ;;  %v2212_v44 = vrot.slane %v1614_v23, %v6031_v27 }
 0x5b7   :  { %v1419_v7 = vsel %vm1393_vm0, %v1386_v16, %v1276_v35  ;;  %v2204_v51 = vrot.slane %v2190_v20, %v6031_v27  ;;  %v2205_v31 = vcombine.high %v2197_v53, %v2197_v53  ;;  %v2774_v60 = vcombine.low %v2752_v24, %v2759_v5 }
 0x5b8   :  { %v2792_v30 = vcombine.low %v2174_v38, %v2181_v39  ;;  %v2793_v15 = vcombine.low %v2182_v62, %v2197_v53  ;;  %v2213_v36 = vcombine.high %v2212_v44, %v2212_v44  ;;  %v1451_v10 = vsel %vm72_vm1, %v1419_v7, %v6707_v56 }
 0x5b9   :  { %v1160_v45 = vpop.permute.xlu0 %1159  ;;  %v2794_v33 = vcombine.low %v2204_v51, %v2205_v31  ;;  %v2775_v18 = vcombine.low %v2766_v47, %v2773_v17  ;;  %v2801_v48 = vrot.slane %v2791_v3, %v6031_v27  ;;  %v2782_v8 = vrot.slane %v2774_v60, %v6031_v27 }
 0x5ba   :  { %v2808_v2 = vrot.slane %v2792_v30, %v6031_v27  ;;  %v1030_v55 = vpop.permute.xlu1 %1029  ;;  %v2815_v32 = vrot.slane %v2793_v15, %v6031_v27  ;;  %v1483_v34 = vsel %vm814_vm13, %v1451_v10, %v6724_v1  ;;  %v2227_v25 = vrot.slane %v2213_v36, %v6031_v27 }
 0x5bb   :  { %v2822_v61 = vrot.slane %v2794_v33, %v6031_v27  ;;  %v2789_v19 = vrot.slane %v2775_v18, %v6031_v27  ;;  %v1387_v22 = vsel %vm807_vm12, %v6707_v56, %v6724_v1  ;;  %v2220_v29 = vrot.slane %v2212_v44, %v6031_v27 }
 0x5bc   :  { %v2823_v35 = vcombine.low %v2801_v48, %v2808_v2  ;;  %v1420_v52 = vsel %vm1393_vm0, %v1387_v22, %v1280_v58  ;;  %v1516_v42 = vsel %vm1490_vm14, %v1483_v34, %v1280_v58  ;;  %v1388_v1 = vsel %vm807_vm12, %v6785_v13, %v1156_v4 }
 0x5bd   :  { %v6817_v49 = vpop.permute.xlu0 %1036  ;;  %v2824_v37 = vcombine.low %v2815_v32, %v2822_v61  ;;  %v2790_v43 = vcombine.low %v2782_v8, %v2789_v19  ;;  %v2840_v59 = vcombine.low %v2220_v29, %v2227_v25  ;;  %v1452_v14 = vsel %vm72_vm1, %v1420_v52, %v6785_v13 }
 0x5be   :  { %v6822_v21 = vpop.permute.xlu1 %1043  ;;  %v2831_v41 = vrot.slane %v2823_v35, %v6031_v27  ;;  %v1549_v56 = vsel %vm1523_vm15, %v1516_v42, %v6785_v13  ;;  %v2228_v54 = vcombine.high %v2220_v29, %v2220_v29  ;;  %v1484_v58 = vsel %vm814_vm13, %v1452_v14, %v1156_v4 }
 0x5bf   :  { %v2838_v28 = vrot.slane %v2824_v37, %v6031_v27  ;;  %5583 = vmatmul.mubr.msk.f32.gmra.mrb[6].mxu1 %vm2987_vm6, %v2790_v43  ;;  %v1582_v0 = vsel %vm1556_vm8, %v1549_v56, %v1156_v4  ;;  %v1389_v40 = vsel %vm807_vm12, %v6796_v57, %v1160_v45  ;;  %v6850_v38 = vrot.slane %v2840_v59, %v6031_v27 }
 0x5c0   :  { %v7944_v32 = vmov 0.0  }
 0x5c1   :  { %v1164_v50 = vpop.permute.xlu0 %1163  ;;  %v2839_v6 = vcombine.low %v2831_v41, %v2838_v28  ;;  %v6882_v36 = vrot.slane %v7944_v32, 7 }
 0x5c2   :  { %v1168_v63 = vpop.permute.xlu1 %1167  ;;  %v1390_v46 = vsel %vm807_vm12, %v1030_v55, %v1164_v50 }
 0x5c3   :  { %5585 = vmatprep.mubr.msk.f32.mxu1 %vm2987_vm6, %v2839_v6  ;;  %v1391_v62 = vsel %vm807_vm12, %v6817_v49, %v1168_v63 }
 0x5c5   :  { %v6843_v12 = vpop.permute.xlu0 %1171 }
 0x5c6   :  { %v1284_v9 = vpop.permute.xlu1 %1283  ;;  %v1392_v51 = vsel %vm807_vm12, %v6822_v21, %v6843_v12  ;;  %vm5090_vm12 = vcmask 326656  }
 0x5c7   :  { %v1421_v24 = vsel %vm1393_vm0, %v1388_v1, %v1284_v9  ;;  %v1517_v13 = vsel %vm1490_vm14, %v1484_v58, %v1284_v9  ;;  %v1615_v11 = vsel %vm1589_vm7, %v1582_v0, %v1284_v9 }
 0x5c8   :  { %v1453_v5 = vsel %vm72_vm1, %v1421_v24, %v6796_v57  ;;  %v1550_v16 = vsel %vm1523_vm15, %v1517_v13, %v6796_v57  ;;  %v2235_v39 = vrot.slane %v1615_v11, %v6031_v27 }
 0x5c9   :  { %v1288_v26 = vpop.permute.xlu0 %1287  ;;  %v1485_v4 = vsel %vm814_vm13, %v1453_v5, %v1160_v45  ;;  %v1583_v47 = vsel %vm1556_vm8, %v1550_v16, %v1160_v45 }
 0x5ca   :  { %v2236_v20 = vcombine.high %v2235_v39, %v2235_v39  ;;  %v2243_v53 = vrot.slane %v2235_v39, %v6031_v27  ;;  %v1422_v23 = vsel %vm1393_vm0, %v1389_v40, %v1288_v26  ;;  %v1518_v17 = vsel %vm1490_vm14, %v1485_v4, %v1288_v26  ;;  %v1292_v3 = vpop.permute.xlu1 %1291 }
 0x5cb   :  { %v1454_v57 = vsel %vm72_vm1, %v1422_v23, %v1030_v55  ;;  %v1551_v30 = vsel %vm1523_vm15, %v1518_v17, %v1030_v55  ;;  %v1616_v44 = vsel %vm1589_vm7, %v1583_v47, %v1288_v26  ;;  %v1423_v7 = vsel %vm1393_vm0, %v1390_v46, %v1292_v3 }
 0x5cc   :  { %v2250_v31 = vrot.slane %v2236_v20, %v6031_v27  ;;  %v2251_v15 = vcombine.high %v2243_v53, %v2243_v53  ;;  %v2258_v45 = vrot.slane %v1616_v44, %v6031_v27  ;;  %v1486_v2 = vsel %vm814_vm13, %v1454_v57, %v1164_v50 }
 0x5cd   :  { %v1584_v60 = vsel %vm1556_vm8, %v1551_v30, %v1164_v50  ;;  %v1455_v55 = vsel %vm72_vm1, %v1423_v7, %v6817_v49  ;;  %v1296_v33 = vpop.permute.xlu0 %1295  ;;  %v2841_v10 = vcombine.low %v2228_v54, %v2243_v53  ;;  %v1519_v19 = vsel %vm1490_vm14, %v1486_v2, %v1292_v3 }
 0x5ce   :  { %v6884_v18 = vcombine.low %v2250_v31, %v2251_v15  ;;  %v2259_v48 = vcombine.high %v2258_v45, %v2258_v45  ;;  %v2266_v61 = vrot.slane %v2258_v45, %v6031_v27  ;;  %v1300_v8 = vpop.permute.xlu1 %1299  ;;  %v1617_v35 = vsel %vm1589_vm7, %v1584_v60, %v1292_v3 }
 0x5cf   :  { %v1424_v34 = vsel %vm1393_vm0, %v1391_v62, %v1296_v33  ;;  %v1487_v25 = vsel %vm814_vm13, %v1455_v55, %v1168_v63  ;;  %v1552_v41 = vsel %vm1523_vm15, %v1519_v19, %v6817_v49  ;;  %v2281_v22 = vrot.slane %v1617_v35, %v6031_v27 }
 0x5d0   :  { %v2273_v37 = vrot.slane %v2259_v48, %v6031_v27  ;;  %v2274_v43 = vcombine.high %v2266_v61, %v2266_v61  ;;  %v1456_v29 = vsel %vm72_vm1, %v1424_v34, %v6822_v21  ;;  %v1520_v50 = vsel %vm1490_vm14, %v1487_v25, %v1296_v33 }
 0x5d1   :  { %v1585_v28 = vsel %vm1556_vm8, %v1552_v41, %v1168_v63  ;;  %v1314_v52 = vpop.permute.xlu0 %1313  ;;  %v1425_v42 = vsel %vm1393_vm0, %v1392_v51, %v1300_v8  ;;  %v2282_v6 = vcombine.high %v2281_v22, %v2281_v22  ;;  %v2289_v14 = vrot.slane %v2281_v22, %v6031_v27 }
 0x5d2   :  { %v2843_v59 = vcombine.low %v2266_v61, %v2273_v37  ;;  %v1553_v56 = vsel %vm1523_vm15, %v1520_v50, %v6822_v21  ;;  %v1322_v49 = vpop.permute.xlu1 %1321  ;;  %v1618_v1 = vsel %vm1589_vm7, %v1585_v28, %v1296_v33  ;;  %v1457_v58 = vsel %vm72_vm1, %v1425_v42, %v1314_v52 }
 0x5d3   :  { %v1586_v54 = vsel %vm1556_vm8, %v1553_v56, %v6843_v12  ;;  %v1488_v63 = vsel %vm814_vm13, %v1456_v29, %v6843_v12  ;;  %v2857_v0 = vrot.slane %v2841_v10, %v6031_v27  ;;  %v2296_v9 = vrot.slane %v2282_v6, %v6031_v27 }
 0x5d4   :  { %v2871_v40 = vrot.slane %v2843_v59, %v6031_v27  ;;  %v2297_v24 = vcombine.high %v2289_v14, %v2289_v14  ;;  %v2889_v13 = vcombine.low %v2274_v43, %v2289_v14  ;;  %v2304_v21 = vrot.slane %v1618_v1, %v6031_v27 }
 0x5d5   :  { %v1619_v11 = vsel %vm1589_vm7, %v1586_v54, %v1300_v8  ;;  %v1521_v46 = vsel %vm1490_vm14, %v1488_v63, %v1300_v8  ;;  %v1330_v5 = vpop.permute.xlu0 %1329  ;;  %v1489_v62 = vsel %vm814_vm13, %v1457_v58, %v1322_v49  ;;  %v2864_v31 = vrot.slane %v6884_v18, %v6031_v27 }
 0x5d6   :  { %v2890_v16 = vcombine.low %v2296_v9, %v2297_v24  ;;  %v2327_v39 = vrot.slane %v1619_v11, %v6031_v27  ;;  %v1554_v12 = vsel %vm1523_vm15, %v1521_v46, %v1314_v52  ;;  %v1344_v26 = vpop.permute.xlu1 %1343  ;;  %v2305_v4 = vcombine.high %v2304_v21, %v2304_v21 }
 0x5d7   :  { %v2312_v47 = vrot.slane %v2304_v21, %v6031_v27  ;;  %v1587_v20 = vsel %vm1556_vm8, %v1554_v12, %v1322_v49  ;;  %v1522_v53 = vsel %vm1490_vm14, %v1489_v62, %v1330_v5  ;;  %v2872_v55 = vcombine.low %v6850_v38, %v2857_v0  ;;  %v6971_v62 = vld [vmem:[%s7933_s4] ss:$0 sm:$0xff]  ;;  %s5699_s4 = smov 24  }
 0x5d8   :  { %v2328_v23 = vcombine.high %v2327_v39, %v2327_v39  ;;  %v2335_v17 = vrot.slane %v2327_v39, %v6031_v27  ;;  %v1620_v3 = vsel %vm1589_vm7, %v1587_v20, %v1330_v5  ;;  %v1555_v57 = vsel %vm1523_vm15, %v1522_v53, %v1344_v26 }
 0x5d9   :  { %v2319_v30 = vrot.slane %v2305_v4, %v6031_v27  ;;  %v2320_v44 = vcombine.high %v2312_v47, %v2312_v47  ;;  %v2350_v7 = vrot.slane %v1620_v3, %v6031_v27  ;;  %v1352_v51 = vpop.permute.xlu0 %1351  ;;  %v2899_v8 = vrot.slane %v2889_v13, %v6031_v27 }
 0x5da   :  { %v2342_v15 = vrot.slane %v2328_v23, %v6031_v27  ;;  %v2343_v45 = vcombine.high %v2335_v17, %v2335_v17  ;;  %v1588_v2 = vsel %vm1556_vm8, %v1555_v57, %v1352_v51  ;;  %v1360_v60 = vpop.permute.xlu1 %1359  ;;  %v2873_v35 = vcombine.low %v2864_v31, %v2871_v40 }
 0x5db   :  { %v2891_v33 = vcombine.low %v2312_v47, %v2319_v30  ;;  %v2892_v10 = vcombine.low %v2320_v44, %v2335_v17  ;;  %v2351_v48 = vcombine.high %v2350_v7, %v2350_v7  ;;  %v2358_v61 = vrot.slane %v2350_v7, %v6031_v27 }
 0x5dc   :  { %v1621_v19 = vsel %vm1589_vm7, %v1588_v2, %v1360_v60  ;;  %v4571_v18 = vsel %vm770_vm11, 0.0, %v6882_v36  ;;  %v2938_v37 = vcombine.low %v2342_v15, %v2343_v45  ;;  %v2880_v41 = vrot.slane %v2872_v55, %v6031_v27 }
 0x5dd   :  { %v2913_v34 = vrot.slane %v2891_v33, %v6031_v27  ;;  %v2920_v25 = vrot.slane %v2892_v10, %v6031_v27  ;;  %v2365_v38 = vrot.slane %v2351_v48, %v6031_v27  ;;  %v2373_v43 = vrot.slane %v1621_v19, %v6031_v27 }
 0x5de   :  { %v2887_v22 = vrot.slane %v2873_v35, %v6031_v27  ;;  %v2906_v29 = vrot.slane %v2890_v16, %v6031_v27  ;;  %v2366_v50 = vcombine.high %v2358_v61, %v2358_v61  ;;  %vm4588_vm1 = vcmask 1041408  }
 0x5df   :  { %v2939_v28 = vcombine.low %v2358_v61, %v2365_v38  ;;  %v2922_v52 = vcombine.low %v2913_v34, %v2920_v25  ;;  %v2374_v36 = vcombine.high %v2373_v43, %v2373_v43  ;;  %v2381_v42 = vrot.slane %v2373_v43, %v6031_v27 }
 0x5e0   :  { %v2888_v59 = vcombine.low %v2880_v41, %v2887_v22  ;;  %v2921_v6 = vcombine.low %v2899_v8, %v2906_v29  ;;  %v6947_v49 = vsel %vm4588_vm1, %v4571_v18, 0.0  ;;  %v2948_v24 = vrot.slane %v2938_v37, %v6031_v27 }
 0x5e1   :  { %v2955_v14 = vrot.slane %v2939_v28, %v6031_v27  ;;  %v2936_v56 = vrot.slane %v2922_v52, %v6031_v27  ;;  %v2388_v1 = vrot.slane %v2374_v36, %v6031_v27  ;;  %v2389_v54 = vcombine.high %v2381_v42, %v2381_v42  ;;  %4905 = vrot.lane.b32.xlu1 %v6947_v49, %s5695_s3 }
 0x5e2   :  { %v2940_v58 = vcombine.low %v2366_v50, %v2381_v42  ;;  %5586 = vmatmul.mubr.msk.f32.gmra.mrb[8].mxu1 %vm2987_vm6, %v2888_v59  ;;  %v2929_v63 = vrot.slane %v2921_v6, %v6031_v27  ;;  %v4621_v0 = vrot.slane %v6947_v49, 1  ;;  %v7946_v13 = vrot.slane %v6947_v49, 2 }
 0x5e3   :  { %v2941_v40 = vcombine.low %v2388_v1, %v2389_v54  ;;  %v2970_v46 = vcombine.low %v2948_v24, %v2955_v14  ;;  %vm5056_vm8 = vcmask 195584   ;;  %vm5107_vm13 = vcmask 392192  }
 0x5e4   :  { %v2937_v9 = vcombine.low %v2929_v63, %v2936_v56  ;;  %4636 = vrot.lane.b32.xlu0 %v4621_v0, %s5696_s27  ;;  %v2962_v21 = vrot.slane %v2940_v58, %v6031_v27  ;;  %vm5141_vm0 = vcmask 523264   ;;  %vm7950_vm14 = vcmask 1046534  }
 0x5e5   :  { %v2969_v11 = vrot.slane %v2941_v40, %v6031_v27  ;;  %4950 = vrot.lane.b32.xlu1 %v4621_v0, %s5697_s28  ;;  %v2978_v16 = vrot.slane %v2970_v46, %v6031_v27 }
 0x5e6   :  { %5588 = vmatprep.mubr.msk.f32.mxu1 %vm2987_vm6, %v2937_v9 }
 0x5e7   :  { %v2971_v5 = vcombine.low %v2962_v21, %v2969_v11 }
 0x5e8   :  { %4696 = vrot.lane.b32.xlu0 %v7946_v13, %s5698_s29 }
 0x5e9   :  { %v2985_v39 = vrot.slane %v2971_v5, %v6031_v27 }
 0x5eb   :  { %v2986_v12 = vcombine.low %v2978_v16, %v2985_v39 }
 0x5ed   :  { %5589 = vmatmul.mubr.msk.f32.gmra.mrb[10].mxu1 %vm2987_vm6, %v2986_v12  ;;  %vm5073_vm6 = vcmask 261120  }
 0x625   :  { %v5575_v26 = vpop.f32.mrb[0].mxu1 }
 0x626   :  { %v3087_v4 = vadd.f32 %v5575_v26, %v6971_v62  ;;  %v3081_v47 = vpop.f32.mrb[1].mxu1 }
 0x627   :  { %v3082_v20 = vadd.f32 %v6971_v62, %v3081_v47 }
 0x628   :  { %v3141_v53 = vmax.f32 %v3087_v4, 0.0 }
 0x629   :  { %v3140_v23 = vmax.f32 %v3082_v20, 0.0 }
 0x62a   :  { %v3212_v17 = vcombine.high %v3141_v53, %v3141_v53  ;;  %v3219_v3 = vrot.slane %v3141_v53, %v6031_v27 }
 0x62b   :  { %v3164_v57 = vcombine.high %v3140_v23, %v3140_v23  ;;  %v3171_v30 = vrot.slane %v3140_v23, %v6031_v27 }
 0x62c   :  { %v3226_v44 = vrot.slane %v3212_v17, %v6031_v27  ;;  %v3227_v7 = vcombine.high %v3219_v3, %v3219_v3  ;;  %v3235_v51 = vrot.slane %v3219_v3, %v6031_v27 }
 0x62d   :  { %v3178_v31 = vrot.slane %v3164_v57, %v6031_v27  ;;  %v3179_v15 = vcombine.high %v3171_v30, %v3171_v30  ;;  %v3187_v55 = vrot.slane %v3171_v30, %v6031_v27 }
 0x62e   :  { %v3249_v45 = vrot.slane %v3227_v7, %v6031_v27  ;;  %v3257_v2 = vcombine.high %v3235_v51, %v3235_v51  ;;  %v3228_v10 = vcombine.high %v3226_v44, %v3226_v44  ;;  %v3242_v50 = vrot.slane %v3226_v44, %v6031_v27 }
 0x62f   :  { %v3180_v60 = vcombine.high %v3178_v31, %v3178_v31  ;;  %v3201_v33 = vrot.slane %v3179_v15, %v6031_v27  ;;  %v3194_v61 = vrot.slane %v3178_v31, %v6031_v27 }
 0x630   :  { %v3781_v48 = vcombine.low %v3249_v45, %v3257_v2  ;;  %v6989_v43 = vrot.slane %v3228_v10, %v6031_v27 }
 0x631   :  { %v3208_v8 = vrot.slane %v3180_v60, %v6031_v27  ;;  %v3210_v19 = vcombine.high %v3201_v33, %v3201_v33  ;;  %v3736_v35 = vcombine.low %v3187_v55, %v3201_v33 }
 0x632   :  { %v3788_v18 = vrot.slane %v3781_v48, %v6031_v27  ;;  %v3796_v14 = vcombine.low %v3242_v50, %v6989_v43 }
 0x633   :  { %v3743_v34 = vrot.slane %v3736_v35, %v6031_v27  ;;  %v3751_v25 = vcombine.low %v3210_v19, %v3194_v61  ;;  %v5513_v37 = vcombine.high %v3194_v61, %v3208_v8 }
 0x634   :  { %v3795_v38 = vrot.slane %v3788_v18, %v6031_v27  ;;  %v3803_v11 = vrot.slane %v3796_v14, %v6031_v27 }
 0x635   :  { %v3750_v41 = vrot.slane %v3743_v34, %v6031_v27  ;;  %v3758_v22 = vrot.slane %v3751_v25, %v6031_v27  ;;  %v3773_v29 = vrot.slane %v5513_v37, %v6031_v27 }
 0x636   :  { %v4269_v28 = vsel %vm389_vm10, %v3795_v38, -inf  ;;  %v3810_v20 = vrot.slane %v3803_v11, %v6031_v27 }
 0x637   :  { %v4270_v52 = vrot.slane %v4269_v28, 4  ;;  %v3765_v36 = vrot.slane %v3758_v22, %v6031_v27  ;;  %v3780_v42 = vrot.slane %v3773_v29, %v6031_v27  ;;  %v4248_v59 = vsel %vm389_vm10, %v3750_v41, -inf }
 0x638   :  { %v4249_v6 = vrot.slane %v4248_v59, 4  ;;  %v4276_v31 = vsel %vm389_vm10, %v3810_v20, -inf  ;;  %v3258_v41 = vcombine.high %v6989_v43, %v6989_v43 }
 0x639   :  { %v4271_v56 = vmax.f32 %v4269_v28, %v4270_v52  ;;  %v4262_v1 = vsel %vm389_vm10, %v3780_v42, -inf  ;;  %v4255_v54 = vsel %vm389_vm10, %v3765_v36, -inf  ;;  %v4277_v8 = vrot.slane %v4276_v31, 4 }
 0x63a   :  { %v4263_v58 = vrot.slane %v4262_v1, 4  ;;  %v4250_v63 = vmax.f32 %v4248_v59, %v4249_v6  ;;  %v4256_v0 = vrot.slane %v4255_v54, 4 }
 0x63b   :  { %v4272_v40 = vrot.slane %v4271_v56, 2  ;;  %v4278_v36 = vmax.f32 %v4276_v31, %v4277_v8 }
 0x63c   :  { %v4264_v9 = vmax.f32 %v4262_v1, %v4263_v58  ;;  %v4251_v24 = vrot.slane %v4250_v63, 2  ;;  %v4257_v21 = vmax.f32 %v4255_v54, %v4256_v0 }
 0x63d   :  { %v4273_v46 = vmax.f32 %v4271_v56, %v4272_v40 }
 0x63e   :  { %v4252_v5 = vmax.f32 %v4250_v63, %v4251_v24  ;;  %v4258_v16 = vrot.slane %v4257_v21, 2  ;;  %v4265_v39 = vrot.slane %v4264_v9, 2 }
 0x63f   :  { %v4274_v12 = vrot.slane %v4273_v46, 1 }
 0x640   :  { %v4253_v26 = vrot.slane %v4252_v5, 1  ;;  %v4259_v4 = vmax.f32 %v4257_v21, %v4258_v16  ;;  %v4266_v47 = vmax.f32 %v4264_v9, %v4265_v39 }
 0x641   :  { %v4275_v53 = vmax.f32 %v4273_v46, %v4274_v12 }
 0x642   :  { %v4254_v23 = vmax.f32 %v4252_v5, %v4253_v26  ;;  %v4260_v17 = vrot.slane %v4259_v4, 1  ;;  %v4267_v3 = vrot.slane %v4266_v47, 1  ;;  %v4279_v5 = vrot.slane %v4278_v36, 2 }
 0x643   :  { %v5578_v57 = vpop.f32.mrb[2].mxu1  ;;  %v4476_v45 = vsel %vm1589_vm7, %v4275_v53, -inf }
 0x644   :  { %v3097_v30 = vadd.f32 %v5578_v57, %v6971_v62  ;;  %v3091_v44 = vpop.f32.mrb[3].mxu1  ;;  %v4261_v7 = vmax.f32 %v4259_v4, %v4260_v17  ;;  %v4268_v51 = vmax.f32 %v4266_v47, %v4267_v3  ;;  %v4472_v60 = vsel %vm1589_vm7, %v4254_v23, -inf }
 0x645   :  { %v3092_v15 = vadd.f32 %v6971_v62, %v3091_v44  ;;  %v4280_v17 = vmax.f32 %v4278_v36, %v4279_v5 }
 0x646   :  { %v3143_v2 = vmax.f32 %v3097_v30, 0.0  ;;  %v4473_v55 = vsel %vm1589_vm7, %v4261_v7, -inf  ;;  %v4475_v33 = vsel %vm1589_vm7, %v4268_v51, -inf }
 0x647   :  { %v3142_v10 = vmax.f32 %v3092_v15, 0.0  ;;  %v4474_v48 = vmax.f32 %v4472_v60, %v4473_v55  ;;  %v4477_v61 = vmax.f32 %v4475_v33, %v4476_v45  ;;  %v4281_v45 = vrot.slane %v4280_v17, 1 }
 0x648   :  { %v3307_v19 = vcombine.high %v3143_v2, %v3143_v2  ;;  %v3314_v35 = vrot.slane %v3143_v2, %v6031_v27 }
 0x649   :  { %v3259_v18 = vcombine.high %v3142_v10, %v3142_v10  ;;  %v3266_v34 = vrot.slane %v3142_v10, %v6031_v27  ;;  %v4538_v25 = vrot.slane %v4474_v48, 7  ;;  %v4539_v22 = vrot.slane %v4477_v61, 7 }
 0x64a   :  { %v7014_v37 = vrot.slane %v3307_v19, %v6031_v27  ;;  %v3322_v38 = vcombine.high %v3314_v35, %v3314_v35  ;;  %v3330_v42 = vrot.slane %v3314_v35, %v6031_v27  ;;  %v4282_v61 = vmax.f32 %v4280_v17, %v4281_v45 }
 0x64b   :  { %v3273_v29 = vrot.slane %v3259_v18, %v6031_v27  ;;  %v3274_v50 = vcombine.high %v3266_v34, %v3266_v34  ;;  %v3282_v28 = vrot.slane %v3266_v34, %v6031_v27  ;;  %v4572_v52 = vsel %vm770_vm11, 0.0, %v4538_v25 }
 0x64c   :  { %v3344_v59 = vrot.slane %v3322_v38, %v6031_v27  ;;  %v7024_v6 = vsel %vm4588_vm1, %v4572_v52, 0.0  ;;  %v7031_v1 = vrot.slane %v7014_v37, %v6031_v27  ;;  %v4573_v63 = vsel %vm770_vm11, 0.0, %v4539_v22 }
 0x64d   :  { %v3275_v14 = vcombine.high %v3273_v29, %v3273_v29  ;;  %v3289_v56 = vrot.slane %v3273_v29, %v6031_v27  ;;  %v3811_v43 = vcombine.low %v3258_v41, %v3282_v28  ;;  %4743 = vrot.lane.b32.xlu0 %v7024_v6, %s5699_s4  ;;  %v3296_v0 = vrot.slane %v3274_v50, %v6031_v27 }
 0x64e   :  { %v3353_v54 = vcombine.high %v3344_v59, %v3344_v59  ;;  %v3856_v58 = vcombine.low %v3330_v42, %v3344_v59  ;;  %v7040_v46 = vsel %vm4588_vm1, %v4573_v63, 0.0  ;;  %v4478_v41 = vsel %vm1589_vm7, %v4282_v61, -inf }
 0x64f   :  { %v3303_v40 = vrot.slane %v3275_v14, %v6031_v27  ;;  %v3305_v9 = vcombine.high %v3289_v56, %v3289_v56  ;;  %v3818_v24 = vrot.slane %v3811_v43, %v6031_v27  ;;  %4745 = vrot.lane.b32.xlu1 %v7040_v46, %s5699_s4  ;;  %v5514_v4 = vcombine.high %v3282_v28, %v3296_v0 }
 0x650   :  { %v3863_v21 = vrot.slane %v3856_v58, %v6031_v27  ;;  %v3871_v11 = vcombine.low %v3353_v54, %v7031_v1  ;;  %v3323_v58 = vcombine.high %v7014_v37, %v7014_v37  ;;  %v4682_v37 = vrot.slane %v7024_v6, 2 }
 0x651   :  { %v3825_v16 = vrot.slane %v3818_v24, %v6031_v27  ;;  %v3841_v39 = vcombine.low %v3303_v40, %v3305_v9  ;;  %4891 = vrot.lane.b32.xlu0 %v7040_v46, %s5695_s3  ;;  %v3833_v31 = vrot.slane %v5514_v4, %v6031_v27  ;;  %v4622_v40 = vrot.slane %v7024_v6, 1 }
 0x652   :  { %v3870_v12 = vrot.slane %v3863_v21, %v6031_v27  ;;  %v3878_v26 = vrot.slane %v3871_v11, %v6031_v27  ;;  %v4623_v9 = vrot.slane %v7040_v46, 1  ;;  %v3351_v5 = vrot.slane %v3323_v58, %v6031_v27 }
 0x653   :  { %v4283_v47 = vsel %vm389_vm10, %v3825_v16, -inf  ;;  %v3848_v57 = vrot.slane %v3841_v39, %v6031_v27  ;;  %v3840_v10 = vrot.slane %v3833_v31, %v6031_v27 }
 0x654   :  { %v3885_v20 = vrot.slane %v3878_v26, %v6031_v27  ;;  %v4304_v53 = vsel %vm389_vm10, %v3870_v12, -inf  ;;  %v4284_v23 = vrot.slane %v4283_v47, 4  ;;  %v5515_v26 = vcombine.high %v7031_v1, %v3351_v5 }
 0x655   :  { %v4305_v3 = vrot.slane %v4304_v53, 4  ;;  %v3855_v60 = vrot.slane %v3848_v57, %v6031_v27  ;;  %v4290_v25 = vsel %vm389_vm10, %v3840_v10, -inf }
 0x656   :  { %v4311_v30 = vsel %vm389_vm10, %v3885_v20, -inf  ;;  %v4285_v44 = vmax.f32 %v4283_v47, %v4284_v23  ;;  %v4291_v28 = vrot.slane %v4290_v25, 4  ;;  %v4683_v47 = vrot.slane %v7040_v46, 2 }
 0x657   :  { %v4306_v7 = vmax.f32 %v4304_v53, %v4305_v3  ;;  %v4312_v51 = vrot.slane %v4311_v30, 4  ;;  %v4297_v19 = vsel %vm389_vm10, %v3855_v60, -inf  ;;  %v3893_v23 = vrot.slane %v5515_v26, %v6031_v27 }
 0x658   :  { %v4286_v15 = vrot.slane %v4285_v44, 2  ;;  %v4298_v38 = vrot.slane %v4297_v19, 4  ;;  %v4292_v56 = vmax.f32 %v4290_v25, %v4291_v28 }
 0x659   :  { %v4313_v2 = vmax.f32 %v4311_v30, %v4312_v51  ;;  %v4307_v55 = vrot.slane %v4306_v7, 2  ;;  %v3900_v1 = vrot.slane %v3893_v23, %v6031_v27 }
 0x65a   :  { %v4287_v33 = vmax.f32 %v4285_v44, %v4286_v15  ;;  %v4299_v42 = vmax.f32 %v4297_v19, %v4298_v38  ;;  %v4293_v24 = vrot.slane %v4292_v56, 2 }
 0x65b   :  { %v4314_v48 = vrot.slane %v4313_v2, 2  ;;  %v4308_v34 = vmax.f32 %v4306_v7, %v4307_v55  ;;  %v4318_v31 = vsel %vm389_vm10, %v3900_v1, -inf }
 0x65c   :  { %v4288_v8 = vrot.slane %v4287_v33, 1  ;;  %v4300_v63 = vrot.slane %v4299_v42, 2  ;;  %v4294_v39 = vmax.f32 %v4292_v56, %v4293_v24 }
 0x65d   :  { %v4315_v35 = vmax.f32 %v4313_v2, %v4314_v48  ;;  %v4309_v52 = vrot.slane %v4308_v34, 1 }
 0x65e   :  { %v4289_v18 = vmax.f32 %v4287_v33, %v4288_v8  ;;  %v4301_v16 = vmax.f32 %v4299_v42, %v4300_v63  ;;  %v4295_v20 = vrot.slane %v4294_v39, 1  ;;  %v4319_v33 = vrot.slane %v4318_v31, 4 }
 0x65f   :  { %v4316_v29 = vrot.slane %v4315_v35, 1  ;;  %v4310_v54 = vmax.f32 %v4308_v34, %v4309_v52 }
 0x660   :  { %v4479_v22 = vsel %vm1589_vm7, %v4289_v18, -inf  ;;  %v4302_v4 = vrot.slane %v4301_v16, 1  ;;  %v4296_v3 = vmax.f32 %v4294_v39, %v4295_v20  ;;  %v4320_v25 = vmax.f32 %v4318_v31, %v4319_v33 }
 0x661   :  { %v4480_v50 = vmax.f32 %v4478_v41, %v4479_v22  ;;  %v4317_v59 = vmax.f32 %v4315_v35, %v4316_v29  ;;  %v4484_v21 = vsel %vm1589_vm7, %v4310_v54, -inf }
 0x662   :  { %v4303_v17 = vmax.f32 %v4301_v16, %v4302_v4  ;;  %v4481_v7 = vsel %vm1589_vm7, %v4296_v3, -inf  ;;  %v4321_v39 = vrot.slane %v4320_v25, 2 }
 0x663   :  { %v4540_v36 = vrot.slane %v4480_v50, 7  ;;  %v4485_v0 = vsel %vm1589_vm7, %v4317_v59, -inf }
 0x664   :  { %v4486_v11 = vmax.f32 %v4484_v21, %v4485_v0  ;;  %v4482_v30 = vsel %vm1589_vm7, %v4303_v17, -inf }
 0x665   :  { %v4574_v14 = vsel %vm770_vm11, 0.0, %v4540_v36  ;;  %v4483_v51 = vmax.f32 %v4481_v7, %v4482_v30  ;;  %v4322_v7 = vmax.f32 %v4320_v25, %v4321_v39 }
 0x666   :  { %v7063_v43 = vsel %vm4588_vm1, %v4574_v14, 0.0  ;;  %v4542_v12 = vrot.slane %v4486_v11, 7 }
 0x667   :  { %4893 = vrot.lane.b32.xlu0 %v7063_v43, %s5695_s3  ;;  %4747 = vrot.lane.b32.xlu1 %v7063_v43, %s5699_s4  ;;  %v7096_v44 = vrot.slane %v7063_v43, 2  ;;  %v4541_v48 = vrot.slane %v4483_v51, 7  ;;  %v4624_v52 = vrot.slane %v7063_v43, 1 }
 0x668   :  { %v4576_v53 = vsel %vm770_vm11, 0.0, %v4542_v12 }
 0x669   :  { %v7088_v57 = vsel %vm4588_vm1, %v4576_v53, 0.0  ;;  %v4575_v22 = vsel %vm770_vm11, 0.0, %v4541_v48  ;;  %v4323_v48 = vrot.slane %v4322_v7, 1 }
 0x66a   :  { %v7104_v45 = vrot.slane %v7088_v57, 1  ;;  %v7113_v35 = vrot.slane %v7088_v57, 2  ;;  %v7129_v63 = vsel %vm4588_vm1, %v4575_v22, 0.0 }
 0x66b   :  { %4638 = vrot.lane.b32.xlu0 %v4622_v40, %s5696_s27  ;;  %4640 = vrot.lane.b32.xlu1 %v4623_v9, %s5696_s27  ;;  %v7153_v30 = vrot.slane %v7129_v63, 2 }
 0x66f   :  { %4843 = vrot.lane.b32.xlu0 %v4682_v37, %s5700_s13  ;;  %4698 = vrot.lane.b32.xlu1 %v4682_v37, %s5698_s29  ;;  %v7139_v37 = vrot.slane %v7129_v63, 1 }
 0x673   :  { %4936 = vrot.lane.b32.xlu0 %v4623_v9, %s5697_s28  ;;  %4700 = vrot.lane.b32.xlu1 %v4683_v47, %s5698_s29 }
 0x677   :  { %4751 = vrot.lane.b32.xlu0 %v7088_v57, %s5699_s4  ;;  %4795 = vrot.lane.b32.xlu1 %v4623_v9, %s5701_s14 }
 0x67b   :  { %4845 = vrot.lane.b32.xlu1 %v4683_v47, %s5700_s13  ;;  %4847 = vrot.lane.b32.xlu0 %v7096_v44, %s5700_s13 }
 0x67e   :  { %v5581_v15 = vpop.f32.mrb[4].mxu1 }
 0x67f   :  { %v3107_v2 = vadd.f32 %v5581_v15, %v6971_v62  ;;  %v3101_v60 = vpop.f32.mrb[5].mxu1  ;;  %4793 = vrot.lane.b32.xlu1 %v4622_v40, %s5701_s14  ;;  %4646 = vrot.lane.b32.xlu0 %v7104_v45, %s5696_s27 }
 0x680   :  { %v3102_v55 = vadd.f32 %v6971_v62, %v3101_v60 }
 0x681   :  { %v3145_v10 = vmax.f32 %v3107_v2, 0.0 }
 0x682   :  { %v3144_v61 = vmax.f32 %v3102_v55, 0.0 }
 0x683   :  { %v3402_v8 = vcombine.high %v3145_v10, %v3145_v10  ;;  %v3409_v19 = vrot.slane %v3145_v10, %v6031_v27  ;;  %4981 = vrot.lane.b32.xlu1 %v4683_v47, %s5702_s15  ;;  %4706 = vrot.lane.b32.xlu0 %v7113_v35, %s5698_s29 }
 0x684   :  { %v3355_v18 = vcombine.high %v3144_v61, %v3144_v61  ;;  %v3362_v34 = vrot.slane %v3144_v61, %v6031_v27 }
 0x685   :  { %v3416_v38 = vrot.slane %v3402_v8, %v6031_v27  ;;  %v3417_v41 = vcombine.high %v3409_v19, %v3409_v19  ;;  %v3425_v42 = vrot.slane %v3409_v19, %v6031_v27 }
 0x686   :  { %v3369_v29 = vrot.slane %v3355_v18, %v6031_v27  ;;  %v3370_v50 = vcombine.high %v3362_v34, %v3362_v34  ;;  %v3378_v28 = vrot.slane %v3362_v34, %v6031_v27 }
 0x687   :  { %v3418_v36 = vcombine.high %v3416_v38, %v3416_v38  ;;  %v3432_v59 = vrot.slane %v3416_v38, %v6031_v27  ;;  %v3439_v14 = vrot.slane %v3417_v41, %v6031_v27  ;;  %4987 = vrot.lane.b32.xlu0 %v7113_v35, %s5702_s15  ;;  %4642 = vrot.lane.b32.xlu1 %v4624_v52, %s5696_s27 }
 0x688   :  { %v3371_v56 = vcombine.high %v3369_v29, %v3369_v29  ;;  %v3392_v54 = vrot.slane %v3370_v50, %v6031_v27  ;;  %v3400_v58 = vcombine.high %v3378_v28, %v3378_v28  ;;  %v3385_v24 = vrot.slane %v3369_v29, %v6031_v27 }
 0x689   :  { %v3446_v0 = vrot.slane %v3418_v36, %v6031_v27  ;;  %v3448_v40 = vcombine.high %v3432_v59, %v3432_v59  ;;  %v5516_v9 = vcombine.high %v3425_v42, %v3439_v14 }
 0x68a   :  { %v3399_v21 = vrot.slane %v3371_v56, %v6031_v27  ;;  %v3901_v11 = vcombine.low %v3392_v54, %v3400_v58 }
 0x68b   :  { %v3953_v5 = vrot.slane %v5516_v9, %v6031_v27  ;;  %v3961_v16 = vcombine.low %v3446_v0, %v3448_v40  ;;  %4702 = vrot.lane.b32.xlu1 %v7096_v44, %s5698_s29  ;;  %4644 = vrot.lane.b32.xlu0 %v7139_v37, %s5696_s27 }
 0x68c   :  { %v3401_v12 = vcombine.high %v3399_v21, %v3399_v21  ;;  %v3908_v26 = vrot.slane %v3901_v11, %v6031_v27  ;;  %v3916_v4 = vcombine.low %v3385_v24, %v3399_v21 }
 0x68d   :  { %v3960_v47 = vrot.slane %v3953_v5, %v6031_v27  ;;  %v3968_v20 = vrot.slane %v3961_v16, %v6031_v27 }
 0x68e   :  { %v3915_v53 = vrot.slane %v3908_v26, %v6031_v27  ;;  %v3931_v23 = vcombine.low %v3401_v12, %v3425_v42  ;;  %v3923_v1 = vrot.slane %v3916_v4, %v6031_v27  ;;  %v4324_v42 = vmax.f32 %v4322_v7, %v4323_v48 }
 0x68f   :  { %v3975_v17 = vrot.slane %v3968_v20, %v6031_v27  ;;  %v4346_v3 = vsel %vm389_vm10, %v3960_v47, -inf  ;;  %4797 = vrot.lane.b32.xlu1 %v4624_v52, %s5701_s14  ;;  %4704 = vrot.lane.b32.xlu0 %v7153_v30, %s5698_s29 }
 0x690   :  { %v4347_v51 = vrot.slane %v4346_v3, 4  ;;  %v4325_v31 = vsel %vm389_vm10, %v3915_v53, -inf  ;;  %v3930_v33 = vrot.slane %v3923_v1, %v6031_v27  ;;  %v3938_v18 = vrot.slane %v3931_v23, %v6031_v27 }
 0x691   :  { %v4353_v15 = vsel %vm389_vm10, %v3975_v17, -inf  ;;  %v4326_v2 = vrot.slane %v4325_v31, 4  ;;  %v4487_v23 = vsel %vm1589_vm7, %v4324_v42, -inf }
 0x692   :  { %v4348_v60 = vmax.f32 %v4346_v3, %v4347_v51  ;;  %v4354_v55 = vrot.slane %v4353_v15, 4  ;;  %v5584_v19 = vpop.f32.mrb[6].mxu1  ;;  %v4332_v28 = vsel %vm389_vm10, %v3930_v33, -inf  ;;  %v3945_v54 = vrot.slane %v3938_v18, %v6031_v27 }
 0x693   :  { %v4327_v10 = vmax.f32 %v4325_v31, %v4326_v2  ;;  %v3117_v25 = vadd.f32 %v5584_v19, %v6971_v62  ;;  %v3111_v38 = vpop.f32.mrb[7].mxu1  ;;  %4938 = vrot.lane.b32.xlu1 %v4624_v52, %s5697_s28  ;;  %4799 = vrot.lane.b32.xlu0 %v7139_v37, %s5701_s14  ;;  %v4333_v40 = vrot.slane %v4332_v28, 4 }
 0x694   :  { %v4349_v61 = vrot.slane %v4348_v60, 2  ;;  %v4355_v8 = vmax.f32 %v4353_v15, %v4354_v55  ;;  %v3112_v29 = vadd.f32 %v6971_v62, %v3111_v38  ;;  %v4339_v17 = vsel %vm389_vm10, %v3945_v54, -inf }
 0x695   :  { %v4328_v34 = vrot.slane %v4327_v10, 2  ;;  %v3147_v36 = vmax.f32 %v3117_v25, 0.0  ;;  %v4334_v3 = vmax.f32 %v4332_v28, %v4333_v40  ;;  %v4340_v19 = vrot.slane %v4339_v17, 4 }
 0x696   :  { %v4350_v41 = vmax.f32 %v4348_v60, %v4349_v61  ;;  %v4356_v22 = vrot.slane %v4355_v8, 2  ;;  %v3146_v56 = vmax.f32 %v3112_v29, 0.0 }
 0x697   :  { %v4329_v50 = vmax.f32 %v4327_v10, %v4328_v34  ;;  %v3498_v0 = vcombine.high %v3147_v36, %v3147_v36  ;;  %v3505_v52 = vrot.slane %v3147_v36, %v6031_v27  ;;  %4897 = vrot.lane.b32.xlu1 %v7088_v57, %s5695_s3  ;;  %v4335_v38 = vrot.slane %v4334_v3, 2 }
 0x698   :  { %v4351_v59 = vrot.slane %v4350_v41, 1  ;;  %v4357_v14 = vmax.f32 %v4355_v8, %v4356_v22  ;;  %v3450_v9 = vcombine.high %v3146_v56, %v3146_v56  ;;  %v3457_v24 = vrot.slane %v3146_v56, %v6031_v27 }
 0x699   :  { %v4330_v58 = vrot.slane %v4329_v50, 1  ;;  %v3512_v5 = vrot.slane %v3498_v0, %v6031_v27  ;;  %v3513_v16 = vcombine.high %v3505_v52, %v3505_v52  ;;  %v3521_v39 = vrot.slane %v3505_v52, %v6031_v27 }
 0x69a   :  { %v4358_v21 = vrot.slane %v4357_v14, 1  ;;  %v3464_v12 = vrot.slane %v3450_v9, %v6031_v27  ;;  %v3465_v26 = vcombine.high %v3457_v24, %v3457_v24  ;;  %v4352_v4 = vmax.f32 %v4350_v41, %v4351_v59 }
 0x69b   :  { %v4331_v11 = vmax.f32 %v4329_v50, %v4330_v58  ;;  %v3535_v20 = vrot.slane %v3513_v16, %v6031_v27  ;;  %v3543_v53 = vcombine.high %v3521_v39, %v3521_v39  ;;  %4983 = vrot.lane.b32.xlu1 %v7096_v44, %s5702_s15  ;;  %v3514_v31 = vcombine.high %v3512_v5, %v3512_v5 }
 0x69c   :  { %v4359_v47 = vmax.f32 %v4357_v14, %v4358_v21  ;;  %v3466_v1 = vcombine.high %v3464_v12, %v3464_v12  ;;  %v3487_v7 = vrot.slane %v3465_v26, %v6031_v27  ;;  %v3480_v2 = vrot.slane %v3464_v12, %v6031_v27 }
 0x69d   :  { %v4488_v51 = vsel %vm1589_vm7, %v4331_v11, -inf  ;;  %v4021_v15 = vcombine.low %v3535_v20, %v3543_v53  ;;  %v4493_v44 = vsel %vm1589_vm7, %v4352_v4, -inf  ;;  %v3473_v18 = vrot.slane %v3457_v24, %v6031_v27 }
 0x69e   :  { %v4489_v60 = vmax.f32 %v4487_v23, %v4488_v51  ;;  %v3494_v55 = vrot.slane %v3466_v1, %v6031_v27  ;;  %v3496_v33 = vcombine.high %v3487_v7, %v3487_v7  ;;  %v4494_v10 = vsel %vm1589_vm7, %v4359_v47, -inf }
 0x69f   :  { %v4028_v48 = vrot.slane %v4021_v15, %v6031_v27  ;;  %4749 = vrot.lane.b32.xlu1 %v7129_v63, %s5699_s4  ;;  %v4495_v8 = vmax.f32 %v4493_v44, %v4494_v10  ;;  %v7192_v41 = vrot.slane %v3514_v31, %v6031_v27  ;;  %v3976_v28 = vcombine.low %v3473_v18, %v3487_v7 }
 0x6a0   :  { %v4543_v61 = vrot.slane %v4489_v60, 7  ;;  %v3991_v34 = vcombine.low %v3496_v33, %v3480_v2  ;;  %v5517_v25 = vcombine.high %v3480_v2, %v3494_v55  ;;  %v3528_v59 = vrot.slane %v3512_v5, %v6031_v27 }
 0x6a1   :  { %v4035_v22 = vrot.slane %v4028_v48, %v6031_v27  ;;  %v4545_v50 = vrot.slane %v4495_v8, 7  ;;  %v4336_v52 = vmax.f32 %v4334_v3, %v4335_v38  ;;  %v4341_v40 = vmax.f32 %v4339_v17, %v4340_v19 }
 0x6a2   :  { %v4577_v29 = vsel %vm770_vm11, 0.0, %v4543_v61  ;;  %v4013_v36 = vrot.slane %v5517_v25, %v6031_v27  ;;  %v3998_v56 = vrot.slane %v3991_v34, %v6031_v27  ;;  %v4036_v9 = vcombine.low %v3528_v59, %v7192_v41 }
 0x6a3   :  { %v7198_v42 = vsel %vm4588_vm1, %v4577_v29, 0.0  ;;  %v4381_v14 = vsel %vm389_vm10, %v4035_v22, -inf  ;;  %4895 = vrot.lane.b32.xlu1 %v7129_v63, %s5695_s3  ;;  %v4579_v24 = vsel %vm770_vm11, 0.0, %v4545_v50  ;;  %v3983_v11 = vrot.slane %v3976_v28, %v6031_v27 }
 0x6a4   :  { %v7206_v54 = vrot.slane %v7198_v42, 1  ;;  %v4382_v58 = vrot.slane %v4381_v14, 4  ;;  %v4020_v0 = vrot.slane %v4013_v36, %v6031_v27  ;;  %v4005_v16 = vrot.slane %v3998_v56, %v6031_v27 }
 0x6a5   :  { %v7219_v12 = vsel %vm4588_vm1, %v4579_v24, 0.0  ;;  %v4337_v26 = vrot.slane %v4336_v52, 1  ;;  %v4342_v4 = vrot.slane %v4341_v40, 2  ;;  %v4043_v20 = vrot.slane %v4036_v9, %v6031_v27 }
 0x6a6   :  { %4648 = vrot.lane.b32.xlu0 %v7206_v54, %s5696_s27  ;;  %v4383_v21 = vmax.f32 %v4381_v14, %v4382_v58  ;;  %v4374_v5 = vsel %vm389_vm10, %v4020_v0, -inf  ;;  %v3990_v23 = vrot.slane %v3983_v11, %v6031_v27  ;;  %v4367_v1 = vsel %vm389_vm10, %v4005_v16, -inf }
 0x6a7   :  { %v4375_v39 = vrot.slane %v4374_v5, 4  ;;  %4801 = vrot.lane.b32.xlu1 %v7104_v45, %s5701_s14  ;;  %v4343_v17 = vmax.f32 %v4341_v40, %v4342_v4  ;;  %v4791_v7 = vrot.slane %v7219_v12, 1  ;;  %v4338_v31 = vmax.f32 %v4336_v52, %v4337_v26 }
 0x6a8   :  { %v4384_v47 = vrot.slane %v4383_v21, 2  ;;  %v4050_v60 = vrot.slane %v4043_v20, %v6031_v27  ;;  %v4360_v33 = vsel %vm389_vm10, %v3990_v23, -inf  ;;  %v4368_v44 = vrot.slane %v4367_v1, 4 }
 0x6a9   :  { %v4376_v53 = vmax.f32 %v4374_v5, %v4375_v39  ;;  %v4344_v15 = vrot.slane %v4343_v17, 1  ;;  %v4490_v61 = vsel %vm1589_vm7, %v4338_v31, -inf  ;;  %v4361_v18 = vrot.slane %v4360_v33, 4 }
 0x6aa   :  { %4944 = vrot.lane.b32.xlu0 %v7206_v54, %s5697_s28  ;;  %v4385_v3 = vmax.f32 %v4383_v21, %v4384_v47  ;;  %v4388_v19 = vsel %vm389_vm10, %v4050_v60, -inf  ;;  %v4369_v38 = vmax.f32 %v4367_v1, %v4368_v44 }
 0x6ab   :  { %4851 = vrot.lane.b32.xlu1 %v7113_v35, %s5700_s13  ;;  %v4377_v51 = vrot.slane %v4376_v53, 2  ;;  %v4345_v10 = vmax.f32 %v4343_v17, %v4344_v15  ;;  %v4389_v59 = vrot.slane %v4388_v19, 4  ;;  %v4362_v58 = vmax.f32 %v4360_v33, %v4361_v18 }
 0x6ac   :  { %v4386_v2 = vrot.slane %v4385_v3, 1  ;;  %v4370_v21 = vrot.slane %v4369_v38, 2 }
 0x6ad   :  { %v4378_v55 = vmax.f32 %v4376_v53, %v4377_v51  ;;  %v4491_v8 = vsel %vm1589_vm7, %v4345_v10, -inf  ;;  %v4390_v5 = vmax.f32 %v4388_v19, %v4389_v59  ;;  %v4363_v26 = vrot.slane %v4362_v58, 2 }
 0x6ae   :  { %4807 = vrot.lane.b32.xlu0 %v4791_v7, %s5701_s14  ;;  %v4387_v48 = vmax.f32 %v4385_v3, %v4386_v2  ;;  %v4492_v34 = vmax.f32 %v4490_v61, %v4491_v8  ;;  %v3544_v53 = vcombine.high %v7192_v41, %v7192_v41  ;;  %v4371_v17 = vmax.f32 %v4369_v38, %v4370_v21 }
 0x6af   :  { %4942 = vrot.lane.b32.xlu1 %v7104_v45, %s5697_s28  ;;  %v4379_v35 = vrot.slane %v4378_v55, 1  ;;  %v4391_v51 = vrot.slane %v4390_v5, 2  ;;  %v4364_v31 = vmax.f32 %v4362_v58, %v4363_v26 }
 0x6b0   :  { %v4544_v45 = vrot.slane %v4492_v34, 7  ;;  %v4500_v36 = vsel %vm1589_vm7, %v4387_v48, -inf  ;;  %v4372_v33 = vrot.slane %v4371_v17, 1  ;;  %v7289_v34 = vpop.permute.xlu0 %4636 }
 0x6b1   :  { %v4380_v25 = vmax.f32 %v4378_v55, %v4379_v35  ;;  %v4392_v44 = vmax.f32 %v4390_v5, %v4391_v51  ;;  %v4365_v10 = vrot.slane %v4364_v31, 1 }
 0x6b2   :  { %v4578_v52 = vsel %vm770_vm11, 0.0, %v4544_v45 }
 0x6b3   :  { %4753 = vrot.lane.b32.xlu1 %v7198_v42, %s5699_s4  ;;  %v4499_v28 = vsel %vm1589_vm7, %v4380_v25, -inf  ;;  %v7249_v9 = vsel %vm4588_vm1, %v4578_v52, 0.0  ;;  %v4373_v25 = vmax.f32 %v4371_v17, %v4372_v33  ;;  %v4393_v38 = vrot.slane %v4392_v44, 1  ;;  %v7304_v52 = vpop.permute.xlu1 %4905 }
 0x6b4   :  { %v4501_v56 = vmax.f32 %v4499_v28, %v4500_v36  ;;  %4901 = vrot.lane.b32.xlu0 %v7249_v9, %s5695_s3  ;;  %v7286_v61 = vrot.slane %v7249_v9, 2  ;;  %v4366_v45 = vmax.f32 %v4364_v31, %v4365_v10  ;;  %v7317_v17 = vrot.slane %v7198_v42, 2 }
 0x6b5   :  { %v5587_v22 = vpop.f32.mrb[8].mxu1  ;;  %v4394_v58 = vmax.f32 %v4392_v44, %v4393_v38 }
 0x6b6   :  { %v3127_v29 = vadd.f32 %v5587_v22, %v6971_v62  ;;  %v3121_v50 = vpop.f32.mrb[9].mxu1  ;;  %v4547_v24 = vrot.slane %v4501_v56, 7 }
 0x6b7   :  { %v3122_v14 = vadd.f32 %v6971_v62, %v3121_v50  ;;  %4849 = vrot.lane.b32.xlu1 %v7153_v30, %s5700_s13 }
 0x6b8   :  { %v3149_v0 = vmax.f32 %v3127_v29, 0.0  ;;  %v4581_v39 = vsel %vm770_vm11, 0.0, %v4547_v24  ;;  %v7306_v24 = vpop.permute.xlu0 %4696 }
 0x6b9   :  { %v7246_v40 = vmax.f32 %v3122_v14, 0.0  ;;  %v7263_v20 = vsel %vm4588_vm1, %v4581_v39, 0.0  ;;  %v4497_v14 = vsel %vm1589_vm7, %v4373_v25, -inf }
 0x6ba   :  { %v3593_v11 = vcombine.high %v3149_v0, %v3149_v0  ;;  %v3600_v4 = vrot.slane %v3149_v0, %v6031_v27  ;;  %4761 = vrot.lane.b32.xlu0 %v7263_v20, %s5699_s4 }
 0x6bb   :  { %v7257_v16 = vrot.slane %v7246_v40, %v6031_v27  ;;  %4940 = vrot.lane.b32.xlu1 %v7139_v37, %s5697_s28 }
 0x6bc   :  { %v3607_v47 = vrot.slane %v3593_v11, %v6031_v27  ;;  %v3608_v15 = vcombine.high %v3600_v4, %v3600_v4  ;;  %v3616_v56 = vrot.slane %v3600_v4, %v6031_v27 }
 0x6bd   :  { %v7269_v23 = vrot.slane %v7257_v16, %v6031_v27 }
 0x6be   :  { %v3609_v3 = vcombine.high %v3607_v47, %v3607_v47  ;;  %4907 = vrot.lane.b32.xlu0 %v7263_v20, %s5695_s3  ;;  %v3623_v35 = vrot.slane %v3607_v47, %v6031_v27  ;;  %v3630_v48 = vrot.slane %v3608_v15, %v6031_v27  ;;  %v4502_v15 = vsel %vm1589_vm7, %v4394_v58, -inf }
 0x6bf   :  { %v4051_v1 = vcombine.low %v3544_v53, %v7269_v23  ;;  %4899 = vrot.lane.b32.xlu1 %v7198_v42, %s5695_s3  ;;  %v7327_v44 = vpop.permute.xlu0 %4743 }
 0x6c0   :  { %v5590_v41 = vpop.f32.mrb[10].mxu1  ;;  %v3637_v60 = vrot.slane %v3609_v3, %v6031_v27  ;;  %v3639_v22 = vcombine.high %v3630_v48, %v3630_v48  ;;  %v4096_v5 = vcombine.low %v3616_v56, %v3630_v48 }
 0x6c1   :  { %v4058_v2 = vrot.slane %v4051_v1, %v6031_v27  ;;  %v3131_v55 = vpop.f32.mrb[11].mxu1  ;;  %v3137_v59 = vadd.f32 %v5590_v41, %v6971_v62 }
 0x6c2   :  { %v5519_v19 = vcombine.high %v3623_v35, %v3637_v60  ;;  %4855 = vrot.lane.b32.xlu0 %v7286_v61, %s5700_s13  ;;  %v3132_v50 = vadd.f32 %v6971_v62, %v3131_v55  ;;  %v4111_v0 = vcombine.low %v3639_v22, %v3623_v35  ;;  %v4496_v62 = vsel %vm1589_vm7, %v4366_v45, -inf }
 0x6c3   :  { %v4065_v37 = vrot.slane %v4058_v2, %v6031_v27  ;;  %4985 = vrot.lane.b32.xlu1 %v7153_v30, %s5702_s15  ;;  %v3545_v30 = vcombine.high %v7246_v40, %v7246_v40  ;;  %v4498_v39 = vmax.f32 %v4496_v62, %v4497_v14  ;;  %v7310_v47 = vmax.f32 %v3137_v59, 0.0 }
 0x6c4   :  { %v4133_v28 = vrot.slane %v5519_v19, %v6031_v27  ;;  %v3150_v21 = vmax.f32 %v3132_v50, 0.0  ;;  %v4118_v1 = vrot.slane %v4111_v0, %v6031_v27  ;;  %v4103_v2 = vrot.slane %v4096_v5, %v6031_v27 }
 0x6c5   :  { %v4395_v8 = vsel %vm389_vm10, %v4065_v37, -inf  ;;  %v3559_v40 = vrot.slane %v3545_v30, %v6031_v27  ;;  %v4546_v55 = vrot.slane %v4498_v39, 7  ;;  %v7325_v37 = vpop.permute.xlu1 %4950  ;;  %v7331_v10 = vrot.slane %v7310_v47, %v6031_v27 }
 0x6c6   :  { %v4396_v18 = vrot.slane %v4395_v8, 4  ;;  %v4140_v26 = vrot.slane %v4133_v28, %v6031_v27  ;;  %v3641_v4 = vcombine.high %v3150_v21, %v3150_v21  ;;  %v3648_v53 = vrot.slane %v3150_v21, %v6031_v27 }
 0x6c7   :  { %4757 = vrot.lane.b32.xlu1 %v7219_v12, %s5699_s4  ;;  %v3575_v19 = vrot.slane %v3559_v40, %v6031_v27  ;;  %v4125_v38 = vrot.slane %v4118_v1, %v6031_v27  ;;  %v4110_v45 = vrot.slane %v4103_v2, %v6031_v27  ;;  %v7346_v14 = vrot.slane %v7331_v10, %v6031_v27 }
 0x6c8   :  { %v4397_v29 = vmax.f32 %v4395_v8, %v4396_v18  ;;  %v3655_v51 = vrot.slane %v3641_v4, %v6031_v27  ;;  %v3656_v31 = vcombine.high %v3648_v53, %v3648_v53  ;;  %v3664_v41 = vrot.slane %v3648_v53, %v6031_v27 }
 0x6c9   :  { %v4430_v33 = vsel %vm389_vm10, %v4140_v26, -inf  ;;  %v3561_v8 = vcombine.high %v3559_v40, %v3559_v40  ;;  %v3591_v21 = vcombine.high %v3575_v19, %v3575_v19  ;;  %v4423_v62 = vsel %vm389_vm10, %v4125_v38, -inf  ;;  %v7353_v5 = vpop.permute.xlu1 %4745  ;;  %v7357_v26 = vpop.permute.xlu0 %4891 }
 0x6ca   :  { %v4398_v36 = vrot.slane %v4397_v29, 2  ;;  %v3657_v35 = vcombine.high %v3655_v51, %v3655_v51  ;;  %v3678_v48 = vrot.slane %v3656_v31, %v6031_v27  ;;  %v3686_v18 = vcombine.high %v3664_v41, %v3664_v41 }
 0x6cb   :  { %4903 = vrot.lane.b32.xlu1 %v7219_v12, %s5695_s3  ;;  %v3671_v22 = vrot.slane %v3655_v51, %v6031_v27  ;;  %v4431_v28 = vrot.slane %v4430_v33, 4  ;;  %v3589_v0 = vrot.slane %v3561_v8, %v6031_v27  ;;  %v4416_v1 = vsel %vm389_vm10, %v4110_v45, -inf }
 0x6cc   :  { %v4399_v11 = vmax.f32 %v4397_v29, %v4398_v36  ;;  %v3685_v29 = vrot.slane %v3657_v35, %v6031_v27  ;;  %v3560_v36 = vcombine.high %v7257_v16, %v7257_v16  ;;  %v4141_v59 = vcombine.low %v3678_v48, %v3686_v18 }
 0x6cd   :  { %v4432_v53 = vmax.f32 %v4430_v33, %v4431_v28  ;;  %v4424_v2 = vrot.slane %v4423_v62, 4  ;;  %v4417_v19 = vrot.slane %v4416_v1, 4 }
 0x6ce   :  { %v4400_v3 = vrot.slane %v4399_v11, 1  ;;  %v3687_v56 = vcombine.high %v3685_v29, %v3685_v29  ;;  %v4156_v30 = vcombine.low %v3671_v22, %v3685_v29  ;;  %v3582_v51 = vrot.slane %v3560_v36, %v6031_v27 }
 0x6cf   :  { %4708 = vrot.lane.b32.xlu1 %v7317_v17, %s5698_s29  ;;  %v4433_v38 = vrot.slane %v4432_v53, 2  ;;  %v4425_v45 = vmax.f32 %v4423_v62, %v4424_v2 }
 0x6d0   :  { %v4401_v60 = vmax.f32 %v4399_v11, %v4400_v3  ;;  %v4148_v11 = vrot.slane %v4141_v59, %v6031_v27  ;;  %v4163_v16 = vrot.slane %v4156_v30, %v6031_v27  ;;  %v4171_v39 = vcombine.low %v3687_v56, %v7346_v14 }
 0x6d1   :  { %v4580_v3 = vsel %vm770_vm11, 0.0, %v4546_v55  ;;  %v5518_v22 = vcombine.high %v7269_v23, %v3582_v51  ;;  %v4841_v59 = vrot.slane %v7219_v12, 2  ;;  %v4426_v51 = vrot.slane %v4425_v45, 2 }
 0x6d2   :  { %v4503_v25 = vsel %vm1589_vm7, %v4401_v60, -inf  ;;  %v4170_v31 = vrot.slane %v4163_v16, %v6031_v27  ;;  %v4081_v60 = vcombine.low %v3589_v0, %v3591_v21  ;;  %v4434_v0 = vmax.f32 %v4432_v53, %v4433_v38 }
 0x6d3   :  { %v4504_v50 = vmax.f32 %v4502_v15, %v4503_v25  ;;  %4803 = vrot.lane.b32.xlu1 %v7206_v54, %s5701_s14  ;;  %v4155_v54 = vrot.slane %v4148_v11, %v6031_v27  ;;  %v4178_v15 = vrot.slane %v4171_v39, %v6031_v27  ;;  %v7381_v25 = vsel %vm4588_vm1, %v4580_v3, 0.0 }
 0x6d4   :  { %v4444_v35 = vsel %vm389_vm10, %v4170_v31, -inf  ;;  %v4088_v56 = vrot.slane %v4081_v60, %v6031_v27  ;;  %v4629_v30 = vrot.slane %v7381_v25, 1  ;;  %v4418_v11 = vmax.f32 %v4416_v1, %v4417_v19 }
 0x6d5   :  { %v4548_v58 = vrot.slane %v4504_v50, 7  ;;  %v4437_v41 = vsel %vm389_vm10, %v4155_v54, -inf  ;;  %v4185_v55 = vrot.slane %v4178_v15, %v6031_v27  ;;  %v4445_v18 = vrot.slane %v4444_v35, 4 }
 0x6d6   :  { %v4438_v33 = vrot.slane %v4437_v41, 4  ;;  %v4435_v62 = vrot.slane %v4434_v0, 1  ;;  %v4095_v31 = vrot.slane %v4088_v56, %v6031_v27  ;;  %v7403_v53 = vrot.slane %v7263_v20, 1 }
 0x6d7   :  { %v4582_v4 = vsel %vm770_vm11, 0.0, %v4548_v58  ;;  %4853 = vrot.lane.b32.xlu1 %v7317_v17, %s5700_s13  ;;  %v4451_v50 = vsel %vm389_vm10, %v4185_v55, -inf  ;;  %v4446_v28 = vmax.f32 %v4444_v35, %v4445_v18  ;;  %v4419_v60 = vrot.slane %v4418_v11, 2 }
 0x6d8   :  { %v7362_v40 = vsel %vm4588_vm1, %v4582_v4, 0.0  ;;  %v4439_v29 = vmax.f32 %v4437_v41, %v4438_v33  ;;  %v4452_v36 = vrot.slane %v4451_v50, 4  ;;  %v4436_v2 = vmax.f32 %v4434_v0, %v4435_v62 }
 0x6d9   :  { %4763 = vrot.lane.b32.xlu0 %v7362_v40, %s5699_s4  ;;  %v7376_v48 = vpop.permute.xlu0 %4893  ;;  %v7378_v8 = vpop.permute.xlu1 %4747  ;;  %v4447_v16 = vrot.slane %v4446_v28, 2  ;;  %v4689_v18 = vrot.slane %v7381_v25, 2  ;;  %v4427_v38 = vmax.f32 %v4425_v45, %v4426_v51  ;;  %v4420_v12 = vmax.f32 %v4418_v11, %v4419_v60 }
 0x6da   :  { %v4440_v21 = vrot.slane %v4439_v29, 2  ;;  %v4453_v39 = vmax.f32 %v4451_v50, %v4452_v36  ;;  %v7435_v62 = vrot.slane %v7263_v20, 2 }
 0x6db   :  { %4989 = vrot.lane.b32.xlu1 %v7317_v17, %s5702_s15  ;;  %v4073_v17 = vrot.slane %v5518_v22, %v6031_v27  ;;  %v4448_v54 = vmax.f32 %v4446_v28, %v4447_v16  ;;  %v4409_v22 = vsel %vm389_vm10, %v4095_v31, -inf  ;;  %v7422_v28 = vsel %vm1589_vm7, %v4436_v2, -inf }
 0x6dc   :  { %v4441_v4 = vmax.f32 %v4439_v29, %v4440_v21  ;;  %v4454_v3 = vrot.slane %v4453_v39, 2  ;;  %v4410_v16 = vrot.slane %v4409_v22, 4  ;;  %v4421_v51 = vrot.slane %v4420_v12, 1 }
 0x6dd   :  { %4909 = vrot.lane.b32.xlu0 %v7362_v40, %s5695_s3  ;;  %v7392_v58 = vpop.permute.xlu0 %4638  ;;  %v7394_v23 = vpop.permute.xlu1 %4640  ;;  %v4449_v55 = vrot.slane %v4448_v54, 1  ;;  %v4080_v35 = vrot.slane %v4073_v17, %v6031_v27  ;;  %v3688_v17 = vcombine.high %v7310_v47, %v7310_v47 }
 0x6de   :  { %v4442_v41 = vrot.slane %v4441_v4, 1  ;;  %v4455_v33 = vmax.f32 %v4453_v39, %v4454_v3  ;;  %v4428_v39 = vrot.slane %v4427_v38, 1  ;;  %v4411_v2 = vmax.f32 %v4409_v22, %v4410_v16 }
 0x6df   :  { %4857 = vrot.lane.b32.xlu1 %v4841_v59, %s5700_s13  ;;  %v4450_v0 = vmax.f32 %v4448_v54, %v4449_v55  ;;  %v4402_v45 = vsel %vm389_vm10, %v4080_v35, -inf  ;;  %v4422_v35 = vmax.f32 %v4420_v12, %v4421_v51  ;;  %v4628_v16 = vrot.slane %v7249_v9, 1 }
 0x6e0   :  { %v4443_v19 = vmax.f32 %v4441_v4, %v4442_v41  ;;  %v4456_v56 = vrot.slane %v4455_v33, 1  ;;  %v4403_v3 = vrot.slane %v4402_v45, 4  ;;  %v4429_v31 = vmax.f32 %v4427_v38, %v4428_v39 }
 0x6e1   :  { %4652 = vrot.lane.b32.xlu0 %v4629_v30, %s5696_s27  ;;  %v7405_v1 = vpop.permute.xlu0 %4843  ;;  %v7407_v15 = vpop.permute.xlu1 %4698  ;;  %v3702_v41 = vrot.slane %v3688_v17, %v6031_v27  ;;  %v4508_v12 = vsel %vm1589_vm7, %v4422_v35, -inf  ;;  %v3703_v39 = vcombine.high %v7331_v10, %v7331_v10 }
 0x6e2   :  { %v7425_v36 = vsel %vm1589_vm7, %v4443_v19, -inf  ;;  %v4457_v21 = vmax.f32 %v4455_v33, %v4456_v56  ;;  %v4404_v33 = vmax.f32 %v4402_v45, %v4403_v3  ;;  %v4509_v19 = vsel %vm1589_vm7, %v4429_v31, -inf }
 0x6e3   :  { %4948 = vrot.lane.b32.xlu1 %v4791_v7, %s5697_s28  ;;  %v4513_v7 = vmax.f32 %v7422_v28, %v7425_v36  ;;  %v4412_v56 = vrot.slane %v4411_v2, 2  ;;  %v3718_v38 = vrot.slane %v3702_v41, %v6031_v27  ;;  %v4510_v17 = vmax.f32 %v4508_v12, %v4509_v19 }
 0x6e4   :  { %v7442_v54 = vsel %vm1589_vm7, %v4457_v21, -inf  ;;  %v4405_v45 = vrot.slane %v4404_v33, 2  ;;  %v3725_v35 = vrot.slane %v3703_v39, %v6031_v27 }
 0x6e5   :  { %4654 = vrot.lane.b32.xlu0 %v7403_v53, %s5696_s27  ;;  %v7417_v29 = vpop.permute.xlu0 %4936  ;;  %v7419_v50 = vpop.permute.xlu1 %4700  ;;  %v4413_v3 = vmax.f32 %v4411_v2, %v4412_v56  ;;  %v3734_v31 = vcombine.high %v3718_v38, %v3718_v38  ;;  %v4550_v10 = vrot.slane %v4510_v17, 7 }
 0x6e6   :  { %v4406_v13 = vmax.f32 %v4404_v33, %v4405_v45 }
 0x6e7   :  { %4993 = vrot.lane.b32.xlu1 %v4841_v59, %s5702_s15  ;;  %v7445_v59 = vsel %vm1589_vm7, %v4450_v0, -inf  ;;  %v3704_v0 = vcombine.high %v3702_v41, %v3702_v41 }
 0x6e8   :  { %v4407_v56 = vrot.slane %v4406_v13, 1 }
 0x6e9   :  { %4712 = vrot.lane.b32.xlu0 %v4689_v18, %s5698_s29  ;;  %v7437_v4 = vpop.permute.xlu0 %4751  ;;  %v7439_v11 = vpop.permute.xlu1 %4795  ;;  %v3732_v51 = vrot.slane %v3704_v0, %v6031_v27  ;;  %v5520_v0 = vcombine.high %v7346_v14, %v3725_v35 }
 0x6ea   :  { %v4408_v17 = vmax.f32 %v4406_v13, %v4407_v56 }
 0x6eb   :  { %4755 = vrot.lane.b32.xlu1 %v7249_v9, %s5699_s4  ;;  %v4201_v47 = vcombine.low %v3732_v51, %v3734_v31  ;;  %v4193_v51 = vrot.slane %v5520_v0, %v6031_v27 }
 0x6ed   :  { %4714 = vrot.lane.b32.xlu0 %v7435_v62, %s5698_s29  ;;  %v7454_v60 = vpop.permute.xlu0 %4847  ;;  %v7456_v55 = vpop.permute.xlu1 %4845  ;;  %v4208_v38 = vrot.slane %v4201_v47, %v6031_v27  ;;  %v4200_v56 = vrot.slane %v4193_v51, %v6031_v27 }
 0x6ef   :  { %4759 = vrot.lane.b32.xlu1 %v7381_v25, %s5699_s4  ;;  %v4215_v31 = vrot.slane %v4208_v38, %v6031_v27  ;;  %v4458_v27 = vsel %vm389_vm10, %v4200_v56, -inf }
 0x6f0   :  { %v4459_v51 = vrot.slane %v4458_v27, 4 }
 0x6f1   :  { %4811 = vrot.lane.b32.xlu0 %v7403_v53, %s5701_s14  ;;  %v7464_v22 = vpop.permute.xlu0 %4646  ;;  %v7466_v21 = vpop.permute.xlu1 %4793  ;;  %v4465_v38 = vsel %vm389_vm10, %v4215_v31, -inf  ;;  %vm5124_vm10 = vcmask 457728  }
 0x6f3   :  { %4650 = vrot.lane.b32.xlu1 %v4628_v16, %s5696_s27 }
 0x6f5   :  { %4809 = vrot.lane.b32.xlu0 %v4629_v30, %s5701_s14  ;;  %v7477_v41 = vpop.permute.xlu0 %4706  ;;  %v7479_v32 = vpop.permute.xlu1 %4981  ;;  %v4414_v30 = vrot.slane %v4413_v3, 1 }
 0x6f7   :  { %4710 = vrot.lane.b32.xlu1 %v7286_v61, %s5698_s29  ;;  %v4415_v33 = vmax.f32 %v4413_v3, %v4414_v30  ;;  %v4691_v3 = vrot.slane %v7362_v40, 2  ;;  %v4505_v30 = vsel %vm1589_vm7, %v4408_v17, -inf }
 0x6f9   :  { %4859 = vrot.lane.b32.xlu0 %v4689_v18, %s5700_s13  ;;  %v7485_v19 = vpop.permute.xlu0 %4987  ;;  %v7487_v2 = vpop.permute.xlu1 %4642  ;;  %v4584_v18 = vsel %vm770_vm11, 0.0, %v4550_v10  ;;  %v4506_v14 = vsel %vm1589_vm7, %v4415_v33, -inf }
 0x6fa   :  { %v7496_v39 = vsel %vm4588_vm1, %v4584_v18, 0.0  ;;  %v4631_v18 = vrot.slane %v7362_v40, 1 }
 0x6fb   :  { %4805 = vrot.lane.b32.xlu1 %v4628_v16, %s5701_s14 }
 0x6fd   :  { %4997 = vrot.lane.b32.xlu0 %v7435_v62, %s5702_s15  ;;  %v4645_v45 = vpop.permute.xlu0 %4644  ;;  %v4703_v12 = vpop.permute.xlu1 %4702 }
 0x6fe   :  { %v5030_v47 = vsel %vm1589_vm7, %v7129_v63, %v4645_v45  ;;  %v4507_v63 = vmax.f32 %v4505_v30, %v4506_v14  ;;  %v4460_v30 = vmax.f32 %v4458_v27, %v4459_v51 }
 0x6ff   :  { %4946 = vrot.lane.b32.xlu1 %v4628_v16, %s5697_s28  ;;  %v5027_v16 = vsel %vm1589_vm7, %v7024_v6, %v7392_v58 }
 0x700   :  { %v5042_v0 = vsel %vm364_vm9, %v5027_v16, %v7407_v15  ;;  %v4466_v15 = vrot.slane %v4465_v38, 4 }
 0x701   :  { %4767 = vrot.lane.b32.xlu0 %v7496_v39, %s5699_s4  ;;  %v4705_v35 = vpop.permute.xlu0 %4704  ;;  %v4798_v10 = vpop.permute.xlu1 %4797  ;;  %v5058_v6 = vsel %vm5056_vm8, %v5042_v0, %v7353_v5 }
 0x702   :  { %v7508_v13 = vsel %vm364_vm9, %v5030_v47, %v4705_v35  ;;  %v5075_v58 = vsel %vm5073_vm6, %v5058_v6, %v7439_v11  ;;  %v4467_v11 = vmax.f32 %v4465_v38, %v4466_v15 }
 0x703   :  { %4991 = vrot.lane.b32.xlu1 %v7286_v61, %s5702_s15  ;;  %v4549_v61 = vrot.slane %v4507_v63, 7  ;;  %v5092_v45 = vsel %vm5090_vm12, %v5075_v58, %v7456_v55  ;;  %v5028_v55 = vsel %vm1589_vm7, %v7040_v46, %v7394_v23  ;;  %v5029_v46 = vsel %vm1589_vm7, %v7063_v43, %v7487_v2 }
 0x704   :  { %v5043_v47 = vsel %vm364_vm9, %v5028_v55, %v7419_v50  ;;  %v5044_v23 = vsel %vm364_vm9, %v5029_v46, %v4703_v12  ;;  %v4693_v12 = vrot.slane %v7496_v39, 2 }
 0x705   :  { %4863 = vrot.lane.b32.xlu0 %v4691_v3, %s5700_s13  ;;  %v4939_v33 = vpop.permute.xlu1 %4938  ;;  %v4583_v5 = vsel %vm770_vm11, 0.0, %v4549_v61  ;;  %v5059_v50 = vsel %vm5056_vm8, %v5043_v47, %v7378_v8  ;;  %v4800_v63 = vpop.permute.xlu0 %4799  ;;  %v4633_v61 = vrot.slane %v7496_v39, 1  ;;  %v5026_v47 = vsel %vm1589_vm7, %v6947_v49, %v7289_v34 }
 0x706   :  { %v7547_v35 = vsel %vm4588_vm1, %v4583_v5, 0.0  ;;  %v5076_v16 = vsel %vm5073_vm6, %v5059_v50, %v4798_v10 }
 0x707   :  { %4861 = vrot.lane.b32.xlu1 %v7435_v62, %s5700_s13  ;;  %v5109_v62 = vsel %vm5107_vm13, %v5092_v45, %v7376_v48  ;;  %v4468_v48 = vrot.slane %v4467_v11, 2  ;;  %v5093_v8 = vsel %vm5090_vm12, %v5076_v16, %v7454_v60  ;;  %v4632_v36 = vrot.slane %v7547_v35, 1 }
 0x708   :  { %v5126_v14 = vsel %vm5124_vm10, %v5109_v62, %v4939_v33  ;;  %v4461_v33 = vrot.slane %v4460_v30, 2  ;;  %v4692_v34 = vrot.slane %v7547_v35, 2 }
 0x709   :  { %4954 = vrot.lane.b32.xlu0 %v4631_v18, %s5697_s28  ;;  %v7532_v17 = vpop.permute.xlu1 %4897  ;;  %v4469_v2 = vmax.f32 %v4467_v11, %v4468_v48 }
 0x70a   :  { %v4462_v27 = vmax.f32 %v4460_v30, %v4461_v33  ;;  %v7605_v30 = vsel %vm364_vm9, %v5026_v47, %v7306_v24 }
 0x70b   :  { %4952 = vrot.lane.b32.xlu1 %v7403_v53, %s5697_s28  ;;  %v4470_v6 = vrot.slane %v4469_v2, 1  ;;  %v5057_v50 = vsel %vm5056_vm8, %v7605_v30, %v7327_v44 }
 0x70c   :  { %v4463_v45 = vrot.slane %v4462_v27, 1  ;;  %v5074_v24 = vsel %vm5073_vm6, %v5057_v50, %v7466_v21 }
 0x70d   :  { %4999 = vrot.lane.b32.xlu0 %v4691_v3, %s5702_s15  ;;  %v4984_v31 = vpop.permute.xlu1 %4983  ;;  %v4471_v60 = vmax.f32 %v4469_v2, %v4470_v6  ;;  %v5091_v44 = vsel %vm5090_vm12, %v5074_v24, %v7405_v1 }
 0x70e   :  { %v7550_v53 = vsel %vm5141_vm0, %v5126_v14, %v4984_v31  ;;  %v4464_v5 = vmax.f32 %v4462_v27, %v4463_v45 }
 0x70f   :  { %4656 = vrot.lane.b32.xlu1 %v4631_v18, %s5696_s27  ;;  %v5190_v6 = vrot.slane %v7550_v53, 7 }
 0x710   :  { %v4517_v55 = vsel %vm1589_vm7, %v4464_v5, -inf }
 0x711   :  { %4765 = vrot.lane.b32.xlu0 %v7547_v35, %s5699_s4  ;;  %v4750_v56 = vpop.permute.xlu1 %4749 }
 0x712   :  { %v5060_v0 = vsel %vm5056_vm8, %v5044_v23, %v4750_v56 }
 0x713   :  { %4716 = vrot.lane.b32.xlu1 %v4691_v3, %s5698_s29  ;;  %v5077_v43 = vsel %vm5073_vm6, %v5060_v0, %v4800_v63  ;;  %v5061_v3 = vsel %vm5056_vm8, %v7508_v13, %v7437_v4  ;;  %v4551_v4 = vrot.slane %v4513_v7, 7  ;;  %v4518_v13 = vsel %vm1589_vm7, %v4471_v60, -inf }
 0x714   :  { %v4519_v31 = vmax.f32 %v4517_v55, %v4518_v13 }
 0x715   :  { %4911 = vrot.lane.b32.xlu0 %v7547_v35, %s5695_s3  ;;  %v4896_v38 = vpop.permute.xlu1 %4895  ;;  %v4585_v14 = vsel %vm770_vm11, 0.0, %v4551_v4 }
 0x716   :  { %v5110_v10 = vsel %vm5107_vm13, %v5093_v8, %v4896_v38  ;;  %v7601_v7 = vsel %vm4588_vm1, %v4585_v14, 0.0  ;;  %v4553_v48 = vrot.slane %v4519_v31, 7 }
 0x717   :  { %4813 = vrot.lane.b32.xlu1 %v4631_v18, %s5701_s14 }
 0x718   :  { %v7588_v62 = vpop.permute.xlu0 %4648  ;;  %v4587_v63 = vsel %vm770_vm11, 0.0, %v4553_v48 }
 0x719   :  { %4720 = vrot.lane.b32.xlu0 %v4693_v12, %s5698_s29  ;;  %v4802_v58 = vpop.permute.xlu1 %4801  ;;  %v5032_v55 = vsel %vm1589_vm7, %v7198_v42, %v7588_v62 }
 0x71a   :  { %v5078_v15 = vsel %vm5073_vm6, %v5061_v3, %v4802_v58 }
 0x71b   :  { %4913 = vrot.lane.b32.xlu1 %v7496_v39, %s5695_s3 }
 0x71c   :  { %v4945_v46 = vpop.permute.xlu0 %4944 }
 0x71d   :  { %4817 = vrot.lane.b32.xlu0 %v4633_v61, %s5701_s14  ;;  %v4852_v51 = vpop.permute.xlu1 %4851 }
 0x71e   :  { %v5095_v18 = vsel %vm5090_vm12, %v5078_v15, %v4852_v51 }
 0x71f   :  { %4660 = vrot.lane.b32.xlu1 %v4633_v61, %s5696_s27 }
 0x720   :  { %v7623_v33 = vpop.permute.xlu0 %4807 }
 0x721   :  { %4867 = vrot.lane.b32.xlu0 %v4693_v12, %s5700_s13  ;;  %v4943_v11 = vpop.permute.xlu1 %4942 }
 0x723   :  { %5003 = vrot.lane.b32.xlu1 %v4693_v12, %s5702_s15  ;;  %v4634_v12 = vrot.slane %v7601_v7, 1 }
 0x725   :  { %4958 = vrot.lane.b32.xlu0 %v4633_v61, %s5697_s28  ;;  %v7597_v28 = vpop.permute.xlu1 %4753  ;;  %v4694_v61 = vrot.slane %v7601_v7, 2 }
 0x726   :  { %v4902_v27 = vpop.permute.xlu0 %4901 }
 0x727   :  { %4658 = vrot.lane.b32.xlu1 %v4632_v36, %s5696_s27 }
 0x729   :  { %4769 = vrot.lane.b32.xlu0 %v7601_v7, %s5699_s4  ;;  %v4850_v23 = vpop.permute.xlu1 %4849 }
 0x72a   :  { %v5094_v56 = vsel %vm5090_vm12, %v5077_v43, %v4850_v23  ;;  %v7628_v43 = vsel %vm4588_vm1, %v4587_v63, 0.0 }
 0x72b   :  { %v5111_v16 = vsel %vm5107_vm13, %v5094_v56, %v7532_v17  ;;  %4718 = vrot.lane.b32.xlu1 %v4692_v34, %s5698_s29  ;;  %v5108_v17 = vsel %vm5107_vm13, %v5091_v44, %v7357_v26 }
 0x72c   :  { %v5128_v0 = vsel %vm5124_vm10, %v5111_v16, %v4943_v11  ;;  %v7654_v60 = vpop.permute.xlu0 %4761 }
 0x72d   :  { %4956 = vrot.lane.b32.xlu0 %v4632_v36, %s5697_s28  ;;  %v4941_v2 = vpop.permute.xlu1 %4940  ;;  %v5145_v26 = vsel %vm5141_vm0, %v5128_v0, %v7485_v19 }
 0x72e   :  { %v5127_v21 = vsel %vm5124_vm10, %v5110_v10, %v4941_v2  ;;  %v5125_v10 = vsel %vm5124_vm10, %v5108_v17, %v7417_v29  ;;  %v5194_v53 = vrot.slane %v5145_v26, 5  ;;  %v5158_v17 = vld [vmem:[%s7934_s5] sm:$0xff] }
 0x72f   :  { %4815 = vrot.lane.b32.xlu1 %v4632_v36, %s5701_s14  ;;  %v5142_v15 = vsel %vm5141_vm0, %v5125_v10, %v7479_v32  ;;  %v7947_v32 = vmax.f32 %v7445_v59, %v7442_v54  ;;  %v5031_v59 = vsel %vm1589_vm7, %v7088_v57, %v7464_v22  ;;  %v4792_v36 = vrot.slane %v7628_v43, 1 }
 0x730   :  { %v5191_v29 = vsel %vm258_vm2, %v5190_v6, %v5142_v15  ;;  %v7667_v13 = vpop.permute.xlu0 %4907  ;;  %v5046_v47 = vsel %vm364_vm9, %v5031_v59, %v7477_v41  ;;  %v4842_v41 = vrot.slane %v7628_v43, 2 }
 0x731   :  { %4919 = vrot.lane.b32.xlu0 %v7628_v43, %s5695_s3  ;;  %v4900_v8 = vpop.permute.xlu1 %4899  ;;  %v4552_v5 = vrot.slane %v7947_v32, 7  ;;  %v5062_v42 = vsel %vm5056_vm8, %v5046_v47, %v7597_v28 }
 0x732   :  { %v5112_v38 = vsel %vm5107_vm13, %v5095_v18, %v4900_v8  ;;  %v5160_v8 = vld [vmem:[%s7934_s5 + $0x10] sm:$0xff] }
 0x733   :  { %4865 = vrot.lane.b32.xlu1 %v4692_v34, %s5700_s13  ;;  %v5129_v1 = vsel %vm5124_vm10, %v5112_v38, %v4945_v46  ;;  %v4586_v11 = vsel %vm770_vm11, 0.0, %v4552_v5  ;;  %vm7949_vm11 = vcmask 1045509  }
 0x734   :  { %v7678_v54 = vsel %vm4588_vm1, %v4586_v11, 0.0  ;;  %v7689_v62 = vpop.permute.xlu0 %4855  ;;  %vm5704_vm1 = vmmov 0  }
 0x735   :  { %4662 = vrot.lane.b32.xlu0 %v4634_v12, %s5696_s27  ;;  %v4986_v3 = vpop.permute.xlu1 %4985  ;;  %v7693_v48 = vrot.slane %v7678_v54, 1 }
 0x736   :  { %v5144_v58 = vsel %vm5141_vm0, %v5127_v21, %v4986_v3  ;;  %v5162_v3 = vld [vmem:[%s7934_s5 + $0x20] sm:$0xff] }
 0x737   :  { %v5192_v45 = vrot.slane %v5144_v58, 6  ;;  %4915 = vrot.lane.b32.xlu1 %v7601_v7, %s5695_s3  ;;  %v5163_v58 = vld [vmem:[%s7934_s5 + $0x28] sm:$0xff] }
 0x738   :  { %v5644_v15 = vpack.c.bf16 %v5163_v58, %v5162_v3 }
 0x739   :  { %4722 = vrot.lane.b32.xlu0 %v4694_v61, %s5698_s29  ;;  %v5193_v19 = vsel %vm260_vm3, %v5192_v45, %v5191_v29  ;;  %v7657_v51 = vpop.permute.xlu1 %4757 }
 0x73a   :  { %v5195_v18 = vsel %vm262_vm4, %v5194_v53, %v5193_v19  ;;  %v4695_v53 = vrot.slane %v7678_v54, 2 }
 0x73b   :  { %5001 = vrot.lane.b32.xlu1 %v4692_v34, %s5702_s15  ;;  %v7948_v34 = vrot.slane %v6947_v49, 2 }
 0x73d   :  { %4819 = vrot.lane.b32.xlu0 %v4634_v12, %s5701_s14  ;;  %v7665_v4 = vpop.permute.xlu1 %4903 }
 0x73f   :  { %4773 = vrot.lane.b32.xlu1 %v7628_v43, %s5699_s4 }
 0x741   :  { %4960 = vrot.lane.b32.xlu0 %v4634_v12, %s5697_s28  ;;  %v4709_v14 = vpop.permute.xlu1 %4708  ;;  %v5159_v12 = vld [vmem:[%s7934_s5 + $0x8] sm:$0xff] }
 0x742   :  { %v5047_v31 = vsel %vm364_vm9, %v5032_v55, %v4709_v14  ;;  %v5636_v38 = vpack.c.bf16 %v5159_v12, %v5158_v17  ;;  %v5165_v55 = vld [vmem:[%s7934_s5 + $0x38] sm:$0xff] }
 0x743   :  { %4869 = vrot.lane.b32.xlu1 %v4694_v61, %s5700_s13 }
 0x744   :  { %5637 = vmatprep.subr.bf16.mxu0 %v5636_v38 }
 0x745   :  { %5005 = vrot.lane.b32.xlu0 %v4694_v61, %s5702_s15  ;;  %v4804_v46 = vpop.permute.xlu1 %4803  ;;  %5639 = vmatpush3.bf16.msra.mxu0 %v5636_v38 }
 0x746   :  { %v5079_v57 = vsel %vm5073_vm6, %v5062_v42, %v4804_v46 }
 0x747   :  { %4821 = vrot.lane.b32.xlu1 %v7693_v48, %s5701_s14 }
 0x749   :  { %4823 = vrot.lane.b32.xlu0 %v4792_v36, %s5701_s14  ;;  %v4854_v23 = vpop.permute.xlu1 %4853 }
 0x74a   :  { %v5096_v28 = vsel %vm5090_vm12, %v5079_v57, %v4854_v23 }
 0x74b   :  { %v4764_v22 = vpop.permute.xlu0 %4763  ;;  %4995 = vrot.lane.b32.xlu1 %v7948_v34, %s5702_s15  ;;  %v7708_v50 = vsel %vm5107_vm13, %v5096_v28, %v4902_v27  ;;  %v5161_v27 = vld [vmem:[%s7934_s5 + $0x18] sm:$0xff] }
 0x74c   :  { %v5640_v26 = vpack.c.bf16 %v5161_v27, %v5160_v8 }
 0x74d   :  { %4873 = vrot.lane.b32.xlu0 %v4842_v41, %s5700_s13  ;;  %v4990_v24 = vpop.permute.xlu1 %4989 }
 0x74e   :  { %v5146_v16 = vsel %vm5141_vm0, %v5129_v1, %v4990_v24  ;;  %5641 = vmatprep.subr.bf16.mxu0 %v5640_v26 }
 0x74f   :  { %v7710_v56 = vpop.permute.xlu0 %4909  ;;  %v5196_v63 = vrot.slane %v5146_v16, 4  ;;  %5643 = vmatpush3.bf16.msra.mxu0 %v5640_v26 }
 0x750   :  { %5645 = vmatprep.subr.bf16.mxu0 %v5644_v15 }
 0x751   :  { %4964 = vrot.lane.b32.xlu0 %v4792_v36, %s5697_s28  ;;  %v7715_v2 = vsel %vm264_vm5, %v5196_v63, %v5195_v18  ;;  %v7717_v44 = vpop.permute.xlu1 %4857  ;;  %v5166_v36 = vld [vmem:[%s7934_s5 + $0x40] sm:$0xff] }
 0x753   :  { %v4653_v0 = vpop.permute.xlu0 %4652  ;;  %5647 = vmatpush3.bf16.msra.mxu0 %v5644_v15 }
 0x754   :  { %v5034_v1 = vsel %vm1589_vm7, %v7381_v25, %v4653_v0 }
 0x755   :  { %4771 = vrot.lane.b32.xlu0 %v7678_v54, %s5699_s4  ;;  %v7721_v21 = vpop.permute.xlu1 %4948 }
 0x757   :  { %v4655_v49 = vpop.permute.xlu0 %4654 }
 0x758   :  { %v5035_v45 = vsel %vm1589_vm7, %v7263_v20, %v4655_v49  ;;  %v5164_v20 = vld [vmem:[%s7934_s5 + $0x30] sm:$0xff] }
 0x759   :  { %4917 = vrot.lane.b32.xlu0 %v7678_v54, %s5695_s3  ;;  %v4994_v6 = vpop.permute.xlu1 %4993 }
 0x75b   :  { %v4713_v10 = vpop.permute.xlu0 %4712 }
 0x75c   :  { %v5049_v61 = vsel %vm364_vm9, %v5034_v1, %v4713_v10 }
 0x75d   :  { %4664 = vrot.lane.b32.xlu0 %v7693_v48, %s5696_s27  ;;  %v5066_v25 = vsel %vm5056_vm8, %v5049_v61, %v7654_v60  ;;  %v4756_v19 = vpop.permute.xlu1 %4755 }
 0x75e   :  { %v5063_v32 = vsel %vm5056_vm8, %v5047_v31, %v4756_v19  ;;  %v5648_v31 = vpack.c.bf16 %v5165_v55, %v5164_v20 }
 0x75f   :  { %v4715_v29 = vpop.permute.xlu0 %4714 }
 0x760   :  { %v5050_v18 = vsel %vm364_vm9, %v5035_v45, %v4715_v29  ;;  %5649 = vmatprep.subr.bf16.mxu0 %v5648_v31 }
 0x761   :  { %4724 = vrot.lane.b32.xlu0 %v4695_v53, %s5698_s29  ;;  %v7757_v5 = vsel %vm5056_vm8, %v5050_v18, %v4764_v22  ;;  %v4760_v11 = vpop.permute.xlu1 %4759  ;;  %5651 = vmatpush3.bf16.msra.mxu0 %v5648_v31 }
 0x762   :  { %v5065_v59 = vsel %vm5056_vm8, %v7605_v30, %v4760_v11  ;;  %5607 = vmatprep.subr.mxu0 %v5166_v36 }
 0x763   :  { %v4812_v60 = vpop.permute.xlu0 %4811 }
 0x764   :  { %v5083_v14 = vsel %vm5073_vm6, %v5066_v25, %v4812_v60 }
 0x765   :  { %4871 = vrot.lane.b32.xlu0 %v4695_v53, %s5700_s13  ;;  %v4651_v42 = vpop.permute.xlu1 %4650  ;;  %5608 = vmatpush3.msra.mxu0 %v5166_v36 }
 0x766   :  { %v5033_v22 = vsel %vm1589_vm7, %v7249_v9, %v4651_v42 }
 0x767   :  { %v4810_v47 = vpop.permute.xlu0 %4809 }
 0x768   :  { %v5082_v46 = vsel %vm5073_vm6, %v5065_v59, %v4810_v47 }
 0x769   :  { %4962 = vrot.lane.b32.xlu0 %v7693_v48, %s5697_s28  ;;  %v4711_v30 = vpop.permute.xlu1 %4710 }
 0x76a   :  { %v5048_v28 = vsel %vm364_vm9, %v5033_v22, %v4711_v30 }
 0x76b   :  { %v4860_v57 = vpop.permute.xlu0 %4859  ;;  %v5064_v34 = vsel %vm5056_vm8, %v5048_v28, %v7657_v51 }
 0x76c   :  { %v5099_v23 = vsel %vm5090_vm12, %v5082_v46, %v4860_v57  ;;  %v5081_v48 = vsel %vm5073_vm6, %v5064_v34, %v7623_v33 }
 0x76d   :  { %5007 = vrot.lane.b32.xlu0 %v4695_v53, %s5702_s15  ;;  %v5116_v24 = vsel %vm5107_vm13, %v5099_v23, %v7667_v13  ;;  %v4806_v63 = vpop.permute.xlu1 %4805  ;;  %v7788_v9 = vsel %vm5090_vm12, %v5081_v48, %v7717_v44 }
 0x76e   :  { %v5080_v0 = vsel %vm5073_vm6, %v5063_v32, %v4806_v63 }
 0x76f   :  { %v4998_v16 = vpop.permute.xlu0 %4997  ;;  %v5097_v51 = vsel %vm5090_vm12, %v5080_v0, %v7689_v62 }
 0x770   :  { %v5114_v13 = vsel %vm5107_vm13, %v5097_v51, %v7665_v4 }
 0x771   :  { %5009 = vrot.lane.b32.xlu0 %v4842_v41, %s5702_s15  ;;  %v5131_v33 = vsel %vm5124_vm10, %v5114_v13, %v7721_v21  ;;  %v4947_v17 = vpop.permute.xlu1 %4946 }
 0x772   :  { %v5130_v44 = vsel %vm5124_vm10, %v7708_v50, %v4947_v17  ;;  %v5148_v12 = vsel %vm5141_vm0, %v5131_v33, %v4994_v6 }
 0x773   :  { %v4768_v49 = vpop.permute.xlu0 %4767  ;;  %v5200_v27 = vrot.slane %v5148_v12, 2 }
 0x775   :  { %v4992_v38 = vpop.permute.xlu1 %4991 }
 0x776   :  { %v5147_v43 = vsel %vm5141_vm0, %v5130_v44, %v4992_v38 }
 0x777   :  { %v4864_v8 = vpop.permute.xlu0 %4863  ;;  %v5198_v41 = vrot.slane %v5147_v43, 3 }
 0x779   :  { %v5199_v4 = vsel %vm7949_vm11, %v5198_v41, %v7715_v2  ;;  %v4862_v1 = vpop.permute.xlu1 %4861 }
 0x77a   :  { %v5100_v10 = vsel %vm5090_vm12, %v5083_v14, %v4862_v1  ;;  %v7808_v21 = vsel %vm7950_vm14, %v5200_v27, %v5199_v4 }
 0x77b   :  { %v4955_v62 = vpop.permute.xlu0 %4954  ;;  %v5117_v50 = vsel %vm5107_vm13, %v5100_v10, %v7710_v56 }
 0x77c   :  { %v5134_v6 = vsel %vm5124_vm10, %v5117_v50, %v4955_v62 }
 0x77d   :  { %v4953_v61 = vpop.permute.xlu1 %4952 }
 0x77e   :  { %v5133_v58 = vsel %vm5124_vm10, %v5116_v24, %v4953_v61 }
 0x77f   :  { %v5000_v26 = vpop.permute.xlu0 %4999  ;;  %v5150_v2 = vsel %vm5141_vm0, %v5133_v58, %v4998_v16 }
 0x780   :  { %v5151_v3 = vsel %vm5141_vm0, %v5134_v6, %v5000_v26 }
 0x781   :  { %v5204_v25 = vrot.slane %v5151_v3, 7  ;;  %v4657_v29 = vpop.permute.xlu1 %4656 }
 0x782   :  { %v5036_v19 = vsel %vm1589_vm7, %v7362_v40, %v4657_v29 }
 0x783   :  { %v4766_v15 = vpop.permute.xlu0 %4765  ;;  %v5205_v45 = vsel %vm258_vm2, %v5204_v25, %v5150_v2 }
 0x785   :  { %v4717_v56 = vpop.permute.xlu1 %4716 }
 0x786   :  { %v5051_v18 = vsel %vm364_vm9, %v5036_v19, %v4717_v56 }
 0x787   :  { %v4912_v53 = vpop.permute.xlu0 %4911  ;;  %v5068_v32 = vsel %vm5056_vm8, %v5051_v18, %v4766_v15 }
 0x789   :  { %v4814_v11 = vpop.permute.xlu1 %4813 }
 0x78a   :  { %v5084_v20 = vsel %vm5073_vm6, %v7757_v5, %v4814_v11 }
 0x78b   :  { %v4721_v60 = vpop.permute.xlu0 %4720  ;;  %v5101_v55 = vsel %vm5090_vm12, %v5084_v20, %v4864_v8 }
 0x78c   :  { %v5118_v14 = vsel %vm5107_vm13, %v5101_v55, %v4912_v53 }
 0x78d   :  { %v4914_v59 = vpop.permute.xlu1 %4913 }
 0x78f   :  { %v4818_v31 = vpop.permute.xlu0 %4817 }
 0x791   :  { %v4661_v42 = vpop.permute.xlu1 %4660 }
 0x792   :  { %v5038_v40 = vsel %vm1589_vm7, %v7496_v39, %v4661_v42 }
 0x793   :  { %v4868_v47 = vpop.permute.xlu0 %4867  ;;  %v5053_v36 = vsel %vm364_vm9, %v5038_v40, %v4721_v60 }
 0x795   :  { %v5004_v57 = vpop.permute.xlu1 %5003 }
 0x797   :  { %v4959_v46 = vpop.permute.xlu0 %4958 }
 0x799   :  { %v4659_v30 = vpop.permute.xlu1 %4658 }
 0x79a   :  { %v5037_v28 = vsel %vm1589_vm7, %v7547_v35, %v4659_v30 }
 0x79b   :  { %v4770_v22 = vpop.permute.xlu0 %4769 }
 0x79c   :  { %v7829_v23 = vsel %vm5056_vm8, %v5053_v36, %v4770_v22 }
 0x79d   :  { %v4719_v34 = vpop.permute.xlu1 %4718 }
 0x79e   :  { %v5052_v24 = vsel %vm364_vm9, %v5037_v28, %v4719_v34 }
 0x79f   :  { %v4957_v5 = vpop.permute.xlu0 %4956  ;;  %v5069_v48 = vsel %vm5056_vm8, %v5052_v24, %v4768_v49 }
 0x7a0   :  { %v5086_v39 = vsel %vm5073_vm6, %v5069_v48, %v4818_v31  ;;  %v5135_v38 = vsel %vm5124_vm10, %v5118_v14, %v4957_v5 }
 0x7a1   :  { %v4816_v63 = vpop.permute.xlu1 %4815  ;;  %v5103_v0 = vsel %vm5090_vm12, %v5086_v39, %v4868_v47 }
 0x7a2   :  { %v5085_v13 = vsel %vm5073_vm6, %v5068_v32, %v4816_v63 }
 0x7a3   :  { %v7836_v16 = vpop.permute.xlu0 %4919 }
 0x7a5   :  { %v4866_v33 = vpop.permute.xlu1 %4865 }
 0x7a6   :  { %v5102_v17 = vsel %vm5090_vm12, %v5085_v13, %v4866_v33 }
 0x7a7   :  { %v4663_v51 = vpop.permute.xlu0 %4662  ;;  %v5119_v35 = vsel %vm5107_vm13, %v5102_v17, %v4914_v59 }
 0x7a8   :  { %v5136_v44 = vsel %vm5124_vm10, %v5119_v35, %v4959_v46  ;;  %v5039_v40 = vsel %vm1589_vm7, %v7601_v7, %v4663_v51 }
 0x7a9   :  { %v5153_v49 = vsel %vm5141_vm0, %v5136_v44, %v5004_v57  ;;  %v4916_v8 = vpop.permute.xlu1 %4915 }
 0x7aa   :  { %v5208_v4 = vrot.slane %v5153_v49, 5  ;;  %v5120_v26 = vsel %vm5107_vm13, %v5103_v0, %v4916_v8  ;;  %v5703_v8 = vmov 0.0|0.0  }
 0x7ab   :  { %v4723_v12 = vpop.permute.xlu0 %4722  ;;  %5652 = vmatprep.subr.bf16.mxu0 %v5703_v8  ;;  %5655 = vmatprep.subr.bf16.mxu1 %v5703_v8 }
 0x7ad   :  { %v5002_v41 = vpop.permute.xlu1 %5001 }
 0x7ae   :  { %v5152_v27 = vsel %vm5141_vm0, %v5135_v38, %v5002_v41  ;;  %v5315_v38 = vld [vmem:[%s7935_s7 + $0x8] sm:$0xff] }
 0x7af   :  { %v4820_v43 = vpop.permute.xlu0 %4819  ;;  %v5206_v62 = vrot.slane %v5152_v27, 6  ;;  %v5399_v27 = vld [vmem:[%s7936_s9] sm:$0xff] }
 0x7b1   :  { %v5207_v10 = vsel %vm260_vm3, %v5206_v62, %v5205_v45  ;;  %v4774_v50 = vpop.permute.xlu1 %4773  ;;  %v5115_v45 = vsel %vm5107_vm13, %v7788_v9, %v7304_v52  ;;  %vm5218_vm3 = vcmask 588800   ;;  %v5400_v62 = vld [vmem:[%s7936_s9 + $0x8] sm:$0xff] }
 0x7b2   :  { %v5209_v6 = vsel %vm262_vm4, %v5208_v4, %v5207_v10  ;;  %v5132_v56 = vsel %vm5124_vm10, %v5115_v45, %v7325_v37  ;;  %vm7951_vm4 = vcmask 1047559   ;;  %v5401_v4 = vld [vmem:[%s7936_s9 + $0x10] sm:$0xff]  ;;  %v5402_v10 = vld [vmem:[%s7936_s9 + $0x18] sm:$0xff] }
 0x7b3   :  { %v4961_v1 = vpop.permute.xlu0 %4960  ;;  %vm7954_vm15 = vmmov %vm7951_vm4 }
 0x7b4   :  { %v5137_v61 = vsel %vm5124_vm10, %v5120_v26, %v4961_v1  ;;  %v5656_v1 = vpack.c.bf16 %v5400_v62, %v5399_v27 }
 0x7b5   :  { %v4870_v58 = vpop.permute.xlu1 %4869 }
 0x7b6   :  { %5657 = vmatpush3.bf16.msra.mxu1 %v5656_v1 }
 0x7b7   :  { %v5006_v3 = vpop.permute.xlu0 %5005  ;;  %5658 = vmatprep.subr.bf16.mxu1 %v5703_v8 }
 0x7b8   :  { %v5154_v25 = vsel %vm5141_vm0, %v5137_v61, %v5006_v3 }
 0x7b9   :  { %v5210_v2 = vrot.slane %v5154_v25, 4  ;;  %v4822_v53 = vpop.permute.xlu1 %4821 }
 0x7bb   :  { %v5211_v15 = vsel %vm264_vm5, %v5210_v2, %v5209_v6  ;;  %v4824_v29 = vpop.permute.xlu0 %4823  ;;  %vm7952_vm5 = vmmov %vm7949_vm11  ;;  %v5521_v6 = vld [vmem:[%s7937_s6] ss:$0 sm:$0xff] }
 0x7bd   :  { %v4996_v18 = vpop.permute.xlu1 %4995 }
 0x7be   :  { %v5149_v32 = vsel %vm5141_vm0, %v5132_v56, %v4996_v18 }
 0x7bf   :  { %v4874_v19 = vpop.permute.xlu0 %4873  ;;  %v5202_v60 = vrot.slane %v5149_v32, 1 }
 0x7c1   :  { %v5203_v20 = vsel %vm7951_vm4, %v5202_v60, %v7808_v21  ;;  %v5054_v21 = vsel %vm364_vm9, %v5039_v40, %v4723_v12 }
 0x7c2   :  { %5609 = vmatprep.mubr.msk.f32.mxu0 %vm5218_vm3, %v5203_v20 }
 0x7c3   :  { %v4965_v11 = vpop.permute.xlu0 %4964 }
 0x7c7   :  { %v4772_v55 = vpop.permute.xlu0 %4771 }
 0x7c8   :  { %v5071_v57 = vsel %vm5056_vm8, %v5054_v21, %v4772_v55 }
 0x7c9   :  { %v5088_v5 = vsel %vm5073_vm6, %v5071_v57, %v4822_v53 }
 0x7cb   :  { %v4918_v14 = vpop.permute.xlu0 %4917 }
 0x7cf   :  { %v4665_v31 = vpop.permute.xlu0 %4664 }
 0x7d0   :  { %v5040_v9 = vsel %vm1589_vm7, %v7678_v54, %v4665_v31  ;;  %v5087_v54 = vsel %vm5073_vm6, %v7829_v23, %v4820_v43  ;;  %vm7953_vm7 = vmmov %vm7950_vm14  ;;  %v7955_v43 = vmov 0.0  }
 0x7d1   :  { %v5104_v28 = vsel %vm5090_vm12, %v5087_v54, %v4870_v58  ;;  %5627 = vmatprep.mubr.msk.f32.mxu1 %vm5704_vm1, %v7955_v43 }
 0x7d2   :  { %v5121_v24 = vsel %vm5107_vm13, %v5104_v28, %v4918_v14 }
 0x7d3   :  { %v4725_v59 = vpop.permute.xlu0 %4724 }
 0x7d4   :  { %v5055_v47 = vsel %vm364_vm9, %v5040_v9, %v4725_v59  ;;  %v16_v59 = vstv %s7938_s10 }
 0x7d5   :  { %v5072_v42 = vsel %vm5056_vm8, %v5055_v47, %v4774_v50  ;;  %v5659_v50 = vpack.c.bf16 %v5402_v10, %v5401_v4  ;;  %17 = vst [vmem:[#allocation2] sm:$0x1] %v16_v59  ;;  %v5524_v47 = vld [vmem:[%s7939_s8] ss:$0 sm:$0xff] }
 0x7d6   :  { %v5089_v36 = vsel %vm5073_vm6, %v5072_v42, %v4824_v29 }
 0x7d7   :  { %v4872_v46 = vpop.permute.xlu0 %4871  ;;  %v5106_v22 = vsel %vm5090_vm12, %v5089_v36, %v4874_v19  ;;  %5660 = vmatpush3.bf16.msra.mxu1 %v5659_v50 }
 0x7d8   :  { %v5123_v7 = vsel %vm5107_vm13, %v5106_v22, %v7304_v52  ;;  %v5105_v34 = vsel %vm5090_vm12, %v5088_v5, %v4872_v46 }
 0x7d9   :  { %v5122_v63 = vsel %vm5107_vm13, %v5105_v34, %v7836_v16  ;;  %v5140_v23 = vsel %vm5124_vm10, %v5123_v7, %v7325_v37  ;;  %v5314_v37 = vld [vmem:[%s7935_s7] sm:$0xff] }
 0x7da   :  { %v5139_v52 = vsel %vm5124_vm10, %v5122_v63, %v4965_v11  ;;  %v5157_v17 = vsel %vm5141_vm0, %v5140_v23, %v4996_v18  ;;  %v5653_v41 = vpack.c.bf16 %v5315_v38, %v5314_v37 }
 0x7db   :  { %v4963_v30 = vpop.permute.xlu0 %4962  ;;  %v5216_v12 = vrot.slane %v5157_v17, 1 }
 0x7dc   :  { %v5138_v48 = vsel %vm5124_vm10, %v5121_v24, %v4963_v30  ;;  %v5526_v21 = vld [vmem:[#allocation2] ss:$0 sm:$0xff] }
 0x7df   :  { %v5008_v39 = vpop.permute.xlu0 %5007 }
 0x7e0   :  { %v5155_v0 = vsel %vm5141_vm0, %v5138_v48, %v5008_v39 }
 0x7e1   :  { %v5212_v51 = vrot.slane %v5155_v0, 3 }
 0x7e3   :  { %v5213_v13 = vsel %vm7952_vm5, %v5212_v51, %v5211_v15  ;;  %v5010_v33 = vpop.permute.xlu0 %5009 }
 0x7e4   :  { %v5156_v35 = vsel %vm5141_vm0, %v5139_v52, %v5010_v33 }
 0x7e5   :  { %v5214_v44 = vrot.slane %v5156_v35, 2 }
 0x7e7   :  { %v5215_v49 = vsel %vm7953_vm7, %v5214_v44, %v5213_v13 }
 0x7e8   :  { %v5217_v16 = vsel %vm7954_vm15, %v5216_v12, %v5215_v49 }
 0x7e9   :  { %5610 = vmatmul.mubr.msk.f32.vlgmr.msra.gmra.mrb[2].mxu0 %vm5218_vm3, %v5217_v16 }
 0x7ea   :  { %5616 = vmatprep.mubr.msk.f32.mxu0 %vm5704_vm1, %v7955_v43  ;;  %5654 = vmatpush3.bf16.msra.mxu0 %v5653_v41 }
 0x8bc   :  { %v5611_v26 = vpop.f32.mrb[2].mxu0 }
 0x8bd   :  { %v5295_v61 = vadd.f32 %v5611_v26, %v5521_v6  ;;  %v5289_v3 = vpop.f32.mrb[3].mxu0 }
 0x8be   :  { %v5290_v58 = vadd.f32 %v5521_v6, %v5289_v3 }
 0x8bf   :  { %v5299_v25 = vmax.f32 %v5295_v61, 0.0 }
 0x8c0   :  { %v5298_v2 = vmax.f32 %v5290_v58, 0.0 }
 0x8c1   :  { %v5307_v15 = vsel %vm364_vm9, %v5299_v25, -inf }
 0x8c2   :  { %v5308_v29 = vrot.slane %v5307_v15, 4  ;;  %v5300_v53 = vsel %vm364_vm9, %v5298_v2, -inf }
 0x8c3   :  { %v5301_v45 = vrot.slane %v5300_v53, 4 }
 0x8c4   :  { %v5309_v19 = vmax.f32 %v5307_v15, %v5308_v29 }
 0x8c5   :  { %v5302_v56 = vmax.f32 %v5300_v53, %v5301_v45 }
 0x8c6   :  { %v5310_v18 = vrot.slane %v5309_v19, 2 }
 0x8c7   :  { %v5303_v32 = vrot.slane %v5302_v56, 2 }
 0x8c8   :  { %v5311_v60 = vmax.f32 %v5309_v19, %v5310_v18 }
 0x8c9   :  { %v5304_v11 = vmax.f32 %v5302_v56, %v5303_v32 }
 0x8ca   :  { %v5312_v20 = vrot.slane %v5311_v60, 1 }
 0x8cb   :  { %v5305_v55 = vrot.slane %v5304_v11, 1 }
 0x8cc   :  { %v5313_v14 = vmax.f32 %v5311_v60, %v5312_v20 }
 0x8cd   :  { %v5306_v31 = vmax.f32 %v5304_v11, %v5305_v55 }
 0x8cf   :  { %v5325_v9 = vsel %vm258_vm2, %v5313_v14, %v5306_v31  ;;  %vm5489_vm2 = vcmask 1024  }
 0x8d0   :  { %5617 = vmatmul.mubr.msk.f32.vlgmr.msra.gmra.mrb[4].mxu0 %vm364_vm9, %v5325_v9 }
 0x9a3   :  { %v5394_v42 = vpop.f32.mrb[4].mxu0 }
 0x9a4   :  { %v5395_v40 = vadd.f32 %v5524_v47, %v5394_v42  ;;  %v5618_v36 = vpop.f32.mrb[5].mxu0 }
 0x9a6   :  { %v5398_v46 = vmax.f32 %v5395_v40, 0.0 }
 0x9a8   :  { %5628 = vmatmul.mubr.msk.f32.vlgmr.msra.gmra.mrb[12].mxu1 %vm5073_vm6, %v5398_v46 }
 0xa7b   :  { %v5479_v57 = vpop.f32.mrb[12].mxu1 }
 0xa7c   :  { %v5480_v22 = vadd.f32 %v5526_v21, %v5479_v57  ;;  %v5629_v30 = vpop.f32.mrb[13].mxu1 }
 0xa7e   :  { %v5483_v54 = vsub.f32 0.0, %v5480_v22 }
 0xa80   :  { %v5484_v5 = vmul.f32 1.442695, %v5483_v54 }
 0xa82   :  { %5686 = vpow2.f32 %v5484_v5 }
 0xa8c   :  { %v5687_v28 = vpop.eup %5686 }
 0xa8d   :  { %v5486_v7 = vadd.f32 1.0, %v5687_v28 }
 0xa8f   :  { %5688 = vrcp.f32 %v5486_v7 }
 0xa99   :  { %v5689_v34 = vpop.eup %5688 }
 0xa9a   :  { %5490 = vst.msk [vmem:[%s7940_s11] sm:$0x3] %vm5489_vm2, %v5689_v34 }

</bundles_post_ra>
